<compile_context>
chip_gen: v6e
topology: v6e:2x2x1
jax: 0.10.0
libtpu: 0.0.40
codegen_flags: <defaults>
</compile_context>

<pallas_src>
import jax
import jax.numpy as jnp
from jax import lax
from jax.experimental import pallas as pl
from jax.experimental.pallas import tpu as pltpu


# ----------------------------------------------------------------------------- kernel
def build_kernel(num_layers, n_dir, H, L, Bp):
    """Fused GRU-stack + dropout + Linear kernel. Everything resident in VMEM."""
    n_gru = num_layers * n_dir * 4  # (W_ih^T, W_hh^T, b_ih, b_hh) per (layer, dir)
    feat = n_dir * H
    f32 = jnp.float32

    def kernel(*args):
        x_ref = args[0]                       # (L*Bp, E)  time-major, flattened
        gru_refs = args[1:1 + n_gru]
        fc_w_ref = args[1 + n_gru]            # (feat, Ncp)
        fc_b_ref = args[2 + n_gru]            # (1, Ncp)
        mask_ref = args[3 + n_gru]            # (Bp, feat)  scaled dropout mask
        out_ref = args[4 + n_gru]             # (Bp, Ncp)
        seq_ref = args[5 + n_gru]             # (L*Bp, feat) scratch: [fwd | bwd] per t

        def load_weights(layer, d):
            base = (layer * n_dir + d) * 4
            return (gru_refs[base][...],       # (in, 3H)
                    gru_refs[base + 1][...],   # (H, 3H)
                    gru_refs[base + 2][...],   # (1, 3H)
                    gru_refs[base + 3][...])   # (1, 3H)

        def gru_cell(gi_t, h, whh_t, bhh):
            # gi_t already contains x_t @ W_ih^T + b_ih (hoisted).
            gh = jnp.dot(h, whh_t, preferred_element_type=f32) + bhh          # (Bp, 3H)
            r = jax.nn.sigmoid(gi_t[:, 0:H] + gh[:, 0:H])
            z = jax.nn.sigmoid(gi_t[:, H:2 * H] + gh[:, H:2 * H])
            n = jnp.tanh(gi_t[:, 2 * H:3 * H] + r * gh[:, 2 * H:3 * H])
            return (1.0 - z) * n + z * h

        hs = [None] * n_dir
        for layer in range(num_layers):
            # ---- hoisted input projection: one big MXU matmul per direction ----
            inp = x_ref[...] if layer == 0 else seq_ref[...]                  # (L*Bp, in)
            gis, whhs, bhhs = [], [], []
            for d in range(n_dir):
                wih_t, whh_t, bih, bhh = load_weights(layer, d)
                gis.append(jnp.dot(inp, wih_t, preferred_element_type=f32) + bih)
                whhs.append(whh_t)
                bhhs.append(bhh)

            write_seq = layer < num_layers - 1   # last layer's per-t outputs are unused
            hs = [jnp.zeros((Bp, H), f32) for _ in range(n_dir)]

            # ---- fused fwd/bwd recurrence, fully unrolled (L is small & static) ----
            for t in range(L):
                for d in range(n_dir):
                    ti = t if d == 0 else L - 1 - t
                    gi_t = gis[d][ti * Bp:(ti + 1) * Bp, :]                   # (Bp, 3H)
                    hs[d] = gru_cell(gi_t, hs[d], whhs[d], bhhs[d])
                    if write_seq:
                        seq_ref[ti * Bp:(ti + 1) * Bp, d * H:(d + 1) * H] = hs[d]

        # torch.cat([hidden[-1], hidden[-2]], dim=1) == [backward_final | forward_final]
        if n_dir == 2:
            hidden = jnp.concatenate([hs[1], hs[0]], axis=-1)                 # (Bp, 2H)
        else:
            hidden = hs[0]

        hidden = hidden * mask_ref[...]                                       # dropout
        out_ref[...] = (jnp.dot(hidden, fc_w_ref[...], preferred_element_type=f32)
                        + fc_b_ref[...])

    return kernel


# ----------------------------------------------------------------------------- wrapper
def classifier_forward(params, token_ids, *, num_layers, hidden_size, n_class,
                       bidirectional=True, dropout_p=0.2, dropout_rng=None):
    n_dir = 2 if bidirectional else 1
    H = hidden_size
    B, L = token_ids.shape
    Bp = max(8, ((B + 7) // 8) * 8)            # pad batch to sublane multiple
    Ncp = ((n_class + 127) // 128) * 128       # pad classes to a full lane tile
    feat = n_dir * H

    # glue: embedding gather + time-major layout + batch padding (+ flatten to 2D)
    emb = jnp.take(params["embedding"], token_ids, axis=0)                    # (B, L, E)
    E = emb.shape[-1]
    x = jnp.transpose(emb, (1, 0, 2)).astype(jnp.float32)                     # (L, B, E)
    x = jnp.pad(x, ((0, 0), (0, Bp - B), (0, 0)))                             # (L, Bp, E)
    x = x.reshape(L * Bp, E)                                                  # (L*Bp, E)

    flat = [x]
    for l in range(num_layers):
        for d in range(n_dir):
            wih, whh, bih, bhh = params["gru"][(l, d)]
            flat += [jnp.asarray(wih, jnp.float32).T,          # (in, 3H)
                     jnp.asarray(whh, jnp.float32).T,          # (H, 3H)
                     jnp.asarray(bih, jnp.float32)[None, :],   # (1, 3H)
                     jnp.asarray(bhh, jnp.float32)[None, :]]   # (1, 3H)
    fc_w = jnp.pad(jnp.asarray(params["fc_w"], jnp.float32).T,
                   ((0, 0), (0, Ncp - n_class)))                              # (feat, Ncp)
    fc_b = jnp.pad(jnp.asarray(params["fc_b"], jnp.float32)[None, :],
                   ((0, 0), (0, Ncp - n_class)))                              # (1, Ncp)
    flat += [fc_w, fc_b]

    # TODO(synk): host-side dropout mask (jax.random); cannot bit-match torch RNG.
    if dropout_p > 0.0:
        if dropout_rng is None:
            dropout_rng = jax.random.PRNGKey(0)
        keep = jax.random.bernoulli(dropout_rng, 1.0 - dropout_p, (Bp, feat))
        mask = keep.astype(jnp.float32) / (1.0 - dropout_p)
    else:
        mask = jnp.ones((Bp, feat), jnp.float32)
    flat += [mask]

    kernel = build_kernel(num_layers, n_dir, H, L, Bp)

    out = pl.pallas_call(
        kernel,
        out_shape=jax.ShapeDtypeStruct((Bp, Ncp), jnp.float32),
        in_specs=[pl.BlockSpec(memory_space=pltpu.MemorySpace.VMEM)] * len(flat),
        out_specs=pl.BlockSpec(memory_space=pltpu.MemorySpace.VMEM),
        scratch_shapes=[pltpu.VMEM((L * Bp, feat), jnp.float32)],
    )(*flat)
    return out[:B, :n_class]


# ----------------------------------------------------------------------------- params
def init_params(key, vocab_size, E, H, num_layers, n_class, bidirectional=True):
    n_dir = 2 if bidirectional else 1
    keys = jax.random.split(key, 3 + num_layers * n_dir)
    k = 1.0 / float(H) ** 0.5
    params = {"embedding": jax.random.normal(keys[0], (vocab_size, E), jnp.float32)}
    gru, idx = {}, 1
    for l in range(num_layers):
        in_size = E if l == 0 else n_dir * H
        for d in range(n_dir):
            sub = jax.random.split(keys[idx], 4); idx += 1
            gru[(l, d)] = (
                jax.random.uniform(sub[0], (3 * H, in_size), jnp.float32, -k, k),
                jax.random.uniform(sub[1], (3 * H, H), jnp.float32, -k, k),
                jax.random.uniform(sub[2], (3 * H,), jnp.float32, -k, k),
                jax.random.uniform(sub[3], (3 * H,), jnp.float32, -k, k),
            )
    params["gru"] = gru
    params["fc_w"] = jax.random.uniform(keys[idx], (n_class, n_dir * H), jnp.float32, -k, k)
    params["fc_b"] = jax.random.uniform(keys[idx + 1], (n_class,), jnp.float32, -k, k)
    return params


# ----------------------------------------------------------------------------- pure-JAX reference (no dropout)
def classifier_reference(params, token_ids, *, num_layers, hidden_size, bidirectional=True):
    n_dir = 2 if bidirectional else 1
    H = hidden_size
    emb = jnp.take(params["embedding"], token_ids, axis=0)                    # (B, L, E)
    B, L, _ = emb.shape

    def run_dir(inp, wih, whh, bih, bhh, reverse):
        seq = inp[:, ::-1, :] if reverse else inp
        h = jnp.zeros((B, H), jnp.float32)
        outs = []
        for t in range(L):
            xt = seq[:, t, :]
            gi = xt @ wih.T + bih
            gh = h @ whh.T + bhh
            r = jax.nn.sigmoid(gi[:, :H] + gh[:, :H])
            z = jax.nn.sigmoid(gi[:, H:2 * H] + gh[:, H:2 * H])
            n = jnp.tanh(gi[:, 2 * H:] + r * gh[:, 2 * H:])
            h = (1.0 - z) * n + z * h
            outs.append(h)
        outs = jnp.stack(outs, axis=1)
        if reverse:
            outs = outs[:, ::-1, :]
        return outs, h

    layer_in, finals = emb.astype(jnp.float32), []
    for l in range(num_layers):
        outs, finals = [], []
        for d in range(n_dir):
            o, hf = run_dir(layer_in, *params["gru"][(l, d)], reverse=(d == 1))
            outs.append(o); finals.append(hf)
        layer_in = jnp.concatenate(outs, axis=-1) if n_dir == 2 else outs[0]
    hidden = jnp.concatenate([finals[1], finals[0]], axis=-1) if n_dir == 2 else finals[0]
    return hidden @ params["fc_w"].T + params["fc_b"]


# ----------------------------------------------------------------------------- main
if __name__ == "__main__":
    vocab_size, E, H, num_layers, n_class = 50, 32, 32, 2, 5
    B, L = 2, 8

    key = jax.random.PRNGKey(0)
    pkey, tkey, dkey = jax.random.split(key, 3)
    params = init_params(pkey, vocab_size, E, H, num_layers, n_class, bidirectional=True)
    token_ids = jax.random.randint(tkey, (B, L), 0, vocab_size, dtype=jnp.int32)

    # sanity check of the GRU/FC math (dropout disabled for determinism)
    out_nodrop = classifier_forward(params, token_ids, num_layers=num_layers,
                                    hidden_size=H, n_class=n_class, dropout_p=0.0)
    ref = classifier_reference(params, token_ids, num_layers=num_layers, hidden_size=H)
    assert out_nodrop.shape == (B, n_class)
    assert jnp.allclose(out_nodrop, ref, atol=2e-2, rtol=2e-2)

    # full module semantics (F.dropout default training=True -> dropout applied)
    out = classifier_forward(params, token_ids, num_layers=num_layers,
                             hidden_size=H, n_class=n_class, dropout_p=0.2,
                             dropout_rng=dkey)
    jax.block_until_ready(out)
    assert out.shape == (B, n_class)
    print("KERNEL_OK")
</pallas_src>

<mosaic_0001>
module attributes {stable_mosaic.version = 11 : i64} {
  func.func @kernel(%arg0: memref<64x32xf32, #tpu.memory_space<vmem>>, %arg1: memref<32x96xf32, #tpu.memory_space<vmem>>, %arg2: memref<32x96xf32, #tpu.memory_space<vmem>>, %arg3: memref<1x96xf32, #tpu.memory_space<vmem>>, %arg4: memref<1x96xf32, #tpu.memory_space<vmem>>, %arg5: memref<32x96xf32, #tpu.memory_space<vmem>>, %arg6: memref<32x96xf32, #tpu.memory_space<vmem>>, %arg7: memref<1x96xf32, #tpu.memory_space<vmem>>, %arg8: memref<1x96xf32, #tpu.memory_space<vmem>>, %arg9: memref<64x96xf32, #tpu.memory_space<vmem>>, %arg10: memref<32x96xf32, #tpu.memory_space<vmem>>, %arg11: memref<1x96xf32, #tpu.memory_space<vmem>>, %arg12: memref<1x96xf32, #tpu.memory_space<vmem>>, %arg13: memref<64x96xf32, #tpu.memory_space<vmem>>, %arg14: memref<32x96xf32, #tpu.memory_space<vmem>>, %arg15: memref<1x96xf32, #tpu.memory_space<vmem>>, %arg16: memref<1x96xf32, #tpu.memory_space<vmem>>, %arg17: memref<64x128xf32, #tpu.memory_space<vmem>>, %arg18: memref<1x128xf32, #tpu.memory_space<vmem>>, %arg19: memref<8x64xf32, #tpu.memory_space<vmem>>, %arg20: memref<8x128xf32, #tpu.memory_space<vmem>>, %arg21: memref<64x64xf32, #tpu.memory_space<vmem>>) attributes {dimension_semantics = [], scalar_prefetch = 0 : i64, scratch_operands = 1 : i64, tpu.core_type = #tpu.core_type<tc>} {
    %c0 = arith.constant 0 : index
    %c0_0 = arith.constant 0 : index
    %0 = vector.load %arg0[%c0, %c0_0] : memref<64x32xf32, #tpu.memory_space<vmem>>, vector<64x32xf32>
    %c0_1 = arith.constant 0 : index
    %c0_2 = arith.constant 0 : index
    %1 = vector.load %arg1[%c0_1, %c0_2] : memref<32x96xf32, #tpu.memory_space<vmem>>, vector<32x96xf32>
    %c0_3 = arith.constant 0 : index
    %c0_4 = arith.constant 0 : index
    %2 = vector.load %arg2[%c0_3, %c0_4] : memref<32x96xf32, #tpu.memory_space<vmem>>, vector<32x96xf32>
    %c0_5 = arith.constant 0 : index
    %c0_6 = arith.constant 0 : index
    %3 = vector.load %arg3[%c0_5, %c0_6] : memref<1x96xf32, #tpu.memory_space<vmem>>, vector<1x96xf32>
    %c0_7 = arith.constant 0 : index
    %c0_8 = arith.constant 0 : index
    %4 = vector.load %arg4[%c0_7, %c0_8] : memref<1x96xf32, #tpu.memory_space<vmem>>, vector<1x96xf32>
    %cst = arith.constant dense<0.000000e+00> : vector<64x96xf32>
    %5 = tpu.matmul %0, %1, %cst {dimension_numbers = #tpu.dot_dimension_numbers<[1], [0], [0], [1], [0, 0, 1, 1], [], []>} : vector<64x32xf32>, vector<32x96xf32>, vector<64x96xf32> -> vector<64x96xf32>
    %6 = vector.broadcast %3 : vector<1x96xf32> to vector<64x96xf32>
    %7 = arith.addf %5, %6 : vector<64x96xf32>
    %c0_9 = arith.constant 0 : index
    %c0_10 = arith.constant 0 : index
    %8 = vector.load %arg5[%c0_9, %c0_10] : memref<32x96xf32, #tpu.memory_space<vmem>>, vector<32x96xf32>
    %c0_11 = arith.constant 0 : index
    %c0_12 = arith.constant 0 : index
    %9 = vector.load %arg6[%c0_11, %c0_12] : memref<32x96xf32, #tpu.memory_space<vmem>>, vector<32x96xf32>
    %c0_13 = arith.constant 0 : index
    %c0_14 = arith.constant 0 : index
    %10 = vector.load %arg7[%c0_13, %c0_14] : memref<1x96xf32, #tpu.memory_space<vmem>>, vector<1x96xf32>
    %c0_15 = arith.constant 0 : index
    %c0_16 = arith.constant 0 : index
    %11 = vector.load %arg8[%c0_15, %c0_16] : memref<1x96xf32, #tpu.memory_space<vmem>>, vector<1x96xf32>
    %cst_17 = arith.constant dense<0.000000e+00> : vector<64x96xf32>
    %12 = tpu.matmul %0, %8, %cst_17 {dimension_numbers = #tpu.dot_dimension_numbers<[1], [0], [0], [1], [0, 0, 1, 1], [], []>} : vector<64x32xf32>, vector<32x96xf32>, vector<64x96xf32> -> vector<64x96xf32>
    %13 = vector.broadcast %10 : vector<1x96xf32> to vector<64x96xf32>
    %14 = arith.addf %12, %13 : vector<64x96xf32>
    %cst_18 = arith.constant 0.000000e+00 : f32
    %15 = vector.broadcast %cst_18 : f32 to vector<8x32xf32>
    %cst_19 = arith.constant 0.000000e+00 : f32
    %16 = vector.broadcast %cst_19 : f32 to vector<8x32xf32>
    %17 = vector.extract_strided_slice %7 {offsets = [0, 0], sizes = [8, 96], strides = [1, 1]} : vector<64x96xf32> to vector<8x96xf32>
    %cst_20 = arith.constant dense<0.000000e+00> : vector<8x96xf32>
    %18 = tpu.matmul %15, %2, %cst_20 {dimension_numbers = #tpu.dot_dimension_numbers<[1], [0], [0], [1], [0, 0, 1, 1], [], []>} : vector<8x32xf32>, vector<32x96xf32>, vector<8x96xf32> -> vector<8x96xf32>
    %19 = vector.broadcast %4 : vector<1x96xf32> to vector<8x96xf32>
    %20 = arith.addf %18, %19 : vector<8x96xf32>
    %21 = vector.extract_strided_slice %17 {offsets = [0, 0], sizes = [8, 32], strides = [1, 1]} : vector<8x96xf32> to vector<8x32xf32>
    %22 = vector.extract_strided_slice %20 {offsets = [0, 0], sizes = [8, 32], strides = [1, 1]} : vector<8x96xf32> to vector<8x32xf32>
    %23 = arith.addf %21, %22 : vector<8x32xf32>
    %24 = arith.negf %23 : vector<8x32xf32>
    %25 = math.exp %24 : vector<8x32xf32>
    %cst_21 = arith.constant 1.000000e+00 : f32
    %26 = vector.broadcast %cst_21 : f32 to vector<8x32xf32>
    %27 = arith.addf %26, %25 : vector<8x32xf32>
    %28 = arith.divf %26, %27 : vector<8x32xf32>
    %29 = vector.extract_strided_slice %17 {offsets = [0, 32], sizes = [8, 32], strides = [1, 1]} : vector<8x96xf32> to vector<8x32xf32>
    %30 = vector.extract_strided_slice %20 {offsets = [0, 32], sizes = [8, 32], strides = [1, 1]} : vector<8x96xf32> to vector<8x32xf32>
    %31 = arith.addf %29, %30 : vector<8x32xf32>
    %32 = arith.negf %31 : vector<8x32xf32>
    %33 = math.exp %32 : vector<8x32xf32>
    %cst_22 = arith.constant 1.000000e+00 : f32
    %34 = vector.broadcast %cst_22 : f32 to vector<8x32xf32>
    %35 = arith.addf %34, %33 : vector<8x32xf32>
    %36 = arith.divf %34, %35 : vector<8x32xf32>
    %37 = vector.extract_strided_slice %17 {offsets = [0, 64], sizes = [8, 32], strides = [1, 1]} : vector<8x96xf32> to vector<8x32xf32>
    %38 = vector.extract_strided_slice %20 {offsets = [0, 64], sizes = [8, 32], strides = [1, 1]} : vector<8x96xf32> to vector<8x32xf32>
    %39 = arith.mulf %28, %38 : vector<8x32xf32>
    %40 = arith.addf %37, %39 : vector<8x32xf32>
    %41 = math.tanh %40 : vector<8x32xf32>
    %cst_23 = arith.constant 1.000000e+00 : f32
    %42 = vector.broadcast %cst_23 : f32 to vector<8x32xf32>
    %43 = arith.subf %42, %36 : vector<8x32xf32>
    %44 = arith.mulf %43, %41 : vector<8x32xf32>
    %45 = arith.mulf %36, %15 : vector<8x32xf32>
    %46 = arith.addf %44, %45 : vector<8x32xf32>
    %c0_24 = arith.constant 0 : index
    %c0_25 = arith.constant 0 : index
    %47 = vector.load %arg21[%c0_24, %c0_25] : memref<64x64xf32, #tpu.memory_space<vmem>>, vector<8x32xf32>
    tpu.vector_store %arg21[%c0_24, %c0_25], %46 {strides = array<i32>} : memref<64x64xf32, #tpu.memory_space<vmem>>, vector<8x32xf32>,
    %48 = vector.extract_strided_slice %14 {offsets = [56, 0], sizes = [8, 96], strides = [1, 1]} : vector<64x96xf32> to vector<8x96xf32>
    %cst_26 = arith.constant dense<0.000000e+00> : vector<8x96xf32>
    %49 = tpu.matmul %16, %9, %cst_26 {dimension_numbers = #tpu.dot_dimension_numbers<[1], [0], [0], [1], [0, 0, 1, 1], [], []>} : vector<8x32xf32>, vector<32x96xf32>, vector<8x96xf32> -> vector<8x96xf32>
    %50 = vector.broadcast %11 : vector<1x96xf32> to vector<8x96xf32>
    %51 = arith.addf %49, %50 : vector<8x96xf32>
    %52 = vector.extract_strided_slice %48 {offsets = [0, 0], sizes = [8, 32], strides = [1, 1]} : vector<8x96xf32> to vector<8x32xf32>
    %53 = vector.extract_strided_slice %51 {offsets = [0, 0], sizes = [8, 32], strides = [1, 1]} : vector<8x96xf32> to vector<8x32xf32>
    %54 = arith.addf %52, %53 : vector<8x32xf32>
    %55 = arith.negf %54 : vector<8x32xf32>
    %56 = math.exp %55 : vector<8x32xf32>
    %cst_27 = arith.constant 1.000000e+00 : f32
    %57 = vector.broadcast %cst_27 : f32 to vector<8x32xf32>
    %58 = arith.addf %57, %56 : vector<8x32xf32>
    %59 = arith.divf %57, %58 : vector<8x32xf32>
    %60 = vector.extract_strided_slice %48 {offsets = [0, 32], sizes = [8, 32], strides = [1, 1]} : vector<8x96xf32> to vector<8x32xf32>
    %61 = vector.extract_strided_slice %51 {offsets = [0, 32], sizes = [8, 32], strides = [1, 1]} : vector<8x96xf32> to vector<8x32xf32>
    %62 = arith.addf %60, %61 : vector<8x32xf32>
    %63 = arith.negf %62 : vector<8x32xf32>
    %64 = math.exp %63 : vector<8x32xf32>
    %cst_28 = arith.constant 1.000000e+00 : f32
    %65 = vector.broadcast %cst_28 : f32 to vector<8x32xf32>
    %66 = arith.addf %65, %64 : vector<8x32xf32>
    %67 = arith.divf %65, %66 : vector<8x32xf32>
    %68 = vector.extract_strided_slice %48 {offsets = [0, 64], sizes = [8, 32], strides = [1, 1]} : vector<8x96xf32> to vector<8x32xf32>
    %69 = vector.extract_strided_slice %51 {offsets = [0, 64], sizes = [8, 32], strides = [1, 1]} : vector<8x96xf32> to vector<8x32xf32>
    %70 = arith.mulf %59, %69 : vector<8x32xf32>
    %71 = arith.addf %68, %70 : vector<8x32xf32>
    %72 = math.tanh %71 : vector<8x32xf32>
    %cst_29 = arith.constant 1.000000e+00 : f32
    %73 = vector.broadcast %cst_29 : f32 to vector<8x32xf32>
    %74 = arith.subf %73, %67 : vector<8x32xf32>
    %75 = arith.mulf %74, %72 : vector<8x32xf32>
    %76 = arith.mulf %67, %16 : vector<8x32xf32>
    %77 = arith.addf %75, %76 : vector<8x32xf32>
    %c56 = arith.constant 56 : index
    %c32 = arith.constant 32 : index
    %78 = vector.load %arg21[%c56, %c32] : memref<64x64xf32, #tpu.memory_space<vmem>>, vector<8x32xf32>
    tpu.vector_store %arg21[%c56, %c32], %77 {strides = array<i32>} : memref<64x64xf32, #tpu.memory_space<vmem>>, vector<8x32xf32>,
    %79 = vector.extract_strided_slice %7 {offsets = [8, 0], sizes = [8, 96], strides = [1, 1]} : vector<64x96xf32> to vector<8x96xf32>
    %cst_30 = arith.constant dense<0.000000e+00> : vector<8x96xf32>
    %80 = tpu.matmul %46, %2, %cst_30 {dimension_numbers = #tpu.dot_dimension_numbers<[1], [0], [0], [1], [0, 0, 1, 1], [], []>} : vector<8x32xf32>, vector<32x96xf32>, vector<8x96xf32> -> vector<8x96xf32>
    %81 = vector.broadcast %4 : vector<1x96xf32> to vector<8x96xf32>
    %82 = arith.addf %80, %81 : vector<8x96xf32>
    %83 = vector.extract_strided_slice %79 {offsets = [0, 0], sizes = [8, 32], strides = [1, 1]} : vector<8x96xf32> to vector<8x32xf32>
    %84 = vector.extract_strided_slice %82 {offsets = [0, 0], sizes = [8, 32], strides = [1, 1]} : vector<8x96xf32> to vector<8x32xf32>
    %85 = arith.addf %83, %84 : vector<8x32xf32>
    %86 = arith.negf %85 : vector<8x32xf32>
    %87 = math.exp %86 : vector<8x32xf32>
    %cst_31 = arith.constant 1.000000e+00 : f32
    %88 = vector.broadcast %cst_31 : f32 to vector<8x32xf32>
    %89 = arith.addf %88, %87 : vector<8x32xf32>
    %90 = arith.divf %88, %89 : vector<8x32xf32>
    %91 = vector.extract_strided_slice %79 {offsets = [0, 32], sizes = [8, 32], strides = [1, 1]} : vector<8x96xf32> to vector<8x32xf32>
    %92 = vector.extract_strided_slice %82 {offsets = [0, 32], sizes = [8, 32], strides = [1, 1]} : vector<8x96xf32> to vector<8x32xf32>
    %93 = arith.addf %91, %92 : vector<8x32xf32>
    %94 = arith.negf %93 : vector<8x32xf32>
    %95 = math.exp %94 : vector<8x32xf32>
    %cst_32 = arith.constant 1.000000e+00 : f32
    %96 = vector.broadcast %cst_32 : f32 to vector<8x32xf32>
    %97 = arith.addf %96, %95 : vector<8x32xf32>
    %98 = arith.divf %96, %97 : vector<8x32xf32>
    %99 = vector.extract_strided_slice %79 {offsets = [0, 64], sizes = [8, 32], strides = [1, 1]} : vector<8x96xf32> to vector<8x32xf32>
    %100 = vector.extract_strided_slice %82 {offsets = [0, 64], sizes = [8, 32], strides = [1, 1]} : vector<8x96xf32> to vector<8x32xf32>
    %101 = arith.mulf %90, %100 : vector<8x32xf32>
    %102 = arith.addf %99, %101 : vector<8x32xf32>
    %103 = math.tanh %102 : vector<8x32xf32>
    %cst_33 = arith.constant 1.000000e+00 : f32
    %104 = vector.broadcast %cst_33 : f32 to vector<8x32xf32>
    %105 = arith.subf %104, %98 : vector<8x32xf32>
    %106 = arith.mulf %105, %103 : vector<8x32xf32>
    %107 = arith.mulf %98, %46 : vector<8x32xf32>
    %108 = arith.addf %106, %107 : vector<8x32xf32>
    %c8 = arith.constant 8 : index
    %c0_34 = arith.constant 0 : index
    %109 = vector.load %arg21[%c8, %c0_34] : memref<64x64xf32, #tpu.memory_space<vmem>>, vector<8x32xf32>
    tpu.vector_store %arg21[%c8, %c0_34], %108 {strides = array<i32>} : memref<64x64xf32, #tpu.memory_space<vmem>>, vector<8x32xf32>,
    %110 = vector.extract_strided_slice %14 {offsets = [48, 0], sizes = [8, 96], strides = [1, 1]} : vector<64x96xf32> to vector<8x96xf32>
    %cst_35 = arith.constant dense<0.000000e+00> : vector<8x96xf32>
    %111 = tpu.matmul %77, %9, %cst_35 {dimension_numbers = #tpu.dot_dimension_numbers<[1], [0], [0], [1], [0, 0, 1, 1], [], []>} : vector<8x32xf32>, vector<32x96xf32>, vector<8x96xf32> -> vector<8x96xf32>
    %112 = vector.broadcast %11 : vector<1x96xf32> to vector<8x96xf32>
    %113 = arith.addf %111, %112 : vector<8x96xf32>
    %114 = vector.extract_strided_slice %110 {offsets = [0, 0], sizes = [8, 32], strides = [1, 1]} : vector<8x96xf32> to vector<8x32xf32>
    %115 = vector.extract_strided_slice %113 {offsets = [0, 0], sizes = [8, 32], strides = [1, 1]} : vector<8x96xf32> to vector<8x32xf32>
    %116 = arith.addf %114, %115 : vector<8x32xf32>
    %117 = arith.negf %116 : vector<8x32xf32>
    %118 = math.exp %117 : vector<8x32xf32>
    %cst_36 = arith.constant 1.000000e+00 : f32
    %119 = vector.broadcast %cst_36 : f32 to vector<8x32xf32>
    %120 = arith.addf %119, %118 : vector<8x32xf32>
    %121 = arith.divf %119, %120 : vector<8x32xf32>
    %122 = vector.extract_strided_slice %110 {offsets = [0, 32], sizes = [8, 32], strides = [1, 1]} : vector<8x96xf32> to vector<8x32xf32>
    %123 = vector.extract_strided_slice %113 {offsets = [0, 32], sizes = [8, 32], strides = [1, 1]} : vector<8x96xf32> to vector<8x32xf32>
    %124 = arith.addf %122, %123 : vector<8x32xf32>
    %125 = arith.negf %124 : vector<8x32xf32>
    %126 = math.exp %125 : vector<8x32xf32>
    %cst_37 = arith.constant 1.000000e+00 : f32
    %127 = vector.broadcast %cst_37 : f32 to vector<8x32xf32>
    %128 = arith.addf %127, %126 : vector<8x32xf32>
    %129 = arith.divf %127, %128 : vector<8x32xf32>
    %130 = vector.extract_strided_slice %110 {offsets = [0, 64], sizes = [8, 32], strides = [1, 1]} : vector<8x96xf32> to vector<8x32xf32>
    %131 = vector.extract_strided_slice %113 {offsets = [0, 64], sizes = [8, 32], strides = [1, 1]} : vector<8x96xf32> to vector<8x32xf32>
    %132 = arith.mulf %121, %131 : vector<8x32xf32>
    %133 = arith.addf %130, %132 : vector<8x32xf32>
    %134 = math.tanh %133 : vector<8x32xf32>
    %cst_38 = arith.constant 1.000000e+00 : f32
    %135 = vector.broadcast %cst_38 : f32 to vector<8x32xf32>
    %136 = arith.subf %135, %129 : vector<8x32xf32>
    %137 = arith.mulf %136, %134 : vector<8x32xf32>
    %138 = arith.mulf %129, %77 : vector<8x32xf32>
    %139 = arith.addf %137, %138 : vector<8x32xf32>
    %c48 = arith.constant 48 : index
    %c32_39 = arith.constant 32 : index
    %140 = vector.load %arg21[%c48, %c32_39] : memref<64x64xf32, #tpu.memory_space<vmem>>, vector<8x32xf32>
    tpu.vector_store %arg21[%c48, %c32_39], %139 {strides = array<i32>} : memref<64x64xf32, #tpu.memory_space<vmem>>, vector<8x32xf32>,
    %141 = vector.extract_strided_slice %7 {offsets = [16, 0], sizes = [8, 96], strides = [1, 1]} : vector<64x96xf32> to vector<8x96xf32>
    %cst_40 = arith.constant dense<0.000000e+00> : vector<8x96xf32>
    %142 = tpu.matmul %108, %2, %cst_40 {dimension_numbers = #tpu.dot_dimension_numbers<[1], [0], [0], [1], [0, 0, 1, 1], [], []>} : vector<8x32xf32>, vector<32x96xf32>, vector<8x96xf32> -> vector<8x96xf32>
    %143 = vector.broadcast %4 : vector<1x96xf32> to vector<8x96xf32>
    %144 = arith.addf %142, %143 : vector<8x96xf32>
    %145 = vector.extract_strided_slice %141 {offsets = [0, 0], sizes = [8, 32], strides = [1, 1]} : vector<8x96xf32> to vector<8x32xf32>
    %146 = vector.extract_strided_slice %144 {offsets = [0, 0], sizes = [8, 32], strides = [1, 1]} : vector<8x96xf32> to vector<8x32xf32>
    %147 = arith.addf %145, %146 : vector<8x32xf32>
    %148 = arith.negf %147 : vector<8x32xf32>
    %149 = math.exp %148 : vector<8x32xf32>
    %cst_41 = arith.constant 1.000000e+00 : f32
    %150 = vector.broadcast %cst_41 : f32 to vector<8x32xf32>
    %151 = arith.addf %150, %149 : vector<8x32xf32>
    %152 = arith.divf %150, %151 : vector<8x32xf32>
    %153 = vector.extract_strided_slice %141 {offsets = [0, 32], sizes = [8, 32], strides = [1, 1]} : vector<8x96xf32> to vector<8x32xf32>
    %154 = vector.extract_strided_slice %144 {offsets = [0, 32], sizes = [8, 32], strides = [1, 1]} : vector<8x96xf32> to vector<8x32xf32>
    %155 = arith.addf %153, %154 : vector<8x32xf32>
    %156 = arith.negf %155 : vector<8x32xf32>
    %157 = math.exp %156 : vector<8x32xf32>
    %cst_42 = arith.constant 1.000000e+00 : f32
    %158 = vector.broadcast %cst_42 : f32 to vector<8x32xf32>
    %159 = arith.addf %158, %157 : vector<8x32xf32>
    %160 = arith.divf %158, %159 : vector<8x32xf32>
    %161 = vector.extract_strided_slice %141 {offsets = [0, 64], sizes = [8, 32], strides = [1, 1]} : vector<8x96xf32> to vector<8x32xf32>
    %162 = vector.extract_strided_slice %144 {offsets = [0, 64], sizes = [8, 32], strides = [1, 1]} : vector<8x96xf32> to vector<8x32xf32>
    %163 = arith.mulf %152, %162 : vector<8x32xf32>
    %164 = arith.addf %161, %163 : vector<8x32xf32>
    %165 = math.tanh %164 : vector<8x32xf32>
    %cst_43 = arith.constant 1.000000e+00 : f32
    %166 = vector.broadcast %cst_43 : f32 to vector<8x32xf32>
    %167 = arith.subf %166, %160 : vector<8x32xf32>
    %168 = arith.mulf %167, %165 : vector<8x32xf32>
    %169 = arith.mulf %160, %108 : vector<8x32xf32>
    %170 = arith.addf %168, %169 : vector<8x32xf32>
    %c16 = arith.constant 16 : index
    %c0_44 = arith.constant 0 : index
    %171 = vector.load %arg21[%c16, %c0_44] : memref<64x64xf32, #tpu.memory_space<vmem>>, vector<8x32xf32>
    tpu.vector_store %arg21[%c16, %c0_44], %170 {strides = array<i32>} : memref<64x64xf32, #tpu.memory_space<vmem>>, vector<8x32xf32>,
    %172 = vector.extract_strided_slice %14 {offsets = [40, 0], sizes = [8, 96], strides = [1, 1]} : vector<64x96xf32> to vector<8x96xf32>
    %cst_45 = arith.constant dense<0.000000e+00> : vector<8x96xf32>
    %173 = tpu.matmul %139, %9, %cst_45 {dimension_numbers = #tpu.dot_dimension_numbers<[1], [0], [0], [1], [0, 0, 1, 1], [], []>} : vector<8x32xf32>, vector<32x96xf32>, vector<8x96xf32> -> vector<8x96xf32>
    %174 = vector.broadcast %11 : vector<1x96xf32> to vector<8x96xf32>
    %175 = arith.addf %173, %174 : vector<8x96xf32>
    %176 = vector.extract_strided_slice %172 {offsets = [0, 0], sizes = [8, 32], strides = [1, 1]} : vector<8x96xf32> to vector<8x32xf32>
    %177 = vector.extract_strided_slice %175 {offsets = [0, 0], sizes = [8, 32], strides = [1, 1]} : vector<8x96xf32> to vector<8x32xf32>
    %178 = arith.addf %176, %177 : vector<8x32xf32>
    %179 = arith.negf %178 : vector<8x32xf32>
    %180 = math.exp %179 : vector<8x32xf32>
    %cst_46 = arith.constant 1.000000e+00 : f32
    %181 = vector.broadcast %cst_46 : f32 to vector<8x32xf32>
    %182 = arith.addf %181, %180 : vector<8x32xf32>
    %183 = arith.divf %181, %182 : vector<8x32xf32>
    %184 = vector.extract_strided_slice %172 {offsets = [0, 32], sizes = [8, 32], strides = [1, 1]} : vector<8x96xf32> to vector<8x32xf32>
    %185 = vector.extract_strided_slice %175 {offsets = [0, 32], sizes = [8, 32], strides = [1, 1]} : vector<8x96xf32> to vector<8x32xf32>
    %186 = arith.addf %184, %185 : vector<8x32xf32>
    %187 = arith.negf %186 : vector<8x32xf32>
    %188 = math.exp %187 : vector<8x32xf32>
    %cst_47 = arith.constant 1.000000e+00 : f32
    %189 = vector.broadcast %cst_47 : f32 to vector<8x32xf32>
    %190 = arith.addf %189, %188 : vector<8x32xf32>
    %191 = arith.divf %189, %190 : vector<8x32xf32>
    %192 = vector.extract_strided_slice %172 {offsets = [0, 64], sizes = [8, 32], strides = [1, 1]} : vector<8x96xf32> to vector<8x32xf32>
    %193 = vector.extract_strided_slice %175 {offsets = [0, 64], sizes = [8, 32], strides = [1, 1]} : vector<8x96xf32> to vector<8x32xf32>
    %194 = arith.mulf %183, %193 : vector<8x32xf32>
    %195 = arith.addf %192, %194 : vector<8x32xf32>
    %196 = math.tanh %195 : vector<8x32xf32>
    %cst_48 = arith.constant 1.000000e+00 : f32
    %197 = vector.broadcast %cst_48 : f32 to vector<8x32xf32>
    %198 = arith.subf %197, %191 : vector<8x32xf32>
    %199 = arith.mulf %198, %196 : vector<8x32xf32>
    %200 = arith.mulf %191, %139 : vector<8x32xf32>
    %201 = arith.addf %199, %200 : vector<8x32xf32>
    %c40 = arith.constant 40 : index
    %c32_49 = arith.constant 32 : index
    %202 = vector.load %arg21[%c40, %c32_49] : memref<64x64xf32, #tpu.memory_space<vmem>>, vector<8x32xf32>
    tpu.vector_store %arg21[%c40, %c32_49], %201 {strides = array<i32>} : memref<64x64xf32, #tpu.memory_space<vmem>>, vector<8x32xf32>,
    %203 = vector.extract_strided_slice %7 {offsets = [24, 0], sizes = [8, 96], strides = [1, 1]} : vector<64x96xf32> to vector<8x96xf32>
    %cst_50 = arith.constant dense<0.000000e+00> : vector<8x96xf32>
    %204 = tpu.matmul %170, %2, %cst_50 {dimension_numbers = #tpu.dot_dimension_numbers<[1], [0], [0], [1], [0, 0, 1, 1], [], []>} : vector<8x32xf32>, vector<32x96xf32>, vector<8x96xf32> -> vector<8x96xf32>
    %205 = vector.broadcast %4 : vector<1x96xf32> to vector<8x96xf32>
    %206 = arith.addf %204, %205 : vector<8x96xf32>
    %207 = vector.extract_strided_slice %203 {offsets = [0, 0], sizes = [8, 32], strides = [1, 1]} : vector<8x96xf32> to vector<8x32xf32>
    %208 = vector.extract_strided_slice %206 {offsets = [0, 0], sizes = [8, 32], strides = [1, 1]} : vector<8x96xf32> to vector<8x32xf32>
    %209 = arith.addf %207, %208 : vector<8x32xf32>
    %210 = arith.negf %209 : vector<8x32xf32>
    %211 = math.exp %210 : vector<8x32xf32>
    %cst_51 = arith.constant 1.000000e+00 : f32
    %212 = vector.broadcast %cst_51 : f32 to vector<8x32xf32>
    %213 = arith.addf %212, %211 : vector<8x32xf32>
    %214 = arith.divf %212, %213 : vector<8x32xf32>
    %215 = vector.extract_strided_slice %203 {offsets = [0, 32], sizes = [8, 32], strides = [1, 1]} : vector<8x96xf32> to vector<8x32xf32>
    %216 = vector.extract_strided_slice %206 {offsets = [0, 32], sizes = [8, 32], strides = [1, 1]} : vector<8x96xf32> to vector<8x32xf32>
    %217 = arith.addf %215, %216 : vector<8x32xf32>
    %218 = arith.negf %217 : vector<8x32xf32>
    %219 = math.exp %218 : vector<8x32xf32>
    %cst_52 = arith.constant 1.000000e+00 : f32
    %220 = vector.broadcast %cst_52 : f32 to vector<8x32xf32>
    %221 = arith.addf %220, %219 : vector<8x32xf32>
    %222 = arith.divf %220, %221 : vector<8x32xf32>
    %223 = vector.extract_strided_slice %203 {offsets = [0, 64], sizes = [8, 32], strides = [1, 1]} : vector<8x96xf32> to vector<8x32xf32>
    %224 = vector.extract_strided_slice %206 {offsets = [0, 64], sizes = [8, 32], strides = [1, 1]} : vector<8x96xf32> to vector<8x32xf32>
    %225 = arith.mulf %214, %224 : vector<8x32xf32>
    %226 = arith.addf %223, %225 : vector<8x32xf32>
    %227 = math.tanh %226 : vector<8x32xf32>
    %cst_53 = arith.constant 1.000000e+00 : f32
    %228 = vector.broadcast %cst_53 : f32 to vector<8x32xf32>
    %229 = arith.subf %228, %222 : vector<8x32xf32>
    %230 = arith.mulf %229, %227 : vector<8x32xf32>
    %231 = arith.mulf %222, %170 : vector<8x32xf32>
    %232 = arith.addf %230, %231 : vector<8x32xf32>
    %c24 = arith.constant 24 : index
    %c0_54 = arith.constant 0 : index
    %233 = vector.load %arg21[%c24, %c0_54] : memref<64x64xf32, #tpu.memory_space<vmem>>, vector<8x32xf32>
    tpu.vector_store %arg21[%c24, %c0_54], %232 {strides = array<i32>} : memref<64x64xf32, #tpu.memory_space<vmem>>, vector<8x32xf32>,
    %234 = vector.extract_strided_slice %14 {offsets = [32, 0], sizes = [8, 96], strides = [1, 1]} : vector<64x96xf32> to vector<8x96xf32>
    %cst_55 = arith.constant dense<0.000000e+00> : vector<8x96xf32>
    %235 = tpu.matmul %201, %9, %cst_55 {dimension_numbers = #tpu.dot_dimension_numbers<[1], [0], [0], [1], [0, 0, 1, 1], [], []>} : vector<8x32xf32>, vector<32x96xf32>, vector<8x96xf32> -> vector<8x96xf32>
    %236 = vector.broadcast %11 : vector<1x96xf32> to vector<8x96xf32>
    %237 = arith.addf %235, %236 : vector<8x96xf32>
    %238 = vector.extract_strided_slice %234 {offsets = [0, 0], sizes = [8, 32], strides = [1, 1]} : vector<8x96xf32> to vector<8x32xf32>
    %239 = vector.extract_strided_slice %237 {offsets = [0, 0], sizes = [8, 32], strides = [1, 1]} : vector<8x96xf32> to vector<8x32xf32>
    %240 = arith.addf %238, %239 : vector<8x32xf32>
    %241 = arith.negf %240 : vector<8x32xf32>
    %242 = math.exp %241 : vector<8x32xf32>
    %cst_56 = arith.constant 1.000000e+00 : f32
    %243 = vector.broadcast %cst_56 : f32 to vector<8x32xf32>
    %244 = arith.addf %243, %242 : vector<8x32xf32>
    %245 = arith.divf %243, %244 : vector<8x32xf32>
    %246 = vector.extract_strided_slice %234 {offsets = [0, 32], sizes = [8, 32], strides = [1, 1]} : vector<8x96xf32> to vector<8x32xf32>
    %247 = vector.extract_strided_slice %237 {offsets = [0, 32], sizes = [8, 32], strides = [1, 1]} : vector<8x96xf32> to vector<8x32xf32>
    %248 = arith.addf %246, %247 : vector<8x32xf32>
    %249 = arith.negf %248 : vector<8x32xf32>
    %250 = math.exp %249 : vector<8x32xf32>
    %cst_57 = arith.constant 1.000000e+00 : f32
    %251 = vector.broadcast %cst_57 : f32 to vector<8x32xf32>
    %252 = arith.addf %251, %250 : vector<8x32xf32>
    %253 = arith.divf %251, %252 : vector<8x32xf32>
    %254 = vector.extract_strided_slice %234 {offsets = [0, 64], sizes = [8, 32], strides = [1, 1]} : vector<8x96xf32> to vector<8x32xf32>
    %255 = vector.extract_strided_slice %237 {offsets = [0, 64], sizes = [8, 32], strides = [1, 1]} : vector<8x96xf32> to vector<8x32xf32>
    %256 = arith.mulf %245, %255 : vector<8x32xf32>
    %257 = arith.addf %254, %256 : vector<8x32xf32>
    %258 = math.tanh %257 : vector<8x32xf32>
    %cst_58 = arith.constant 1.000000e+00 : f32
    %259 = vector.broadcast %cst_58 : f32 to vector<8x32xf32>
    %260 = arith.subf %259, %253 : vector<8x32xf32>
    %261 = arith.mulf %260, %258 : vector<8x32xf32>
    %262 = arith.mulf %253, %201 : vector<8x32xf32>
    %263 = arith.addf %261, %262 : vector<8x32xf32>
    %c32_59 = arith.constant 32 : index
    %c32_60 = arith.constant 32 : index
    %264 = vector.load %arg21[%c32_59, %c32_60] : memref<64x64xf32, #tpu.memory_space<vmem>>, vector<8x32xf32>
    tpu.vector_store %arg21[%c32_59, %c32_60], %263 {strides = array<i32>} : memref<64x64xf32, #tpu.memory_space<vmem>>, vector<8x32xf32>,
    %265 = vector.extract_strided_slice %7 {offsets = [32, 0], sizes = [8, 96], strides = [1, 1]} : vector<64x96xf32> to vector<8x96xf32>
    %cst_61 = arith.constant dense<0.000000e+00> : vector<8x96xf32>
    %266 = tpu.matmul %232, %2, %cst_61 {dimension_numbers = #tpu.dot_dimension_numbers<[1], [0], [0], [1], [0, 0, 1, 1], [], []>} : vector<8x32xf32>, vector<32x96xf32>, vector<8x96xf32> -> vector<8x96xf32>
    %267 = vector.broadcast %4 : vector<1x96xf32> to vector<8x96xf32>
    %268 = arith.addf %266, %267 : vector<8x96xf32>
    %269 = vector.extract_strided_slice %265 {offsets = [0, 0], sizes = [8, 32], strides = [1, 1]} : vector<8x96xf32> to vector<8x32xf32>
    %270 = vector.extract_strided_slice %268 {offsets = [0, 0], sizes = [8, 32], strides = [1, 1]} : vector<8x96xf32> to vector<8x32xf32>
    %271 = arith.addf %269, %270 : vector<8x32xf32>
    %272 = arith.negf %271 : vector<8x32xf32>
    %273 = math.exp %272 : vector<8x32xf32>
    %cst_62 = arith.constant 1.000000e+00 : f32
    %274 = vector.broadcast %cst_62 : f32 to vector<8x32xf32>
    %275 = arith.addf %274, %273 : vector<8x32xf32>
    %276 = arith.divf %274, %275 : vector<8x32xf32>
    %277 = vector.extract_strided_slice %265 {offsets = [0, 32], sizes = [8, 32], strides = [1, 1]} : vector<8x96xf32> to vector<8x32xf32>
    %278 = vector.extract_strided_slice %268 {offsets = [0, 32], sizes = [8, 32], strides = [1, 1]} : vector<8x96xf32> to vector<8x32xf32>
    %279 = arith.addf %277, %278 : vector<8x32xf32>
    %280 = arith.negf %279 : vector<8x32xf32>
    %281 = math.exp %280 : vector<8x32xf32>
    %cst_63 = arith.constant 1.000000e+00 : f32
    %282 = vector.broadcast %cst_63 : f32 to vector<8x32xf32>
    %283 = arith.addf %282, %281 : vector<8x32xf32>
    %284 = arith.divf %282, %283 : vector<8x32xf32>
    %285 = vector.extract_strided_slice %265 {offsets = [0, 64], sizes = [8, 32], strides = [1, 1]} : vector<8x96xf32> to vector<8x32xf32>
    %286 = vector.extract_strided_slice %268 {offsets = [0, 64], sizes = [8, 32], strides = [1, 1]} : vector<8x96xf32> to vector<8x32xf32>
    %287 = arith.mulf %276, %286 : vector<8x32xf32>
    %288 = arith.addf %285, %287 : vector<8x32xf32>
    %289 = math.tanh %288 : vector<8x32xf32>
    %cst_64 = arith.constant 1.000000e+00 : f32
    %290 = vector.broadcast %cst_64 : f32 to vector<8x32xf32>
    %291 = arith.subf %290, %284 : vector<8x32xf32>
    %292 = arith.mulf %291, %289 : vector<8x32xf32>
    %293 = arith.mulf %284, %232 : vector<8x32xf32>
    %294 = arith.addf %292, %293 : vector<8x32xf32>
    %c32_65 = arith.constant 32 : index
    %c0_66 = arith.constant 0 : index
    %295 = vector.load %arg21[%c32_65, %c0_66] : memref<64x64xf32, #tpu.memory_space<vmem>>, vector<8x32xf32>
    tpu.vector_store %arg21[%c32_65, %c0_66], %294 {strides = array<i32>} : memref<64x64xf32, #tpu.memory_space<vmem>>, vector<8x32xf32>,
    %296 = vector.extract_strided_slice %14 {offsets = [24, 0], sizes = [8, 96], strides = [1, 1]} : vector<64x96xf32> to vector<8x96xf32>
    %cst_67 = arith.constant dense<0.000000e+00> : vector<8x96xf32>
    %297 = tpu.matmul %263, %9, %cst_67 {dimension_numbers = #tpu.dot_dimension_numbers<[1], [0], [0], [1], [0, 0, 1, 1], [], []>} : vector<8x32xf32>, vector<32x96xf32>, vector<8x96xf32> -> vector<8x96xf32>
    %298 = vector.broadcast %11 : vector<1x96xf32> to vector<8x96xf32>
    %299 = arith.addf %297, %298 : vector<8x96xf32>
    %300 = vector.extract_strided_slice %296 {offsets = [0, 0], sizes = [8, 32], strides = [1, 1]} : vector<8x96xf32> to vector<8x32xf32>
    %301 = vector.extract_strided_slice %299 {offsets = [0, 0], sizes = [8, 32], strides = [1, 1]} : vector<8x96xf32> to vector<8x32xf32>
    %302 = arith.addf %300, %301 : vector<8x32xf32>
    %303 = arith.negf %302 : vector<8x32xf32>
    %304 = math.exp %303 : vector<8x32xf32>
    %cst_68 = arith.constant 1.000000e+00 : f32
    %305 = vector.broadcast %cst_68 : f32 to vector<8x32xf32>
    %306 = arith.addf %305, %304 : vector<8x32xf32>
    %307 = arith.divf %305, %306 : vector<8x32xf32>
    %308 = vector.extract_strided_slice %296 {offsets = [0, 32], sizes = [8, 32], strides = [1, 1]} : vector<8x96xf32> to vector<8x32xf32>
    %309 = vector.extract_strided_slice %299 {offsets = [0, 32], sizes = [8, 32], strides = [1, 1]} : vector<8x96xf32> to vector<8x32xf32>
    %310 = arith.addf %308, %309 : vector<8x32xf32>
    %311 = arith.negf %310 : vector<8x32xf32>
    %312 = math.exp %311 : vector<8x32xf32>
    %cst_69 = arith.constant 1.000000e+00 : f32
    %313 = vector.broadcast %cst_69 : f32 to vector<8x32xf32>
    %314 = arith.addf %313, %312 : vector<8x32xf32>
    %315 = arith.divf %313, %314 : vector<8x32xf32>
    %316 = vector.extract_strided_slice %296 {offsets = [0, 64], sizes = [8, 32], strides = [1, 1]} : vector<8x96xf32> to vector<8x32xf32>
    %317 = vector.extract_strided_slice %299 {offsets = [0, 64], sizes = [8, 32], strides = [1, 1]} : vector<8x96xf32> to vector<8x32xf32>
    %318 = arith.mulf %307, %317 : vector<8x32xf32>
    %319 = arith.addf %316, %318 : vector<8x32xf32>
    %320 = math.tanh %319 : vector<8x32xf32>
    %cst_70 = arith.constant 1.000000e+00 : f32
    %321 = vector.broadcast %cst_70 : f32 to vector<8x32xf32>
    %322 = arith.subf %321, %315 : vector<8x32xf32>
    %323 = arith.mulf %322, %320 : vector<8x32xf32>
    %324 = arith.mulf %315, %263 : vector<8x32xf32>
    %325 = arith.addf %323, %324 : vector<8x32xf32>
    %c24_71 = arith.constant 24 : index
    %c32_72 = arith.constant 32 : index
    %326 = vector.load %arg21[%c24_71, %c32_72] : memref<64x64xf32, #tpu.memory_space<vmem>>, vector<8x32xf32>
    tpu.vector_store %arg21[%c24_71, %c32_72], %325 {strides = array<i32>} : memref<64x64xf32, #tpu.memory_space<vmem>>, vector<8x32xf32>,
    %327 = vector.extract_strided_slice %7 {offsets = [40, 0], sizes = [8, 96], strides = [1, 1]} : vector<64x96xf32> to vector<8x96xf32>
    %cst_73 = arith.constant dense<0.000000e+00> : vector<8x96xf32>
    %328 = tpu.matmul %294, %2, %cst_73 {dimension_numbers = #tpu.dot_dimension_numbers<[1], [0], [0], [1], [0, 0, 1, 1], [], []>} : vector<8x32xf32>, vector<32x96xf32>, vector<8x96xf32> -> vector<8x96xf32>
    %329 = vector.broadcast %4 : vector<1x96xf32> to vector<8x96xf32>
    %330 = arith.addf %328, %329 : vector<8x96xf32>
    %331 = vector.extract_strided_slice %327 {offsets = [0, 0], sizes = [8, 32], strides = [1, 1]} : vector<8x96xf32> to vector<8x32xf32>
    %332 = vector.extract_strided_slice %330 {offsets = [0, 0], sizes = [8, 32], strides = [1, 1]} : vector<8x96xf32> to vector<8x32xf32>
    %333 = arith.addf %331, %332 : vector<8x32xf32>
    %334 = arith.negf %333 : vector<8x32xf32>
    %335 = math.exp %334 : vector<8x32xf32>
    %cst_74 = arith.constant 1.000000e+00 : f32
    %336 = vector.broadcast %cst_74 : f32 to vector<8x32xf32>
    %337 = arith.addf %336, %335 : vector<8x32xf32>
    %338 = arith.divf %336, %337 : vector<8x32xf32>
    %339 = vector.extract_strided_slice %327 {offsets = [0, 32], sizes = [8, 32], strides = [1, 1]} : vector<8x96xf32> to vector<8x32xf32>
    %340 = vector.extract_strided_slice %330 {offsets = [0, 32], sizes = [8, 32], strides = [1, 1]} : vector<8x96xf32> to vector<8x32xf32>
    %341 = arith.addf %339, %340 : vector<8x32xf32>
    %342 = arith.negf %341 : vector<8x32xf32>
    %343 = math.exp %342 : vector<8x32xf32>
    %cst_75 = arith.constant 1.000000e+00 : f32
    %344 = vector.broadcast %cst_75 : f32 to vector<8x32xf32>
    %345 = arith.addf %344, %343 : vector<8x32xf32>
    %346 = arith.divf %344, %345 : vector<8x32xf32>
    %347 = vector.extract_strided_slice %327 {offsets = [0, 64], sizes = [8, 32], strides = [1, 1]} : vector<8x96xf32> to vector<8x32xf32>
    %348 = vector.extract_strided_slice %330 {offsets = [0, 64], sizes = [8, 32], strides = [1, 1]} : vector<8x96xf32> to vector<8x32xf32>
    %349 = arith.mulf %338, %348 : vector<8x32xf32>
    %350 = arith.addf %347, %349 : vector<8x32xf32>
    %351 = math.tanh %350 : vector<8x32xf32>
    %cst_76 = arith.constant 1.000000e+00 : f32
    %352 = vector.broadcast %cst_76 : f32 to vector<8x32xf32>
    %353 = arith.subf %352, %346 : vector<8x32xf32>
    %354 = arith.mulf %353, %351 : vector<8x32xf32>
    %355 = arith.mulf %346, %294 : vector<8x32xf32>
    %356 = arith.addf %354, %355 : vector<8x32xf32>
    %c40_77 = arith.constant 40 : index
    %c0_78 = arith.constant 0 : index
    %357 = vector.load %arg21[%c40_77, %c0_78] : memref<64x64xf32, #tpu.memory_space<vmem>>, vector<8x32xf32>
    tpu.vector_store %arg21[%c40_77, %c0_78], %356 {strides = array<i32>} : memref<64x64xf32, #tpu.memory_space<vmem>>, vector<8x32xf32>,
    %358 = vector.extract_strided_slice %14 {offsets = [16, 0], sizes = [8, 96], strides = [1, 1]} : vector<64x96xf32> to vector<8x96xf32>
    %cst_79 = arith.constant dense<0.000000e+00> : vector<8x96xf32>
    %359 = tpu.matmul %325, %9, %cst_79 {dimension_numbers = #tpu.dot_dimension_numbers<[1], [0], [0], [1], [0, 0, 1, 1], [], []>} : vector<8x32xf32>, vector<32x96xf32>, vector<8x96xf32> -> vector<8x96xf32>
    %360 = vector.broadcast %11 : vector<1x96xf32> to vector<8x96xf32>
    %361 = arith.addf %359, %360 : vector<8x96xf32>
    %362 = vector.extract_strided_slice %358 {offsets = [0, 0], sizes = [8, 32], strides = [1, 1]} : vector<8x96xf32> to vector<8x32xf32>
    %363 = vector.extract_strided_slice %361 {offsets = [0, 0], sizes = [8, 32], strides = [1, 1]} : vector<8x96xf32> to vector<8x32xf32>
    %364 = arith.addf %362, %363 : vector<8x32xf32>
    %365 = arith.negf %364 : vector<8x32xf32>
    %366 = math.exp %365 : vector<8x32xf32>
    %cst_80 = arith.constant 1.000000e+00 : f32
    %367 = vector.broadcast %cst_80 : f32 to vector<8x32xf32>
    %368 = arith.addf %367, %366 : vector<8x32xf32>
    %369 = arith.divf %367, %368 : vector<8x32xf32>
    %370 = vector.extract_strided_slice %358 {offsets = [0, 32], sizes = [8, 32], strides = [1, 1]} : vector<8x96xf32> to vector<8x32xf32>
    %371 = vector.extract_strided_slice %361 {offsets = [0, 32], sizes = [8, 32], strides = [1, 1]} : vector<8x96xf32> to vector<8x32xf32>
    %372 = arith.addf %370, %371 : vector<8x32xf32>
    %373 = arith.negf %372 : vector<8x32xf32>
    %374 = math.exp %373 : vector<8x32xf32>
    %cst_81 = arith.constant 1.000000e+00 : f32
    %375 = vector.broadcast %cst_81 : f32 to vector<8x32xf32>
    %376 = arith.addf %375, %374 : vector<8x32xf32>
    %377 = arith.divf %375, %376 : vector<8x32xf32>
    %378 = vector.extract_strided_slice %358 {offsets = [0, 64], sizes = [8, 32], strides = [1, 1]} : vector<8x96xf32> to vector<8x32xf32>
    %379 = vector.extract_strided_slice %361 {offsets = [0, 64], sizes = [8, 32], strides = [1, 1]} : vector<8x96xf32> to vector<8x32xf32>
    %380 = arith.mulf %369, %379 : vector<8x32xf32>
    %381 = arith.addf %378, %380 : vector<8x32xf32>
    %382 = math.tanh %381 : vector<8x32xf32>
    %cst_82 = arith.constant 1.000000e+00 : f32
    %383 = vector.broadcast %cst_82 : f32 to vector<8x32xf32>
    %384 = arith.subf %383, %377 : vector<8x32xf32>
    %385 = arith.mulf %384, %382 : vector<8x32xf32>
    %386 = arith.mulf %377, %325 : vector<8x32xf32>
    %387 = arith.addf %385, %386 : vector<8x32xf32>
    %c16_83 = arith.constant 16 : index
    %c32_84 = arith.constant 32 : index
    %388 = vector.load %arg21[%c16_83, %c32_84] : memref<64x64xf32, #tpu.memory_space<vmem>>, vector<8x32xf32>
    tpu.vector_store %arg21[%c16_83, %c32_84], %387 {strides = array<i32>} : memref<64x64xf32, #tpu.memory_space<vmem>>, vector<8x32xf32>,
    %389 = vector.extract_strided_slice %7 {offsets = [48, 0], sizes = [8, 96], strides = [1, 1]} : vector<64x96xf32> to vector<8x96xf32>
    %cst_85 = arith.constant dense<0.000000e+00> : vector<8x96xf32>
    %390 = tpu.matmul %356, %2, %cst_85 {dimension_numbers = #tpu.dot_dimension_numbers<[1], [0], [0], [1], [0, 0, 1, 1], [], []>} : vector<8x32xf32>, vector<32x96xf32>, vector<8x96xf32> -> vector<8x96xf32>
    %391 = vector.broadcast %4 : vector<1x96xf32> to vector<8x96xf32>
    %392 = arith.addf %390, %391 : vector<8x96xf32>
    %393 = vector.extract_strided_slice %389 {offsets = [0, 0], sizes = [8, 32], strides = [1, 1]} : vector<8x96xf32> to vector<8x32xf32>
    %394 = vector.extract_strided_slice %392 {offsets = [0, 0], sizes = [8, 32], strides = [1, 1]} : vector<8x96xf32> to vector<8x32xf32>
    %395 = arith.addf %393, %394 : vector<8x32xf32>
    %396 = arith.negf %395 : vector<8x32xf32>
    %397 = math.exp %396 : vector<8x32xf32>
    %cst_86 = arith.constant 1.000000e+00 : f32
    %398 = vector.broadcast %cst_86 : f32 to vector<8x32xf32>
    %399 = arith.addf %398, %397 : vector<8x32xf32>
    %400 = arith.divf %398, %399 : vector<8x32xf32>
    %401 = vector.extract_strided_slice %389 {offsets = [0, 32], sizes = [8, 32], strides = [1, 1]} : vector<8x96xf32> to vector<8x32xf32>
    %402 = vector.extract_strided_slice %392 {offsets = [0, 32], sizes = [8, 32], strides = [1, 1]} : vector<8x96xf32> to vector<8x32xf32>
    %403 = arith.addf %401, %402 : vector<8x32xf32>
    %404 = arith.negf %403 : vector<8x32xf32>
    %405 = math.exp %404 : vector<8x32xf32>
    %cst_87 = arith.constant 1.000000e+00 : f32
    %406 = vector.broadcast %cst_87 : f32 to vector<8x32xf32>
    %407 = arith.addf %406, %405 : vector<8x32xf32>
    %408 = arith.divf %406, %407 : vector<8x32xf32>
    %409 = vector.extract_strided_slice %389 {offsets = [0, 64], sizes = [8, 32], strides = [1, 1]} : vector<8x96xf32> to vector<8x32xf32>
    %410 = vector.extract_strided_slice %392 {offsets = [0, 64], sizes = [8, 32], strides = [1, 1]} : vector<8x96xf32> to vector<8x32xf32>
    %411 = arith.mulf %400, %410 : vector<8x32xf32>
    %412 = arith.addf %409, %411 : vector<8x32xf32>
    %413 = math.tanh %412 : vector<8x32xf32>
    %cst_88 = arith.constant 1.000000e+00 : f32
    %414 = vector.broadcast %cst_88 : f32 to vector<8x32xf32>
    %415 = arith.subf %414, %408 : vector<8x32xf32>
    %416 = arith.mulf %415, %413 : vector<8x32xf32>
    %417 = arith.mulf %408, %356 : vector<8x32xf32>
    %418 = arith.addf %416, %417 : vector<8x32xf32>
    %c48_89 = arith.constant 48 : index
    %c0_90 = arith.constant 0 : index
    %419 = vector.load %arg21[%c48_89, %c0_90] : memref<64x64xf32, #tpu.memory_space<vmem>>, vector<8x32xf32>
    tpu.vector_store %arg21[%c48_89, %c0_90], %418 {strides = array<i32>} : memref<64x64xf32, #tpu.memory_space<vmem>>, vector<8x32xf32>,
    %420 = vector.extract_strided_slice %14 {offsets = [8, 0], sizes = [8, 96], strides = [1, 1]} : vector<64x96xf32> to vector<8x96xf32>
    %cst_91 = arith.constant dense<0.000000e+00> : vector<8x96xf32>
    %421 = tpu.matmul %387, %9, %cst_91 {dimension_numbers = #tpu.dot_dimension_numbers<[1], [0], [0], [1], [0, 0, 1, 1], [], []>} : vector<8x32xf32>, vector<32x96xf32>, vector<8x96xf32> -> vector<8x96xf32>
    %422 = vector.broadcast %11 : vector<1x96xf32> to vector<8x96xf32>
    %423 = arith.addf %421, %422 : vector<8x96xf32>
    %424 = vector.extract_strided_slice %420 {offsets = [0, 0], sizes = [8, 32], strides = [1, 1]} : vector<8x96xf32> to vector<8x32xf32>
    %425 = vector.extract_strided_slice %423 {offsets = [0, 0], sizes = [8, 32], strides = [1, 1]} : vector<8x96xf32> to vector<8x32xf32>
    %426 = arith.addf %424, %425 : vector<8x32xf32>
    %427 = arith.negf %426 : vector<8x32xf32>
    %428 = math.exp %427 : vector<8x32xf32>
    %cst_92 = arith.constant 1.000000e+00 : f32
    %429 = vector.broadcast %cst_92 : f32 to vector<8x32xf32>
    %430 = arith.addf %429, %428 : vector<8x32xf32>
    %431 = arith.divf %429, %430 : vector<8x32xf32>
    %432 = vector.extract_strided_slice %420 {offsets = [0, 32], sizes = [8, 32], strides = [1, 1]} : vector<8x96xf32> to vector<8x32xf32>
    %433 = vector.extract_strided_slice %423 {offsets = [0, 32], sizes = [8, 32], strides = [1, 1]} : vector<8x96xf32> to vector<8x32xf32>
    %434 = arith.addf %432, %433 : vector<8x32xf32>
    %435 = arith.negf %434 : vector<8x32xf32>
    %436 = math.exp %435 : vector<8x32xf32>
    %cst_93 = arith.constant 1.000000e+00 : f32
    %437 = vector.broadcast %cst_93 : f32 to vector<8x32xf32>
    %438 = arith.addf %437, %436 : vector<8x32xf32>
    %439 = arith.divf %437, %438 : vector<8x32xf32>
    %440 = vector.extract_strided_slice %420 {offsets = [0, 64], sizes = [8, 32], strides = [1, 1]} : vector<8x96xf32> to vector<8x32xf32>
    %441 = vector.extract_strided_slice %423 {offsets = [0, 64], sizes = [8, 32], strides = [1, 1]} : vector<8x96xf32> to vector<8x32xf32>
    %442 = arith.mulf %431, %441 : vector<8x32xf32>
    %443 = arith.addf %440, %442 : vector<8x32xf32>
    %444 = math.tanh %443 : vector<8x32xf32>
    %cst_94 = arith.constant 1.000000e+00 : f32
    %445 = vector.broadcast %cst_94 : f32 to vector<8x32xf32>
    %446 = arith.subf %445, %439 : vector<8x32xf32>
    %447 = arith.mulf %446, %444 : vector<8x32xf32>
    %448 = arith.mulf %439, %387 : vector<8x32xf32>
    %449 = arith.addf %447, %448 : vector<8x32xf32>
    %c8_95 = arith.constant 8 : index
    %c32_96 = arith.constant 32 : index
    %450 = vector.load %arg21[%c8_95, %c32_96] : memref<64x64xf32, #tpu.memory_space<vmem>>, vector<8x32xf32>
    tpu.vector_store %arg21[%c8_95, %c32_96], %449 {strides = array<i32>} : memref<64x64xf32, #tpu.memory_space<vmem>>, vector<8x32xf32>,
    %451 = vector.extract_strided_slice %7 {offsets = [56, 0], sizes = [8, 96], strides = [1, 1]} : vector<64x96xf32> to vector<8x96xf32>
    %cst_97 = arith.constant dense<0.000000e+00> : vector<8x96xf32>
    %452 = tpu.matmul %418, %2, %cst_97 {dimension_numbers = #tpu.dot_dimension_numbers<[1], [0], [0], [1], [0, 0, 1, 1], [], []>} : vector<8x32xf32>, vector<32x96xf32>, vector<8x96xf32> -> vector<8x96xf32>
    %453 = vector.broadcast %4 : vector<1x96xf32> to vector<8x96xf32>
    %454 = arith.addf %452, %453 : vector<8x96xf32>
    %455 = vector.extract_strided_slice %451 {offsets = [0, 0], sizes = [8, 32], strides = [1, 1]} : vector<8x96xf32> to vector<8x32xf32>
    %456 = vector.extract_strided_slice %454 {offsets = [0, 0], sizes = [8, 32], strides = [1, 1]} : vector<8x96xf32> to vector<8x32xf32>
    %457 = arith.addf %455, %456 : vector<8x32xf32>
    %458 = arith.negf %457 : vector<8x32xf32>
    %459 = math.exp %458 : vector<8x32xf32>
    %cst_98 = arith.constant 1.000000e+00 : f32
    %460 = vector.broadcast %cst_98 : f32 to vector<8x32xf32>
    %461 = arith.addf %460, %459 : vector<8x32xf32>
    %462 = arith.divf %460, %461 : vector<8x32xf32>
    %463 = vector.extract_strided_slice %451 {offsets = [0, 32], sizes = [8, 32], strides = [1, 1]} : vector<8x96xf32> to vector<8x32xf32>
    %464 = vector.extract_strided_slice %454 {offsets = [0, 32], sizes = [8, 32], strides = [1, 1]} : vector<8x96xf32> to vector<8x32xf32>
    %465 = arith.addf %463, %464 : vector<8x32xf32>
    %466 = arith.negf %465 : vector<8x32xf32>
    %467 = math.exp %466 : vector<8x32xf32>
    %cst_99 = arith.constant 1.000000e+00 : f32
    %468 = vector.broadcast %cst_99 : f32 to vector<8x32xf32>
    %469 = arith.addf %468, %467 : vector<8x32xf32>
    %470 = arith.divf %468, %469 : vector<8x32xf32>
    %471 = vector.extract_strided_slice %451 {offsets = [0, 64], sizes = [8, 32], strides = [1, 1]} : vector<8x96xf32> to vector<8x32xf32>
    %472 = vector.extract_strided_slice %454 {offsets = [0, 64], sizes = [8, 32], strides = [1, 1]} : vector<8x96xf32> to vector<8x32xf32>
    %473 = arith.mulf %462, %472 : vector<8x32xf32>
    %474 = arith.addf %471, %473 : vector<8x32xf32>
    %475 = math.tanh %474 : vector<8x32xf32>
    %cst_100 = arith.constant 1.000000e+00 : f32
    %476 = vector.broadcast %cst_100 : f32 to vector<8x32xf32>
    %477 = arith.subf %476, %470 : vector<8x32xf32>
    %478 = arith.mulf %477, %475 : vector<8x32xf32>
    %479 = arith.mulf %470, %418 : vector<8x32xf32>
    %480 = arith.addf %478, %479 : vector<8x32xf32>
    %c56_101 = arith.constant 56 : index
    %c0_102 = arith.constant 0 : index
    %481 = vector.load %arg21[%c56_101, %c0_102] : memref<64x64xf32, #tpu.memory_space<vmem>>, vector<8x32xf32>
    tpu.vector_store %arg21[%c56_101, %c0_102], %480 {strides = array<i32>} : memref<64x64xf32, #tpu.memory_space<vmem>>, vector<8x32xf32>,
    %482 = vector.extract_strided_slice %14 {offsets = [0, 0], sizes = [8, 96], strides = [1, 1]} : vector<64x96xf32> to vector<8x96xf32>
    %cst_103 = arith.constant dense<0.000000e+00> : vector<8x96xf32>
    %483 = tpu.matmul %449, %9, %cst_103 {dimension_numbers = #tpu.dot_dimension_numbers<[1], [0], [0], [1], [0, 0, 1, 1], [], []>} : vector<8x32xf32>, vector<32x96xf32>, vector<8x96xf32> -> vector<8x96xf32>
    %484 = vector.broadcast %11 : vector<1x96xf32> to vector<8x96xf32>
    %485 = arith.addf %483, %484 : vector<8x96xf32>
    %486 = vector.extract_strided_slice %482 {offsets = [0, 0], sizes = [8, 32], strides = [1, 1]} : vector<8x96xf32> to vector<8x32xf32>
    %487 = vector.extract_strided_slice %485 {offsets = [0, 0], sizes = [8, 32], strides = [1, 1]} : vector<8x96xf32> to vector<8x32xf32>
    %488 = arith.addf %486, %487 : vector<8x32xf32>
    %489 = arith.negf %488 : vector<8x32xf32>
    %490 = math.exp %489 : vector<8x32xf32>
    %cst_104 = arith.constant 1.000000e+00 : f32
    %491 = vector.broadcast %cst_104 : f32 to vector<8x32xf32>
    %492 = arith.addf %491, %490 : vector<8x32xf32>
    %493 = arith.divf %491, %492 : vector<8x32xf32>
    %494 = vector.extract_strided_slice %482 {offsets = [0, 32], sizes = [8, 32], strides = [1, 1]} : vector<8x96xf32> to vector<8x32xf32>
    %495 = vector.extract_strided_slice %485 {offsets = [0, 32], sizes = [8, 32], strides = [1, 1]} : vector<8x96xf32> to vector<8x32xf32>
    %496 = arith.addf %494, %495 : vector<8x32xf32>
    %497 = arith.negf %496 : vector<8x32xf32>
    %498 = math.exp %497 : vector<8x32xf32>
    %cst_105 = arith.constant 1.000000e+00 : f32
    %499 = vector.broadcast %cst_105 : f32 to vector<8x32xf32>
    %500 = arith.addf %499, %498 : vector<8x32xf32>
    %501 = arith.divf %499, %500 : vector<8x32xf32>
    %502 = vector.extract_strided_slice %482 {offsets = [0, 64], sizes = [8, 32], strides = [1, 1]} : vector<8x96xf32> to vector<8x32xf32>
    %503 = vector.extract_strided_slice %485 {offsets = [0, 64], sizes = [8, 32], strides = [1, 1]} : vector<8x96xf32> to vector<8x32xf32>
    %504 = arith.mulf %493, %503 : vector<8x32xf32>
    %505 = arith.addf %502, %504 : vector<8x32xf32>
    %506 = math.tanh %505 : vector<8x32xf32>
    %cst_106 = arith.constant 1.000000e+00 : f32
    %507 = vector.broadcast %cst_106 : f32 to vector<8x32xf32>
    %508 = arith.subf %507, %501 : vector<8x32xf32>
    %509 = arith.mulf %508, %506 : vector<8x32xf32>
    %510 = arith.mulf %501, %449 : vector<8x32xf32>
    %511 = arith.addf %509, %510 : vector<8x32xf32>
    %c0_107 = arith.constant 0 : index
    %c32_108 = arith.constant 32 : index
    %512 = vector.load %arg21[%c0_107, %c32_108] : memref<64x64xf32, #tpu.memory_space<vmem>>, vector<8x32xf32>
    tpu.vector_store %arg21[%c0_107, %c32_108], %511 {strides = array<i32>} : memref<64x64xf32, #tpu.memory_space<vmem>>, vector<8x32xf32>,
    %c0_109 = arith.constant 0 : index
    %c0_110 = arith.constant 0 : index
    %513 = vector.load %arg21[%c0_109, %c0_110] : memref<64x64xf32, #tpu.memory_space<vmem>>, vector<64x64xf32>
    %c0_111 = arith.constant 0 : index
    %c0_112 = arith.constant 0 : index
    %514 = vector.load %arg9[%c0_111, %c0_112] : memref<64x96xf32, #tpu.memory_space<vmem>>, vector<64x96xf32>
    %c0_113 = arith.constant 0 : index
    %c0_114 = arith.constant 0 : index
    %515 = vector.load %arg10[%c0_113, %c0_114] : memref<32x96xf32, #tpu.memory_space<vmem>>, vector<32x96xf32>
    %c0_115 = arith.constant 0 : index
    %c0_116 = arith.constant 0 : index
    %516 = vector.load %arg11[%c0_115, %c0_116] : memref<1x96xf32, #tpu.memory_space<vmem>>, vector<1x96xf32>
    %c0_117 = arith.constant 0 : index
    %c0_118 = arith.constant 0 : index
    %517 = vector.load %arg12[%c0_117, %c0_118] : memref<1x96xf32, #tpu.memory_space<vmem>>, vector<1x96xf32>
    %cst_119 = arith.constant dense<0.000000e+00> : vector<64x96xf32>
    %518 = tpu.matmul %513, %514, %cst_119 {dimension_numbers = #tpu.dot_dimension_numbers<[1], [0], [0], [1], [0, 0, 1, 1], [], []>} : vector<64x64xf32>, vector<64x96xf32>, vector<64x96xf32> -> vector<64x96xf32>
    %519 = vector.broadcast %516 : vector<1x96xf32> to vector<64x96xf32>
    %520 = arith.addf %518, %519 : vector<64x96xf32>
    %c0_120 = arith.constant 0 : index
    %c0_121 = arith.constant 0 : index
    %521 = vector.load %arg13[%c0_120, %c0_121] : memref<64x96xf32, #tpu.memory_space<vmem>>, vector<64x96xf32>
    %c0_122 = arith.constant 0 : index
    %c0_123 = arith.constant 0 : index
    %522 = vector.load %arg14[%c0_122, %c0_123] : memref<32x96xf32, #tpu.memory_space<vmem>>, vector<32x96xf32>
    %c0_124 = arith.constant 0 : index
    %c0_125 = arith.constant 0 : index
    %523 = vector.load %arg15[%c0_124, %c0_125] : memref<1x96xf32, #tpu.memory_space<vmem>>, vector<1x96xf32>
    %c0_126 = arith.constant 0 : index
    %c0_127 = arith.constant 0 : index
    %524 = vector.load %arg16[%c0_126, %c0_127] : memref<1x96xf32, #tpu.memory_space<vmem>>, vector<1x96xf32>
    %cst_128 = arith.constant dense<0.000000e+00> : vector<64x96xf32>
    %525 = tpu.matmul %513, %521, %cst_128 {dimension_numbers = #tpu.dot_dimension_numbers<[1], [0], [0], [1], [0, 0, 1, 1], [], []>} : vector<64x64xf32>, vector<64x96xf32>, vector<64x96xf32> -> vector<64x96xf32>
    %526 = vector.broadcast %523 : vector<1x96xf32> to vector<64x96xf32>
    %527 = arith.addf %525, %526 : vector<64x96xf32>
    %cst_129 = arith.constant 0.000000e+00 : f32
    %528 = vector.broadcast %cst_129 : f32 to vector<8x32xf32>
    %cst_130 = arith.constant 0.000000e+00 : f32
    %529 = vector.broadcast %cst_130 : f32 to vector<8x32xf32>
    %530 = vector.extract_strided_slice %520 {offsets = [0, 0], sizes = [8, 96], strides = [1, 1]} : vector<64x96xf32> to vector<8x96xf32>
    %cst_131 = arith.constant dense<0.000000e+00> : vector<8x96xf32>
    %531 = tpu.matmul %528, %515, %cst_131 {dimension_numbers = #tpu.dot_dimension_numbers<[1], [0], [0], [1], [0, 0, 1, 1], [], []>} : vector<8x32xf32>, vector<32x96xf32>, vector<8x96xf32> -> vector<8x96xf32>
    %532 = vector.broadcast %517 : vector<1x96xf32> to vector<8x96xf32>
    %533 = arith.addf %531, %532 : vector<8x96xf32>
    %534 = vector.extract_strided_slice %530 {offsets = [0, 0], sizes = [8, 32], strides = [1, 1]} : vector<8x96xf32> to vector<8x32xf32>
    %535 = vector.extract_strided_slice %533 {offsets = [0, 0], sizes = [8, 32], strides = [1, 1]} : vector<8x96xf32> to vector<8x32xf32>
    %536 = arith.addf %534, %535 : vector<8x32xf32>
    %537 = arith.negf %536 : vector<8x32xf32>
    %538 = math.exp %537 : vector<8x32xf32>
    %cst_132 = arith.constant 1.000000e+00 : f32
    %539 = vector.broadcast %cst_132 : f32 to vector<8x32xf32>
    %540 = arith.addf %539, %538 : vector<8x32xf32>
    %541 = arith.divf %539, %540 : vector<8x32xf32>
    %542 = vector.extract_strided_slice %530 {offsets = [0, 32], sizes = [8, 32], strides = [1, 1]} : vector<8x96xf32> to vector<8x32xf32>
    %543 = vector.extract_strided_slice %533 {offsets = [0, 32], sizes = [8, 32], strides = [1, 1]} : vector<8x96xf32> to vector<8x32xf32>
    %544 = arith.addf %542, %543 : vector<8x32xf32>
    %545 = arith.negf %544 : vector<8x32xf32>
    %546 = math.exp %545 : vector<8x32xf32>
    %cst_133 = arith.constant 1.000000e+00 : f32
    %547 = vector.broadcast %cst_133 : f32 to vector<8x32xf32>
    %548 = arith.addf %547, %546 : vector<8x32xf32>
    %549 = arith.divf %547, %548 : vector<8x32xf32>
    %550 = vector.extract_strided_slice %530 {offsets = [0, 64], sizes = [8, 32], strides = [1, 1]} : vector<8x96xf32> to vector<8x32xf32>
    %551 = vector.extract_strided_slice %533 {offsets = [0, 64], sizes = [8, 32], strides = [1, 1]} : vector<8x96xf32> to vector<8x32xf32>
    %552 = arith.mulf %541, %551 : vector<8x32xf32>
    %553 = arith.addf %550, %552 : vector<8x32xf32>
    %554 = math.tanh %553 : vector<8x32xf32>
    %cst_134 = arith.constant 1.000000e+00 : f32
    %555 = vector.broadcast %cst_134 : f32 to vector<8x32xf32>
    %556 = arith.subf %555, %549 : vector<8x32xf32>
    %557 = arith.mulf %556, %554 : vector<8x32xf32>
    %558 = arith.mulf %549, %528 : vector<8x32xf32>
    %559 = arith.addf %557, %558 : vector<8x32xf32>
    %560 = vector.extract_strided_slice %527 {offsets = [56, 0], sizes = [8, 96], strides = [1, 1]} : vector<64x96xf32> to vector<8x96xf32>
    %cst_135 = arith.constant dense<0.000000e+00> : vector<8x96xf32>
    %561 = tpu.matmul %529, %522, %cst_135 {dimension_numbers = #tpu.dot_dimension_numbers<[1], [0], [0], [1], [0, 0, 1, 1], [], []>} : vector<8x32xf32>, vector<32x96xf32>, vector<8x96xf32> -> vector<8x96xf32>
    %562 = vector.broadcast %524 : vector<1x96xf32> to vector<8x96xf32>
    %563 = arith.addf %561, %562 : vector<8x96xf32>
    %564 = vector.extract_strided_slice %560 {offsets = [0, 0], sizes = [8, 32], strides = [1, 1]} : vector<8x96xf32> to vector<8x32xf32>
    %565 = vector.extract_strided_slice %563 {offsets = [0, 0], sizes = [8, 32], strides = [1, 1]} : vector<8x96xf32> to vector<8x32xf32>
    %566 = arith.addf %564, %565 : vector<8x32xf32>
    %567 = arith.negf %566 : vector<8x32xf32>
    %568 = math.exp %567 : vector<8x32xf32>
    %cst_136 = arith.constant 1.000000e+00 : f32
    %569 = vector.broadcast %cst_136 : f32 to vector<8x32xf32>
    %570 = arith.addf %569, %568 : vector<8x32xf32>
    %571 = arith.divf %569, %570 : vector<8x32xf32>
    %572 = vector.extract_strided_slice %560 {offsets = [0, 32], sizes = [8, 32], strides = [1, 1]} : vector<8x96xf32> to vector<8x32xf32>
    %573 = vector.extract_strided_slice %563 {offsets = [0, 32], sizes = [8, 32], strides = [1, 1]} : vector<8x96xf32> to vector<8x32xf32>
    %574 = arith.addf %572, %573 : vector<8x32xf32>
    %575 = arith.negf %574 : vector<8x32xf32>
    %576 = math.exp %575 : vector<8x32xf32>
    %cst_137 = arith.constant 1.000000e+00 : f32
    %577 = vector.broadcast %cst_137 : f32 to vector<8x32xf32>
    %578 = arith.addf %577, %576 : vector<8x32xf32>
    %579 = arith.divf %577, %578 : vector<8x32xf32>
    %580 = vector.extract_strided_slice %560 {offsets = [0, 64], sizes = [8, 32], strides = [1, 1]} : vector<8x96xf32> to vector<8x32xf32>
    %581 = vector.extract_strided_slice %563 {offsets = [0, 64], sizes = [8, 32], strides = [1, 1]} : vector<8x96xf32> to vector<8x32xf32>
    %582 = arith.mulf %571, %581 : vector<8x32xf32>
    %583 = arith.addf %580, %582 : vector<8x32xf32>
    %584 = math.tanh %583 : vector<8x32xf32>
    %cst_138 = arith.constant 1.000000e+00 : f32
    %585 = vector.broadcast %cst_138 : f32 to vector<8x32xf32>
    %586 = arith.subf %585, %579 : vector<8x32xf32>
    %587 = arith.mulf %586, %584 : vector<8x32xf32>
    %588 = arith.mulf %579, %529 : vector<8x32xf32>
    %589 = arith.addf %587, %588 : vector<8x32xf32>
    %590 = vector.extract_strided_slice %520 {offsets = [8, 0], sizes = [8, 96], strides = [1, 1]} : vector<64x96xf32> to vector<8x96xf32>
    %cst_139 = arith.constant dense<0.000000e+00> : vector<8x96xf32>
    %591 = tpu.matmul %559, %515, %cst_139 {dimension_numbers = #tpu.dot_dimension_numbers<[1], [0], [0], [1], [0, 0, 1, 1], [], []>} : vector<8x32xf32>, vector<32x96xf32>, vector<8x96xf32> -> vector<8x96xf32>
    %592 = vector.broadcast %517 : vector<1x96xf32> to vector<8x96xf32>
    %593 = arith.addf %591, %592 : vector<8x96xf32>
    %594 = vector.extract_strided_slice %590 {offsets = [0, 0], sizes = [8, 32], strides = [1, 1]} : vector<8x96xf32> to vector<8x32xf32>
    %595 = vector.extract_strided_slice %593 {offsets = [0, 0], sizes = [8, 32], strides = [1, 1]} : vector<8x96xf32> to vector<8x32xf32>
    %596 = arith.addf %594, %595 : vector<8x32xf32>
    %597 = arith.negf %596 : vector<8x32xf32>
    %598 = math.exp %597 : vector<8x32xf32>
    %cst_140 = arith.constant 1.000000e+00 : f32
    %599 = vector.broadcast %cst_140 : f32 to vector<8x32xf32>
    %600 = arith.addf %599, %598 : vector<8x32xf32>
    %601 = arith.divf %599, %600 : vector<8x32xf32>
    %602 = vector.extract_strided_slice %590 {offsets = [0, 32], sizes = [8, 32], strides = [1, 1]} : vector<8x96xf32> to vector<8x32xf32>
    %603 = vector.extract_strided_slice %593 {offsets = [0, 32], sizes = [8, 32], strides = [1, 1]} : vector<8x96xf32> to vector<8x32xf32>
    %604 = arith.addf %602, %603 : vector<8x32xf32>
    %605 = arith.negf %604 : vector<8x32xf32>
    %606 = math.exp %605 : vector<8x32xf32>
    %cst_141 = arith.constant 1.000000e+00 : f32
    %607 = vector.broadcast %cst_141 : f32 to vector<8x32xf32>
    %608 = arith.addf %607, %606 : vector<8x32xf32>
    %609 = arith.divf %607, %608 : vector<8x32xf32>
    %610 = vector.extract_strided_slice %590 {offsets = [0, 64], sizes = [8, 32], strides = [1, 1]} : vector<8x96xf32> to vector<8x32xf32>
    %611 = vector.extract_strided_slice %593 {offsets = [0, 64], sizes = [8, 32], strides = [1, 1]} : vector<8x96xf32> to vector<8x32xf32>
    %612 = arith.mulf %601, %611 : vector<8x32xf32>
    %613 = arith.addf %610, %612 : vector<8x32xf32>
    %614 = math.tanh %613 : vector<8x32xf32>
    %cst_142 = arith.constant 1.000000e+00 : f32
    %615 = vector.broadcast %cst_142 : f32 to vector<8x32xf32>
    %616 = arith.subf %615, %609 : vector<8x32xf32>
    %617 = arith.mulf %616, %614 : vector<8x32xf32>
    %618 = arith.mulf %609, %559 : vector<8x32xf32>
    %619 = arith.addf %617, %618 : vector<8x32xf32>
    %620 = vector.extract_strided_slice %527 {offsets = [48, 0], sizes = [8, 96], strides = [1, 1]} : vector<64x96xf32> to vector<8x96xf32>
    %cst_143 = arith.constant dense<0.000000e+00> : vector<8x96xf32>
    %621 = tpu.matmul %589, %522, %cst_143 {dimension_numbers = #tpu.dot_dimension_numbers<[1], [0], [0], [1], [0, 0, 1, 1], [], []>} : vector<8x32xf32>, vector<32x96xf32>, vector<8x96xf32> -> vector<8x96xf32>
    %622 = vector.broadcast %524 : vector<1x96xf32> to vector<8x96xf32>
    %623 = arith.addf %621, %622 : vector<8x96xf32>
    %624 = vector.extract_strided_slice %620 {offsets = [0, 0], sizes = [8, 32], strides = [1, 1]} : vector<8x96xf32> to vector<8x32xf32>
    %625 = vector.extract_strided_slice %623 {offsets = [0, 0], sizes = [8, 32], strides = [1, 1]} : vector<8x96xf32> to vector<8x32xf32>
    %626 = arith.addf %624, %625 : vector<8x32xf32>
    %627 = arith.negf %626 : vector<8x32xf32>
    %628 = math.exp %627 : vector<8x32xf32>
    %cst_144 = arith.constant 1.000000e+00 : f32
    %629 = vector.broadcast %cst_144 : f32 to vector<8x32xf32>
    %630 = arith.addf %629, %628 : vector<8x32xf32>
    %631 = arith.divf %629, %630 : vector<8x32xf32>
    %632 = vector.extract_strided_slice %620 {offsets = [0, 32], sizes = [8, 32], strides = [1, 1]} : vector<8x96xf32> to vector<8x32xf32>
    %633 = vector.extract_strided_slice %623 {offsets = [0, 32], sizes = [8, 32], strides = [1, 1]} : vector<8x96xf32> to vector<8x32xf32>
    %634 = arith.addf %632, %633 : vector<8x32xf32>
    %635 = arith.negf %634 : vector<8x32xf32>
    %636 = math.exp %635 : vector<8x32xf32>
    %cst_145 = arith.constant 1.000000e+00 : f32
    %637 = vector.broadcast %cst_145 : f32 to vector<8x32xf32>
    %638 = arith.addf %637, %636 : vector<8x32xf32>
    %639 = arith.divf %637, %638 : vector<8x32xf32>
    %640 = vector.extract_strided_slice %620 {offsets = [0, 64], sizes = [8, 32], strides = [1, 1]} : vector<8x96xf32> to vector<8x32xf32>
    %641 = vector.extract_strided_slice %623 {offsets = [0, 64], sizes = [8, 32], strides = [1, 1]} : vector<8x96xf32> to vector<8x32xf32>
    %642 = arith.mulf %631, %641 : vector<8x32xf32>
    %643 = arith.addf %640, %642 : vector<8x32xf32>
    %644 = math.tanh %643 : vector<8x32xf32>
    %cst_146 = arith.constant 1.000000e+00 : f32
    %645 = vector.broadcast %cst_146 : f32 to vector<8x32xf32>
    %646 = arith.subf %645, %639 : vector<8x32xf32>
    %647 = arith.mulf %646, %644 : vector<8x32xf32>
    %648 = arith.mulf %639, %589 : vector<8x32xf32>
    %649 = arith.addf %647, %648 : vector<8x32xf32>
    %650 = vector.extract_strided_slice %520 {offsets = [16, 0], sizes = [8, 96], strides = [1, 1]} : vector<64x96xf32> to vector<8x96xf32>
    %cst_147 = arith.constant dense<0.000000e+00> : vector<8x96xf32>
    %651 = tpu.matmul %619, %515, %cst_147 {dimension_numbers = #tpu.dot_dimension_numbers<[1], [0], [0], [1], [0, 0, 1, 1], [], []>} : vector<8x32xf32>, vector<32x96xf32>, vector<8x96xf32> -> vector<8x96xf32>
    %652 = vector.broadcast %517 : vector<1x96xf32> to vector<8x96xf32>
    %653 = arith.addf %651, %652 : vector<8x96xf32>
    %654 = vector.extract_strided_slice %650 {offsets = [0, 0], sizes = [8, 32], strides = [1, 1]} : vector<8x96xf32> to vector<8x32xf32>
    %655 = vector.extract_strided_slice %653 {offsets = [0, 0], sizes = [8, 32], strides = [1, 1]} : vector<8x96xf32> to vector<8x32xf32>
    %656 = arith.addf %654, %655 : vector<8x32xf32>
    %657 = arith.negf %656 : vector<8x32xf32>
    %658 = math.exp %657 : vector<8x32xf32>
    %cst_148 = arith.constant 1.000000e+00 : f32
    %659 = vector.broadcast %cst_148 : f32 to vector<8x32xf32>
    %660 = arith.addf %659, %658 : vector<8x32xf32>
    %661 = arith.divf %659, %660 : vector<8x32xf32>
    %662 = vector.extract_strided_slice %650 {offsets = [0, 32], sizes = [8, 32], strides = [1, 1]} : vector<8x96xf32> to vector<8x32xf32>
    %663 = vector.extract_strided_slice %653 {offsets = [0, 32], sizes = [8, 32], strides = [1, 1]} : vector<8x96xf32> to vector<8x32xf32>
    %664 = arith.addf %662, %663 : vector<8x32xf32>
    %665 = arith.negf %664 : vector<8x32xf32>
    %666 = math.exp %665 : vector<8x32xf32>
    %cst_149 = arith.constant 1.000000e+00 : f32
    %667 = vector.broadcast %cst_149 : f32 to vector<8x32xf32>
    %668 = arith.addf %667, %666 : vector<8x32xf32>
    %669 = arith.divf %667, %668 : vector<8x32xf32>
    %670 = vector.extract_strided_slice %650 {offsets = [0, 64], sizes = [8, 32], strides = [1, 1]} : vector<8x96xf32> to vector<8x32xf32>
    %671 = vector.extract_strided_slice %653 {offsets = [0, 64], sizes = [8, 32], strides = [1, 1]} : vector<8x96xf32> to vector<8x32xf32>
    %672 = arith.mulf %661, %671 : vector<8x32xf32>
    %673 = arith.addf %670, %672 : vector<8x32xf32>
    %674 = math.tanh %673 : vector<8x32xf32>
    %cst_150 = arith.constant 1.000000e+00 : f32
    %675 = vector.broadcast %cst_150 : f32 to vector<8x32xf32>
    %676 = arith.subf %675, %669 : vector<8x32xf32>
    %677 = arith.mulf %676, %674 : vector<8x32xf32>
    %678 = arith.mulf %669, %619 : vector<8x32xf32>
    %679 = arith.addf %677, %678 : vector<8x32xf32>
    %680 = vector.extract_strided_slice %527 {offsets = [40, 0], sizes = [8, 96], strides = [1, 1]} : vector<64x96xf32> to vector<8x96xf32>
    %cst_151 = arith.constant dense<0.000000e+00> : vector<8x96xf32>
    %681 = tpu.matmul %649, %522, %cst_151 {dimension_numbers = #tpu.dot_dimension_numbers<[1], [0], [0], [1], [0, 0, 1, 1], [], []>} : vector<8x32xf32>, vector<32x96xf32>, vector<8x96xf32> -> vector<8x96xf32>
    %682 = vector.broadcast %524 : vector<1x96xf32> to vector<8x96xf32>
    %683 = arith.addf %681, %682 : vector<8x96xf32>
    %684 = vector.extract_strided_slice %680 {offsets = [0, 0], sizes = [8, 32], strides = [1, 1]} : vector<8x96xf32> to vector<8x32xf32>
    %685 = vector.extract_strided_slice %683 {offsets = [0, 0], sizes = [8, 32], strides = [1, 1]} : vector<8x96xf32> to vector<8x32xf32>
    %686 = arith.addf %684, %685 : vector<8x32xf32>
    %687 = arith.negf %686 : vector<8x32xf32>
    %688 = math.exp %687 : vector<8x32xf32>
    %cst_152 = arith.constant 1.000000e+00 : f32
    %689 = vector.broadcast %cst_152 : f32 to vector<8x32xf32>
    %690 = arith.addf %689, %688 : vector<8x32xf32>
    %691 = arith.divf %689, %690 : vector<8x32xf32>
    %692 = vector.extract_strided_slice %680 {offsets = [0, 32], sizes = [8, 32], strides = [1, 1]} : vector<8x96xf32> to vector<8x32xf32>
    %693 = vector.extract_strided_slice %683 {offsets = [0, 32], sizes = [8, 32], strides = [1, 1]} : vector<8x96xf32> to vector<8x32xf32>
    %694 = arith.addf %692, %693 : vector<8x32xf32>
    %695 = arith.negf %694 : vector<8x32xf32>
    %696 = math.exp %695 : vector<8x32xf32>
    %cst_153 = arith.constant 1.000000e+00 : f32
    %697 = vector.broadcast %cst_153 : f32 to vector<8x32xf32>
    %698 = arith.addf %697, %696 : vector<8x32xf32>
    %699 = arith.divf %697, %698 : vector<8x32xf32>
    %700 = vector.extract_strided_slice %680 {offsets = [0, 64], sizes = [8, 32], strides = [1, 1]} : vector<8x96xf32> to vector<8x32xf32>
    %701 = vector.extract_strided_slice %683 {offsets = [0, 64], sizes = [8, 32], strides = [1, 1]} : vector<8x96xf32> to vector<8x32xf32>
    %702 = arith.mulf %691, %701 : vector<8x32xf32>
    %703 = arith.addf %700, %702 : vector<8x32xf32>
    %704 = math.tanh %703 : vector<8x32xf32>
    %cst_154 = arith.constant 1.000000e+00 : f32
    %705 = vector.broadcast %cst_154 : f32 to vector<8x32xf32>
    %706 = arith.subf %705, %699 : vector<8x32xf32>
    %707 = arith.mulf %706, %704 : vector<8x32xf32>
    %708 = arith.mulf %699, %649 : vector<8x32xf32>
    %709 = arith.addf %707, %708 : vector<8x32xf32>
    %710 = vector.extract_strided_slice %520 {offsets = [24, 0], sizes = [8, 96], strides = [1, 1]} : vector<64x96xf32> to vector<8x96xf32>
    %cst_155 = arith.constant dense<0.000000e+00> : vector<8x96xf32>
    %711 = tpu.matmul %679, %515, %cst_155 {dimension_numbers = #tpu.dot_dimension_numbers<[1], [0], [0], [1], [0, 0, 1, 1], [], []>} : vector<8x32xf32>, vector<32x96xf32>, vector<8x96xf32> -> vector<8x96xf32>
    %712 = vector.broadcast %517 : vector<1x96xf32> to vector<8x96xf32>
    %713 = arith.addf %711, %712 : vector<8x96xf32>
    %714 = vector.extract_strided_slice %710 {offsets = [0, 0], sizes = [8, 32], strides = [1, 1]} : vector<8x96xf32> to vector<8x32xf32>
    %715 = vector.extract_strided_slice %713 {offsets = [0, 0], sizes = [8, 32], strides = [1, 1]} : vector<8x96xf32> to vector<8x32xf32>
    %716 = arith.addf %714, %715 : vector<8x32xf32>
    %717 = arith.negf %716 : vector<8x32xf32>
    %718 = math.exp %717 : vector<8x32xf32>
    %cst_156 = arith.constant 1.000000e+00 : f32
    %719 = vector.broadcast %cst_156 : f32 to vector<8x32xf32>
    %720 = arith.addf %719, %718 : vector<8x32xf32>
    %721 = arith.divf %719, %720 : vector<8x32xf32>
    %722 = vector.extract_strided_slice %710 {offsets = [0, 32], sizes = [8, 32], strides = [1, 1]} : vector<8x96xf32> to vector<8x32xf32>
    %723 = vector.extract_strided_slice %713 {offsets = [0, 32], sizes = [8, 32], strides = [1, 1]} : vector<8x96xf32> to vector<8x32xf32>
    %724 = arith.addf %722, %723 : vector<8x32xf32>
    %725 = arith.negf %724 : vector<8x32xf32>
    %726 = math.exp %725 : vector<8x32xf32>
    %cst_157 = arith.constant 1.000000e+00 : f32
    %727 = vector.broadcast %cst_157 : f32 to vector<8x32xf32>
    %728 = arith.addf %727, %726 : vector<8x32xf32>
    %729 = arith.divf %727, %728 : vector<8x32xf32>
    %730 = vector.extract_strided_slice %710 {offsets = [0, 64], sizes = [8, 32], strides = [1, 1]} : vector<8x96xf32> to vector<8x32xf32>
    %731 = vector.extract_strided_slice %713 {offsets = [0, 64], sizes = [8, 32], strides = [1, 1]} : vector<8x96xf32> to vector<8x32xf32>
    %732 = arith.mulf %721, %731 : vector<8x32xf32>
    %733 = arith.addf %730, %732 : vector<8x32xf32>
    %734 = math.tanh %733 : vector<8x32xf32>
    %cst_158 = arith.constant 1.000000e+00 : f32
    %735 = vector.broadcast %cst_158 : f32 to vector<8x32xf32>
    %736 = arith.subf %735, %729 : vector<8x32xf32>
    %737 = arith.mulf %736, %734 : vector<8x32xf32>
    %738 = arith.mulf %729, %679 : vector<8x32xf32>
    %739 = arith.addf %737, %738 : vector<8x32xf32>
    %740 = vector.extract_strided_slice %527 {offsets = [32, 0], sizes = [8, 96], strides = [1, 1]} : vector<64x96xf32> to vector<8x96xf32>
    %cst_159 = arith.constant dense<0.000000e+00> : vector<8x96xf32>
    %741 = tpu.matmul %709, %522, %cst_159 {dimension_numbers = #tpu.dot_dimension_numbers<[1], [0], [0], [1], [0, 0, 1, 1], [], []>} : vector<8x32xf32>, vector<32x96xf32>, vector<8x96xf32> -> vector<8x96xf32>
    %742 = vector.broadcast %524 : vector<1x96xf32> to vector<8x96xf32>
    %743 = arith.addf %741, %742 : vector<8x96xf32>
    %744 = vector.extract_strided_slice %740 {offsets = [0, 0], sizes = [8, 32], strides = [1, 1]} : vector<8x96xf32> to vector<8x32xf32>
    %745 = vector.extract_strided_slice %743 {offsets = [0, 0], sizes = [8, 32], strides = [1, 1]} : vector<8x96xf32> to vector<8x32xf32>
    %746 = arith.addf %744, %745 : vector<8x32xf32>
    %747 = arith.negf %746 : vector<8x32xf32>
    %748 = math.exp %747 : vector<8x32xf32>
    %cst_160 = arith.constant 1.000000e+00 : f32
    %749 = vector.broadcast %cst_160 : f32 to vector<8x32xf32>
    %750 = arith.addf %749, %748 : vector<8x32xf32>
    %751 = arith.divf %749, %750 : vector<8x32xf32>
    %752 = vector.extract_strided_slice %740 {offsets = [0, 32], sizes = [8, 32], strides = [1, 1]} : vector<8x96xf32> to vector<8x32xf32>
    %753 = vector.extract_strided_slice %743 {offsets = [0, 32], sizes = [8, 32], strides = [1, 1]} : vector<8x96xf32> to vector<8x32xf32>
    %754 = arith.addf %752, %753 : vector<8x32xf32>
    %755 = arith.negf %754 : vector<8x32xf32>
    %756 = math.exp %755 : vector<8x32xf32>
    %cst_161 = arith.constant 1.000000e+00 : f32
    %757 = vector.broadcast %cst_161 : f32 to vector<8x32xf32>
    %758 = arith.addf %757, %756 : vector<8x32xf32>
    %759 = arith.divf %757, %758 : vector<8x32xf32>
    %760 = vector.extract_strided_slice %740 {offsets = [0, 64], sizes = [8, 32], strides = [1, 1]} : vector<8x96xf32> to vector<8x32xf32>
    %761 = vector.extract_strided_slice %743 {offsets = [0, 64], sizes = [8, 32], strides = [1, 1]} : vector<8x96xf32> to vector<8x32xf32>
    %762 = arith.mulf %751, %761 : vector<8x32xf32>
    %763 = arith.addf %760, %762 : vector<8x32xf32>
    %764 = math.tanh %763 : vector<8x32xf32>
    %cst_162 = arith.constant 1.000000e+00 : f32
    %765 = vector.broadcast %cst_162 : f32 to vector<8x32xf32>
    %766 = arith.subf %765, %759 : vector<8x32xf32>
    %767 = arith.mulf %766, %764 : vector<8x32xf32>
    %768 = arith.mulf %759, %709 : vector<8x32xf32>
    %769 = arith.addf %767, %768 : vector<8x32xf32>
    %770 = vector.extract_strided_slice %520 {offsets = [32, 0], sizes = [8, 96], strides = [1, 1]} : vector<64x96xf32> to vector<8x96xf32>
    %cst_163 = arith.constant dense<0.000000e+00> : vector<8x96xf32>
    %771 = tpu.matmul %739, %515, %cst_163 {dimension_numbers = #tpu.dot_dimension_numbers<[1], [0], [0], [1], [0, 0, 1, 1], [], []>} : vector<8x32xf32>, vector<32x96xf32>, vector<8x96xf32> -> vector<8x96xf32>
    %772 = vector.broadcast %517 : vector<1x96xf32> to vector<8x96xf32>
    %773 = arith.addf %771, %772 : vector<8x96xf32>
    %774 = vector.extract_strided_slice %770 {offsets = [0, 0], sizes = [8, 32], strides = [1, 1]} : vector<8x96xf32> to vector<8x32xf32>
    %775 = vector.extract_strided_slice %773 {offsets = [0, 0], sizes = [8, 32], strides = [1, 1]} : vector<8x96xf32> to vector<8x32xf32>
    %776 = arith.addf %774, %775 : vector<8x32xf32>
    %777 = arith.negf %776 : vector<8x32xf32>
    %778 = math.exp %777 : vector<8x32xf32>
    %cst_164 = arith.constant 1.000000e+00 : f32
    %779 = vector.broadcast %cst_164 : f32 to vector<8x32xf32>
    %780 = arith.addf %779, %778 : vector<8x32xf32>
    %781 = arith.divf %779, %780 : vector<8x32xf32>
    %782 = vector.extract_strided_slice %770 {offsets = [0, 32], sizes = [8, 32], strides = [1, 1]} : vector<8x96xf32> to vector<8x32xf32>
    %783 = vector.extract_strided_slice %773 {offsets = [0, 32], sizes = [8, 32], strides = [1, 1]} : vector<8x96xf32> to vector<8x32xf32>
    %784 = arith.addf %782, %783 : vector<8x32xf32>
    %785 = arith.negf %784 : vector<8x32xf32>
    %786 = math.exp %785 : vector<8x32xf32>
    %cst_165 = arith.constant 1.000000e+00 : f32
    %787 = vector.broadcast %cst_165 : f32 to vector<8x32xf32>
    %788 = arith.addf %787, %786 : vector<8x32xf32>
    %789 = arith.divf %787, %788 : vector<8x32xf32>
    %790 = vector.extract_strided_slice %770 {offsets = [0, 64], sizes = [8, 32], strides = [1, 1]} : vector<8x96xf32> to vector<8x32xf32>
    %791 = vector.extract_strided_slice %773 {offsets = [0, 64], sizes = [8, 32], strides = [1, 1]} : vector<8x96xf32> to vector<8x32xf32>
    %792 = arith.mulf %781, %791 : vector<8x32xf32>
    %793 = arith.addf %790, %792 : vector<8x32xf32>
    %794 = math.tanh %793 : vector<8x32xf32>
    %cst_166 = arith.constant 1.000000e+00 : f32
    %795 = vector.broadcast %cst_166 : f32 to vector<8x32xf32>
    %796 = arith.subf %795, %789 : vector<8x32xf32>
    %797 = arith.mulf %796, %794 : vector<8x32xf32>
    %798 = arith.mulf %789, %739 : vector<8x32xf32>
    %799 = arith.addf %797, %798 : vector<8x32xf32>
    %800 = vector.extract_strided_slice %527 {offsets = [24, 0], sizes = [8, 96], strides = [1, 1]} : vector<64x96xf32> to vector<8x96xf32>
    %cst_167 = arith.constant dense<0.000000e+00> : vector<8x96xf32>
    %801 = tpu.matmul %769, %522, %cst_167 {dimension_numbers = #tpu.dot_dimension_numbers<[1], [0], [0], [1], [0, 0, 1, 1], [], []>} : vector<8x32xf32>, vector<32x96xf32>, vector<8x96xf32> -> vector<8x96xf32>
    %802 = vector.broadcast %524 : vector<1x96xf32> to vector<8x96xf32>
    %803 = arith.addf %801, %802 : vector<8x96xf32>
    %804 = vector.extract_strided_slice %800 {offsets = [0, 0], sizes = [8, 32], strides = [1, 1]} : vector<8x96xf32> to vector<8x32xf32>
    %805 = vector.extract_strided_slice %803 {offsets = [0, 0], sizes = [8, 32], strides = [1, 1]} : vector<8x96xf32> to vector<8x32xf32>
    %806 = arith.addf %804, %805 : vector<8x32xf32>
    %807 = arith.negf %806 : vector<8x32xf32>
    %808 = math.exp %807 : vector<8x32xf32>
    %cst_168 = arith.constant 1.000000e+00 : f32
    %809 = vector.broadcast %cst_168 : f32 to vector<8x32xf32>
    %810 = arith.addf %809, %808 : vector<8x32xf32>
    %811 = arith.divf %809, %810 : vector<8x32xf32>
    %812 = vector.extract_strided_slice %800 {offsets = [0, 32], sizes = [8, 32], strides = [1, 1]} : vector<8x96xf32> to vector<8x32xf32>
    %813 = vector.extract_strided_slice %803 {offsets = [0, 32], sizes = [8, 32], strides = [1, 1]} : vector<8x96xf32> to vector<8x32xf32>
    %814 = arith.addf %812, %813 : vector<8x32xf32>
    %815 = arith.negf %814 : vector<8x32xf32>
    %816 = math.exp %815 : vector<8x32xf32>
    %cst_169 = arith.constant 1.000000e+00 : f32
    %817 = vector.broadcast %cst_169 : f32 to vector<8x32xf32>
    %818 = arith.addf %817, %816 : vector<8x32xf32>
    %819 = arith.divf %817, %818 : vector<8x32xf32>
    %820 = vector.extract_strided_slice %800 {offsets = [0, 64], sizes = [8, 32], strides = [1, 1]} : vector<8x96xf32> to vector<8x32xf32>
    %821 = vector.extract_strided_slice %803 {offsets = [0, 64], sizes = [8, 32], strides = [1, 1]} : vector<8x96xf32> to vector<8x32xf32>
    %822 = arith.mulf %811, %821 : vector<8x32xf32>
    %823 = arith.addf %820, %822 : vector<8x32xf32>
    %824 = math.tanh %823 : vector<8x32xf32>
    %cst_170 = arith.constant 1.000000e+00 : f32
    %825 = vector.broadcast %cst_170 : f32 to vector<8x32xf32>
    %826 = arith.subf %825, %819 : vector<8x32xf32>
    %827 = arith.mulf %826, %824 : vector<8x32xf32>
    %828 = arith.mulf %819, %769 : vector<8x32xf32>
    %829 = arith.addf %827, %828 : vector<8x32xf32>
    %830 = vector.extract_strided_slice %520 {offsets = [40, 0], sizes = [8, 96], strides = [1, 1]} : vector<64x96xf32> to vector<8x96xf32>
    %cst_171 = arith.constant dense<0.000000e+00> : vector<8x96xf32>
    %831 = tpu.matmul %799, %515, %cst_171 {dimension_numbers = #tpu.dot_dimension_numbers<[1], [0], [0], [1], [0, 0, 1, 1], [], []>} : vector<8x32xf32>, vector<32x96xf32>, vector<8x96xf32> -> vector<8x96xf32>
    %832 = vector.broadcast %517 : vector<1x96xf32> to vector<8x96xf32>
    %833 = arith.addf %831, %832 : vector<8x96xf32>
    %834 = vector.extract_strided_slice %830 {offsets = [0, 0], sizes = [8, 32], strides = [1, 1]} : vector<8x96xf32> to vector<8x32xf32>
    %835 = vector.extract_strided_slice %833 {offsets = [0, 0], sizes = [8, 32], strides = [1, 1]} : vector<8x96xf32> to vector<8x32xf32>
    %836 = arith.addf %834, %835 : vector<8x32xf32>
    %837 = arith.negf %836 : vector<8x32xf32>
    %838 = math.exp %837 : vector<8x32xf32>
    %cst_172 = arith.constant 1.000000e+00 : f32
    %839 = vector.broadcast %cst_172 : f32 to vector<8x32xf32>
    %840 = arith.addf %839, %838 : vector<8x32xf32>
    %841 = arith.divf %839, %840 : vector<8x32xf32>
    %842 = vector.extract_strided_slice %830 {offsets = [0, 32], sizes = [8, 32], strides = [1, 1]} : vector<8x96xf32> to vector<8x32xf32>
    %843 = vector.extract_strided_slice %833 {offsets = [0, 32], sizes = [8, 32], strides = [1, 1]} : vector<8x96xf32> to vector<8x32xf32>
    %844 = arith.addf %842, %843 : vector<8x32xf32>
    %845 = arith.negf %844 : vector<8x32xf32>
    %846 = math.exp %845 : vector<8x32xf32>
    %cst_173 = arith.constant 1.000000e+00 : f32
    %847 = vector.broadcast %cst_173 : f32 to vector<8x32xf32>
    %848 = arith.addf %847, %846 : vector<8x32xf32>
    %849 = arith.divf %847, %848 : vector<8x32xf32>
    %850 = vector.extract_strided_slice %830 {offsets = [0, 64], sizes = [8, 32], strides = [1, 1]} : vector<8x96xf32> to vector<8x32xf32>
    %851 = vector.extract_strided_slice %833 {offsets = [0, 64], sizes = [8, 32], strides = [1, 1]} : vector<8x96xf32> to vector<8x32xf32>
    %852 = arith.mulf %841, %851 : vector<8x32xf32>
    %853 = arith.addf %850, %852 : vector<8x32xf32>
    %854 = math.tanh %853 : vector<8x32xf32>
    %cst_174 = arith.constant 1.000000e+00 : f32
    %855 = vector.broadcast %cst_174 : f32 to vector<8x32xf32>
    %856 = arith.subf %855, %849 : vector<8x32xf32>
    %857 = arith.mulf %856, %854 : vector<8x32xf32>
    %858 = arith.mulf %849, %799 : vector<8x32xf32>
    %859 = arith.addf %857, %858 : vector<8x32xf32>
    %860 = vector.extract_strided_slice %527 {offsets = [16, 0], sizes = [8, 96], strides = [1, 1]} : vector<64x96xf32> to vector<8x96xf32>
    %cst_175 = arith.constant dense<0.000000e+00> : vector<8x96xf32>
    %861 = tpu.matmul %829, %522, %cst_175 {dimension_numbers = #tpu.dot_dimension_numbers<[1], [0], [0], [1], [0, 0, 1, 1], [], []>} : vector<8x32xf32>, vector<32x96xf32>, vector<8x96xf32> -> vector<8x96xf32>
    %862 = vector.broadcast %524 : vector<1x96xf32> to vector<8x96xf32>
    %863 = arith.addf %861, %862 : vector<8x96xf32>
    %864 = vector.extract_strided_slice %860 {offsets = [0, 0], sizes = [8, 32], strides = [1, 1]} : vector<8x96xf32> to vector<8x32xf32>
    %865 = vector.extract_strided_slice %863 {offsets = [0, 0], sizes = [8, 32], strides = [1, 1]} : vector<8x96xf32> to vector<8x32xf32>
    %866 = arith.addf %864, %865 : vector<8x32xf32>
    %867 = arith.negf %866 : vector<8x32xf32>
    %868 = math.exp %867 : vector<8x32xf32>
    %cst_176 = arith.constant 1.000000e+00 : f32
    %869 = vector.broadcast %cst_176 : f32 to vector<8x32xf32>
    %870 = arith.addf %869, %868 : vector<8x32xf32>
    %871 = arith.divf %869, %870 : vector<8x32xf32>
    %872 = vector.extract_strided_slice %860 {offsets = [0, 32], sizes = [8, 32], strides = [1, 1]} : vector<8x96xf32> to vector<8x32xf32>
    %873 = vector.extract_strided_slice %863 {offsets = [0, 32], sizes = [8, 32], strides = [1, 1]} : vector<8x96xf32> to vector<8x32xf32>
    %874 = arith.addf %872, %873 : vector<8x32xf32>
    %875 = arith.negf %874 : vector<8x32xf32>
    %876 = math.exp %875 : vector<8x32xf32>
    %cst_177 = arith.constant 1.000000e+00 : f32
    %877 = vector.broadcast %cst_177 : f32 to vector<8x32xf32>
    %878 = arith.addf %877, %876 : vector<8x32xf32>
    %879 = arith.divf %877, %878 : vector<8x32xf32>
    %880 = vector.extract_strided_slice %860 {offsets = [0, 64], sizes = [8, 32], strides = [1, 1]} : vector<8x96xf32> to vector<8x32xf32>
    %881 = vector.extract_strided_slice %863 {offsets = [0, 64], sizes = [8, 32], strides = [1, 1]} : vector<8x96xf32> to vector<8x32xf32>
    %882 = arith.mulf %871, %881 : vector<8x32xf32>
    %883 = arith.addf %880, %882 : vector<8x32xf32>
    %884 = math.tanh %883 : vector<8x32xf32>
    %cst_178 = arith.constant 1.000000e+00 : f32
    %885 = vector.broadcast %cst_178 : f32 to vector<8x32xf32>
    %886 = arith.subf %885, %879 : vector<8x32xf32>
    %887 = arith.mulf %886, %884 : vector<8x32xf32>
    %888 = arith.mulf %879, %829 : vector<8x32xf32>
    %889 = arith.addf %887, %888 : vector<8x32xf32>
    %890 = vector.extract_strided_slice %520 {offsets = [48, 0], sizes = [8, 96], strides = [1, 1]} : vector<64x96xf32> to vector<8x96xf32>
    %cst_179 = arith.constant dense<0.000000e+00> : vector<8x96xf32>
    %891 = tpu.matmul %859, %515, %cst_179 {dimension_numbers = #tpu.dot_dimension_numbers<[1], [0], [0], [1], [0, 0, 1, 1], [], []>} : vector<8x32xf32>, vector<32x96xf32>, vector<8x96xf32> -> vector<8x96xf32>
    %892 = vector.broadcast %517 : vector<1x96xf32> to vector<8x96xf32>
    %893 = arith.addf %891, %892 : vector<8x96xf32>
    %894 = vector.extract_strided_slice %890 {offsets = [0, 0], sizes = [8, 32], strides = [1, 1]} : vector<8x96xf32> to vector<8x32xf32>
    %895 = vector.extract_strided_slice %893 {offsets = [0, 0], sizes = [8, 32], strides = [1, 1]} : vector<8x96xf32> to vector<8x32xf32>
    %896 = arith.addf %894, %895 : vector<8x32xf32>
    %897 = arith.negf %896 : vector<8x32xf32>
    %898 = math.exp %897 : vector<8x32xf32>
    %cst_180 = arith.constant 1.000000e+00 : f32
    %899 = vector.broadcast %cst_180 : f32 to vector<8x32xf32>
    %900 = arith.addf %899, %898 : vector<8x32xf32>
    %901 = arith.divf %899, %900 : vector<8x32xf32>
    %902 = vector.extract_strided_slice %890 {offsets = [0, 32], sizes = [8, 32], strides = [1, 1]} : vector<8x96xf32> to vector<8x32xf32>
    %903 = vector.extract_strided_slice %893 {offsets = [0, 32], sizes = [8, 32], strides = [1, 1]} : vector<8x96xf32> to vector<8x32xf32>
    %904 = arith.addf %902, %903 : vector<8x32xf32>
    %905 = arith.negf %904 : vector<8x32xf32>
    %906 = math.exp %905 : vector<8x32xf32>
    %cst_181 = arith.constant 1.000000e+00 : f32
    %907 = vector.broadcast %cst_181 : f32 to vector<8x32xf32>
    %908 = arith.addf %907, %906 : vector<8x32xf32>
    %909 = arith.divf %907, %908 : vector<8x32xf32>
    %910 = vector.extract_strided_slice %890 {offsets = [0, 64], sizes = [8, 32], strides = [1, 1]} : vector<8x96xf32> to vector<8x32xf32>
    %911 = vector.extract_strided_slice %893 {offsets = [0, 64], sizes = [8, 32], strides = [1, 1]} : vector<8x96xf32> to vector<8x32xf32>
    %912 = arith.mulf %901, %911 : vector<8x32xf32>
    %913 = arith.addf %910, %912 : vector<8x32xf32>
    %914 = math.tanh %913 : vector<8x32xf32>
    %cst_182 = arith.constant 1.000000e+00 : f32
    %915 = vector.broadcast %cst_182 : f32 to vector<8x32xf32>
    %916 = arith.subf %915, %909 : vector<8x32xf32>
    %917 = arith.mulf %916, %914 : vector<8x32xf32>
    %918 = arith.mulf %909, %859 : vector<8x32xf32>
    %919 = arith.addf %917, %918 : vector<8x32xf32>
    %920 = vector.extract_strided_slice %527 {offsets = [8, 0], sizes = [8, 96], strides = [1, 1]} : vector<64x96xf32> to vector<8x96xf32>
    %cst_183 = arith.constant dense<0.000000e+00> : vector<8x96xf32>
    %921 = tpu.matmul %889, %522, %cst_183 {dimension_numbers = #tpu.dot_dimension_numbers<[1], [0], [0], [1], [0, 0, 1, 1], [], []>} : vector<8x32xf32>, vector<32x96xf32>, vector<8x96xf32> -> vector<8x96xf32>
    %922 = vector.broadcast %524 : vector<1x96xf32> to vector<8x96xf32>
    %923 = arith.addf %921, %922 : vector<8x96xf32>
    %924 = vector.extract_strided_slice %920 {offsets = [0, 0], sizes = [8, 32], strides = [1, 1]} : vector<8x96xf32> to vector<8x32xf32>
    %925 = vector.extract_strided_slice %923 {offsets = [0, 0], sizes = [8, 32], strides = [1, 1]} : vector<8x96xf32> to vector<8x32xf32>
    %926 = arith.addf %924, %925 : vector<8x32xf32>
    %927 = arith.negf %926 : vector<8x32xf32>
    %928 = math.exp %927 : vector<8x32xf32>
    %cst_184 = arith.constant 1.000000e+00 : f32
    %929 = vector.broadcast %cst_184 : f32 to vector<8x32xf32>
    %930 = arith.addf %929, %928 : vector<8x32xf32>
    %931 = arith.divf %929, %930 : vector<8x32xf32>
    %932 = vector.extract_strided_slice %920 {offsets = [0, 32], sizes = [8, 32], strides = [1, 1]} : vector<8x96xf32> to vector<8x32xf32>
    %933 = vector.extract_strided_slice %923 {offsets = [0, 32], sizes = [8, 32], strides = [1, 1]} : vector<8x96xf32> to vector<8x32xf32>
    %934 = arith.addf %932, %933 : vector<8x32xf32>
    %935 = arith.negf %934 : vector<8x32xf32>
    %936 = math.exp %935 : vector<8x32xf32>
    %cst_185 = arith.constant 1.000000e+00 : f32
    %937 = vector.broadcast %cst_185 : f32 to vector<8x32xf32>
    %938 = arith.addf %937, %936 : vector<8x32xf32>
    %939 = arith.divf %937, %938 : vector<8x32xf32>
    %940 = vector.extract_strided_slice %920 {offsets = [0, 64], sizes = [8, 32], strides = [1, 1]} : vector<8x96xf32> to vector<8x32xf32>
    %941 = vector.extract_strided_slice %923 {offsets = [0, 64], sizes = [8, 32], strides = [1, 1]} : vector<8x96xf32> to vector<8x32xf32>
    %942 = arith.mulf %931, %941 : vector<8x32xf32>
    %943 = arith.addf %940, %942 : vector<8x32xf32>
    %944 = math.tanh %943 : vector<8x32xf32>
    %cst_186 = arith.constant 1.000000e+00 : f32
    %945 = vector.broadcast %cst_186 : f32 to vector<8x32xf32>
    %946 = arith.subf %945, %939 : vector<8x32xf32>
    %947 = arith.mulf %946, %944 : vector<8x32xf32>
    %948 = arith.mulf %939, %889 : vector<8x32xf32>
    %949 = arith.addf %947, %948 : vector<8x32xf32>
    %950 = vector.extract_strided_slice %520 {offsets = [56, 0], sizes = [8, 96], strides = [1, 1]} : vector<64x96xf32> to vector<8x96xf32>
    %cst_187 = arith.constant dense<0.000000e+00> : vector<8x96xf32>
    %951 = tpu.matmul %919, %515, %cst_187 {dimension_numbers = #tpu.dot_dimension_numbers<[1], [0], [0], [1], [0, 0, 1, 1], [], []>} : vector<8x32xf32>, vector<32x96xf32>, vector<8x96xf32> -> vector<8x96xf32>
    %952 = vector.broadcast %517 : vector<1x96xf32> to vector<8x96xf32>
    %953 = arith.addf %951, %952 : vector<8x96xf32>
    %954 = vector.extract_strided_slice %950 {offsets = [0, 0], sizes = [8, 32], strides = [1, 1]} : vector<8x96xf32> to vector<8x32xf32>
    %955 = vector.extract_strided_slice %953 {offsets = [0, 0], sizes = [8, 32], strides = [1, 1]} : vector<8x96xf32> to vector<8x32xf32>
    %956 = arith.addf %954, %955 : vector<8x32xf32>
    %957 = arith.negf %956 : vector<8x32xf32>
    %958 = math.exp %957 : vector<8x32xf32>
    %cst_188 = arith.constant 1.000000e+00 : f32
    %959 = vector.broadcast %cst_188 : f32 to vector<8x32xf32>
    %960 = arith.addf %959, %958 : vector<8x32xf32>
    %961 = arith.divf %959, %960 : vector<8x32xf32>
    %962 = vector.extract_strided_slice %950 {offsets = [0, 32], sizes = [8, 32], strides = [1, 1]} : vector<8x96xf32> to vector<8x32xf32>
    %963 = vector.extract_strided_slice %953 {offsets = [0, 32], sizes = [8, 32], strides = [1, 1]} : vector<8x96xf32> to vector<8x32xf32>
    %964 = arith.addf %962, %963 : vector<8x32xf32>
    %965 = arith.negf %964 : vector<8x32xf32>
    %966 = math.exp %965 : vector<8x32xf32>
    %cst_189 = arith.constant 1.000000e+00 : f32
    %967 = vector.broadcast %cst_189 : f32 to vector<8x32xf32>
    %968 = arith.addf %967, %966 : vector<8x32xf32>
    %969 = arith.divf %967, %968 : vector<8x32xf32>
    %970 = vector.extract_strided_slice %950 {offsets = [0, 64], sizes = [8, 32], strides = [1, 1]} : vector<8x96xf32> to vector<8x32xf32>
    %971 = vector.extract_strided_slice %953 {offsets = [0, 64], sizes = [8, 32], strides = [1, 1]} : vector<8x96xf32> to vector<8x32xf32>
    %972 = arith.mulf %961, %971 : vector<8x32xf32>
    %973 = arith.addf %970, %972 : vector<8x32xf32>
    %974 = math.tanh %973 : vector<8x32xf32>
    %cst_190 = arith.constant 1.000000e+00 : f32
    %975 = vector.broadcast %cst_190 : f32 to vector<8x32xf32>
    %976 = arith.subf %975, %969 : vector<8x32xf32>
    %977 = arith.mulf %976, %974 : vector<8x32xf32>
    %978 = arith.mulf %969, %919 : vector<8x32xf32>
    %979 = arith.addf %977, %978 : vector<8x32xf32>
    %980 = vector.extract_strided_slice %527 {offsets = [0, 0], sizes = [8, 96], strides = [1, 1]} : vector<64x96xf32> to vector<8x96xf32>
    %cst_191 = arith.constant dense<0.000000e+00> : vector<8x96xf32>
    %981 = tpu.matmul %949, %522, %cst_191 {dimension_numbers = #tpu.dot_dimension_numbers<[1], [0], [0], [1], [0, 0, 1, 1], [], []>} : vector<8x32xf32>, vector<32x96xf32>, vector<8x96xf32> -> vector<8x96xf32>
    %982 = vector.broadcast %524 : vector<1x96xf32> to vector<8x96xf32>
    %983 = arith.addf %981, %982 : vector<8x96xf32>
    %984 = vector.extract_strided_slice %980 {offsets = [0, 0], sizes = [8, 32], strides = [1, 1]} : vector<8x96xf32> to vector<8x32xf32>
    %985 = vector.extract_strided_slice %983 {offsets = [0, 0], sizes = [8, 32], strides = [1, 1]} : vector<8x96xf32> to vector<8x32xf32>
    %986 = arith.addf %984, %985 : vector<8x32xf32>
    %987 = arith.negf %986 : vector<8x32xf32>
    %988 = math.exp %987 : vector<8x32xf32>
    %cst_192 = arith.constant 1.000000e+00 : f32
    %989 = vector.broadcast %cst_192 : f32 to vector<8x32xf32>
    %990 = arith.addf %989, %988 : vector<8x32xf32>
    %991 = arith.divf %989, %990 : vector<8x32xf32>
    %992 = vector.extract_strided_slice %980 {offsets = [0, 32], sizes = [8, 32], strides = [1, 1]} : vector<8x96xf32> to vector<8x32xf32>
    %993 = vector.extract_strided_slice %983 {offsets = [0, 32], sizes = [8, 32], strides = [1, 1]} : vector<8x96xf32> to vector<8x32xf32>
    %994 = arith.addf %992, %993 : vector<8x32xf32>
    %995 = arith.negf %994 : vector<8x32xf32>
    %996 = math.exp %995 : vector<8x32xf32>
    %cst_193 = arith.constant 1.000000e+00 : f32
    %997 = vector.broadcast %cst_193 : f32 to vector<8x32xf32>
    %998 = arith.addf %997, %996 : vector<8x32xf32>
    %999 = arith.divf %997, %998 : vector<8x32xf32>
    %1000 = vector.extract_strided_slice %980 {offsets = [0, 64], sizes = [8, 32], strides = [1, 1]} : vector<8x96xf32> to vector<8x32xf32>
    %1001 = vector.extract_strided_slice %983 {offsets = [0, 64], sizes = [8, 32], strides = [1, 1]} : vector<8x96xf32> to vector<8x32xf32>
    %1002 = arith.mulf %991, %1001 : vector<8x32xf32>
    %1003 = arith.addf %1000, %1002 : vector<8x32xf32>
    %1004 = math.tanh %1003 : vector<8x32xf32>
    %cst_194 = arith.constant 1.000000e+00 : f32
    %1005 = vector.broadcast %cst_194 : f32 to vector<8x32xf32>
    %1006 = arith.subf %1005, %999 : vector<8x32xf32>
    %1007 = arith.mulf %1006, %1004 : vector<8x32xf32>
    %1008 = arith.mulf %999, %949 : vector<8x32xf32>
    %1009 = arith.addf %1007, %1008 : vector<8x32xf32>
    %1010 = tpu.concatenate %1009, %979 in 1 : vector<8x32xf32>, vector<8x32xf32> -> vector<8x64xf32>
    %c0_195 = arith.constant 0 : index
    %c0_196 = arith.constant 0 : index
    %1011 = vector.load %arg19[%c0_195, %c0_196] : memref<8x64xf32, #tpu.memory_space<vmem>>, vector<8x64xf32>
    %1012 = arith.mulf %1010, %1011 : vector<8x64xf32>
    %c0_197 = arith.constant 0 : index
    %c0_198 = arith.constant 0 : index
    %1013 = vector.load %arg17[%c0_197, %c0_198] : memref<64x128xf32, #tpu.memory_space<vmem>>, vector<64x128xf32>
    %cst_199 = arith.constant dense<0.000000e+00> : vector<8x128xf32>
    %1014 = tpu.matmul %1012, %1013, %cst_199 {dimension_numbers = #tpu.dot_dimension_numbers<[1], [0], [0], [1], [0, 0, 1, 1], [], []>} : vector<8x64xf32>, vector<64x128xf32>, vector<8x128xf32> -> vector<8x128xf32>
    %c0_200 = arith.constant 0 : index
    %c0_201 = arith.constant 0 : index
    %1015 = vector.load %arg18[%c0_200, %c0_201] : memref<1x128xf32, #tpu.memory_space<vmem>>, vector<1x128xf32>
    %1016 = vector.broadcast %1015 : vector<1x128xf32> to vector<8x128xf32>
    %1017 = arith.addf %1014, %1016 : vector<8x128xf32>
    %c0_202 = arith.constant 0 : index
    %c0_203 = arith.constant 0 : index
    %1018 = vector.load %arg20[%c0_202, %c0_203] : memref<8x128xf32, #tpu.memory_space<vmem>>, vector<8x128xf32>
    tpu.vector_store %arg20[%c0_202, %c0_203], %1017 {strides = array<i32>} : memref<8x128xf32, #tpu.memory_space<vmem>>, vector<8x128xf32>,
    return
  }
}

</mosaic_0001>

<bundles_post_ra>
// kernel: tpu_custom_call.1
= control target key start
LH: loop header
LB: loop body
LE: loop exit
PB: predicated region body
PF: predicated region fallthrough
CT: control target
= control target key end

     0   :  { %s6396_s0 = inlined_call_operand.vmem [shape: f32[64,32], index: 0, kind: input, shape index: {}]   ;;  %s6397_s1 = inlined_call_operand.vmem [shape: f32[32,96], index: 1, kind: input, shape index: {}]   ;;  %s6398_s2 = inlined_call_operand.hbm [shape: f32[32,96], index: 2, kind: input, shape index: {}]   ;;  %s6399_s3 = inlined_call_operand.vmem [shape: f32[1,96], index: 3, kind: input, shape index: {}]   ;;  %s6400_s4 = inlined_call_operand.vmem [shape: f32[1,96], index: 4, kind: input, shape index: {}]   ;;  %s6401_s5 = inlined_call_operand.hbm [shape: f32[32,96], index: 5, kind: input, shape index: {}]   ;;  %s6402_s6 = inlined_call_operand.hbm [shape: f32[32,96], index: 6, kind: input, shape index: {}]   ;;  %s6403_s7 = inlined_call_operand.vmem [shape: f32[1,96], index: 7, kind: input, shape index: {}]   ;;  %s6404_s8 = inlined_call_operand.vmem [shape: f32[1,96], index: 8, kind: input, shape index: {}]   ;;  %s6405_s9 = inlined_call_operand.vmem [shape: f32[64,96], index: 9, kind: input, shape index: {}]   ;;  %s6406_s10 = inlined_call_operand.hbm [shape: f32[32,96], index: 10, kind: input, shape index: {}]   ;;  %s6407_s11 = inlined_call_operand.vmem [shape: f32[1,96], index: 11, kind: input, shape index: {}]   ;;  %s6408_s12 = inlined_call_operand.vmem [shape: f32[1,96], index: 12, kind: input, shape index: {}]   ;;  %s6409_s13 = inlined_call_operand.hbm [shape: f32[64,96], index: 13, kind: input, shape index: {}]   ;;  %s6410_s14 = inlined_call_operand.hbm [shape: f32[32,96], index: 14, kind: input, shape index: {}]   ;;  %s6411_s15 = inlined_call_operand.vmem [shape: f32[1,96], index: 15, kind: input, shape index: {}]   ;;  %s6412_s16 = inlined_call_operand.vmem [shape: f32[1,96], index: 16, kind: input, shape index: {}]   ;;  %s6413_s17 = inlined_call_operand.hbm [shape: f32[64,128], index: 17, kind: input, shape index: {}]   ;;  %s6414_s18 = inlined_call_operand.vmem [shape: f32[1,128], index: 18, kind: input, shape index: {}]   ;;  %s6415_s19 = inlined_call_operand.vmem [shape: f32[8,64], index: 19, kind: input, shape index: {}]   ;;  %s6416_s20 = inlined_call_operand.hbm [shape: f32[8,128], index: 20, kind: output, shape index: {}]  }
   0x1   :  { %6420 = sst [smem:[#allocation21_spill]] %s6396_s0 }
   0x2   :  { %6421 = sst [smem:[#allocation22_spill]] %s6397_s1 }
   0x3   :  { %6422 = sst [smem:[#allocation23_spill]] %s6398_s2 }
   0x4   :  { %6423 = sst [smem:[#allocation24_spill]] %s6399_s3 }
   0x5   :  { %6424 = sst [smem:[#allocation25_spill]] %s6400_s4 }
   0x6   :  { %25 = vsyncpa [#allocation4], 0 }
   0x7   :  { %26 = vsyncpa [#allocation7], 0 }
   0x8   :  { %27 = vsyncpa [#allocation10], 0 }
   0x9   :  { %28 = vsyncpa [#allocation13], 0 }
   0xa   :  { %29 = vsyncpa [#allocation5], 0  ;;  %s5287_s1 = smov [#allocation6]   ;;  %s5288_s23 = smov [#allocation9]  }
   0xb   :  { %s55_s22 = sshll.u32 %s5287_s1, 4  ;;  %s85_s24 = sshll.u32 %s5288_s23, 4  ;;  %s56_s22 = int_to_ptr.vmem [resolvable:$true] %s55_s22  ;;  %s86_s24 = int_to_ptr.vmem [resolvable:$true] %s85_s24 }
   0xc   :  { %s5125_s2 = scalar_lea.vmem %s56_s22, 512  ;;  %p5130_p1 = scmp.lt.s32.totalorder %s56_s22, %s56_s22 }
   0xd   :  { %p5126_p0 = scmp.ne.s32.totalorder %s56_s22, %s5125_s2  ;;  %p5131_p2 = scmp.lt.s32.totalorder %s5125_s2, %s5125_s2 }
   0xf   :  { %p5132_p3 = por %p5131_p2, %p5130_p1 }
  0x11   :  { %p5133_p4 = pnand %p5132_p3, %p5126_p0 }
  0x13   :  { %5136 = shalt.err (!%p5133_p4)
}
  0x14   :  { %s5289_s25 = smov 128   ;;  %s5290_s3 = smov 8  }
  0x15   :  { %61 = dma.hbm_to_vmem [thread:$0]  %s6401_s5, 512, %s56_s22, [#allocation7], %s5289_s25, %s5289_s25, %s5290_s3  }
  0x16   :  { %s5145_s28 = scalar_lea.vmem %s86_s24, 512  ;;  %p5150_p6 = scmp.lt.s32.totalorder %s86_s24, %s86_s24 }
  0x17   :  { %p5146_p5 = scmp.ne.s32.totalorder %s86_s24, %s5145_s28  ;;  %p5151_p7 = scmp.lt.s32.totalorder %s5145_s28, %s5145_s28 }
  0x19   :  { %p5152_p8 = por %p5151_p7, %p5150_p6 }
  0x1b   :  { %p5153_p9 = pnand %p5152_p8, %p5146_p5 }
  0x1d   :  { %5156 = shalt.err (!%p5153_p9)
}
  0x1e   :  { %91 = dma.hbm_to_vmem [thread:$0]  %s6406_s10, 512, %s86_s24, [#allocation10], %s5289_s25, %s5289_s25, %s5290_s3  }
  0x1f   :  { %s5291_s30 = smov [#allocation12]   ;;  %s5292_s21 = smov [#allocation3]  }
  0x20   :  { %s113_s0 = sshll.u32 %s5291_s30, 4  ;;  %s39_s1 = sshll.u32 %s5292_s21, 4  ;;  %s114_s0 = int_to_ptr.vmem [resolvable:$true] %s113_s0  ;;  %s40_s1 = int_to_ptr.vmem [resolvable:$true] %s39_s1 }
  0x21   :  { %s5165_s5 = scalar_lea.vmem %s114_s0, 512  ;;  %p5170_p11 = scmp.lt.s32.totalorder %s114_s0, %s114_s0 }
  0x22   :  { %p5166_p10 = scmp.ne.s32.totalorder %s114_s0, %s5165_s5  ;;  %p5171_p12 = scmp.lt.s32.totalorder %s5165_s5, %s5165_s5 }
  0x24   :  { %p5172_p13 = por %p5171_p12, %p5170_p11 }
  0x26   :  { %p5173_p0 = pnand %p5172_p13, %p5166_p10 }
  0x28   :  { %5176 = shalt.err (!%p5173_p0)
}
  0x29   :  { %119 = dma.hbm_to_vmem [thread:$0]  %s6410_s14, 512, %s114_s0, [#allocation13], %s5289_s25, %s5289_s25, %s5290_s3  }
  0x2a   :  { %s5185_s10 = scalar_lea.vmem %s40_s1, 512  ;;  %p5190_p2 = scmp.lt.s32.totalorder %s40_s1, %s40_s1 }
  0x2b   :  { %p5186_p1 = scmp.ne.s32.totalorder %s40_s1, %s5185_s10  ;;  %p5191_p3 = scmp.lt.s32.totalorder %s5185_s10, %s5185_s10 }
  0x2d   :  { %p5192_p4 = por %p5191_p3, %p5190_p2 }
  0x2f   :  { %p5193_p5 = pnand %p5192_p4, %p5186_p1 }
  0x31   :  { %5196 = shalt.err (!%p5193_p5)
}
  0x32   :  { %s6425_s26 = sld [smem:[#allocation23_spill]]  ;;  %s5293_s27 = smov [#allocation8]  }
  0x33   :  { %s67_s28 = sshll.u32 %s5293_s27, 4  ;;  %s5294_s4 = smov [#allocation11]   ;;  %s68_s28 = int_to_ptr.vmem [resolvable:$true] %s67_s28 }
  0x34   :  { %s101_s29 = sshll.u32 %s5294_s4, 4  ;;  %s5205_s14 = scalar_lea.vmem %s68_s28, 512  ;;  %s102_s29 = int_to_ptr.vmem [resolvable:$true] %s101_s29 }
  0x35   :  { %p5206_p6 = scmp.ne.s32.totalorder %s68_s28, %s5205_s14  ;;  %p5210_p7 = scmp.lt.s32.totalorder %s68_s28, %s68_s28 }
  0x36   :  { %p5211_p8 = scmp.lt.s32.totalorder %s5205_s14, %s5205_s14 }
  0x38   :  { %45 = dma.hbm_to_vmem [thread:$0]  %s6425_s26, 512, %s40_s1, [#allocation4], %s5289_s25, %s5289_s25, %s5290_s3  }
  0x39   :  { %p5212_p9 = por %p5211_p8, %p5210_p7 }
  0x3b   :  { %p5213_p10 = pnand %p5212_p9, %p5206_p6 }
  0x3d   :  { %5216 = shalt.err (!%p5213_p10)
}
  0x3e   :  { %73 = dma.hbm_to_vmem [thread:$0]  %s6402_s6, 512, %s68_s28, [#allocation7], %s5289_s25, %s5289_s25, %s5290_s3  }
  0x3f   :  { %s5225_s21 = scalar_lea.vmem %s102_s29, 1024  ;;  %p5230_p12 = scmp.lt.s32.totalorder %s102_s29, %s102_s29 }
  0x40   :  { %p5226_p11 = scmp.ne.s32.totalorder %s102_s29, %s5225_s21  ;;  %p5231_p13 = scmp.lt.s32.totalorder %s5225_s21, %s5225_s21 }
  0x42   :  { %p5232_p0 = por %p5231_p13, %p5230_p12 }
  0x44   :  { %p5233_p1 = pnand %p5232_p0, %p5226_p11 }
  0x46   :  { %5236 = shalt.err (!%p5233_p1)
}
  0x47   :  { %107 = dma.hbm_to_vmem [thread:$0]  %s6409_s13, 1024, %s102_s29, [#allocation10], %s5289_s25, %s5289_s25, %s5290_s3  }
  0x48   :  { %s5295_s22 = smov [#allocation14]  }
  0x49   :  { %s129_s23 = sshll.u32 %s5295_s22, 4  ;;  %s130_s23 = int_to_ptr.vmem [resolvable:$true] %s129_s23 }
  0x4a   :  { %s5245_s10 = scalar_lea.vmem %s130_s23, 1024  ;;  %p5250_p3 = scmp.lt.s32.totalorder %s130_s23, %s130_s23 }
  0x4b   :  { %p5246_p2 = scmp.ne.s32.totalorder %s130_s23, %s5245_s10  ;;  %p5251_p4 = scmp.lt.s32.totalorder %s5245_s10, %s5245_s10 }
  0x4d   :  { %p5252_p5 = por %p5251_p4, %p5250_p3 }
  0x4f   :  { %p5253_p6 = pnand %p5252_p5, %p5246_p2 }
  0x51   :  { %5256 = shalt.err (!%p5253_p6)
}
  0x52   :  { %135 = dma.hbm_to_vmem [thread:$0]  %s6413_s17, 1024, %s130_s23, [#allocation13], %s5289_s25, %s5289_s25, %s5290_s3  }
  0x53   :  { %5277 = dma.done.wait [#allocation4], 512  }
  0x54   :  { %5278 = vsyncadd [#allocation4], 4294966784 }
  0x55   :  { %5279 = dma.done.wait [#allocation7], 1024  }
  0x56   :  { %5280 = vsyncadd [#allocation7], 4294966272 }
  0x57   :  { %5281 = dma.done.wait [#allocation10], 1536  }
  0x58   :  { %5282 = vsyncadd [#allocation10], 4294965760 }
  0x59   :  { %5283 = dma.done.wait [#allocation13], 1536  }
  0x5a   :  { %5284 = vsyncadd [#allocation13], 4294965760  ;;  %s6426_s26 = sld [smem:[#allocation22_spill]]  ;;  %vm185_vm0 = vcmask 261120   ;;  %v318_v8 = vld [vmem:[#allocation6 + $0x18] sm:$0xff]  ;;  %v317_v10 = vld [vmem:[#allocation6 + $0x10] sm:$0xff] }
  0x5b   :  { %s6427_s30 = sld [smem:[#allocation21_spill]]  ;;  %v5476_v9 = vld [vmem:[#allocation3 + $0x18] sm:$0xff]  ;;  %v5296_v11 = vmov 0.0   ;;  %v5489_v14 = vld [vmem:[#allocation3 + $0x10] sm:$0xff]  ;;  %v316_v17 = vld [vmem:[#allocation6 + $0x8] sm:$0xff]  ;;  %vm5297_vm1 = vmmov 0  }
  0x5c   :  { %v5501_v18 = vld [vmem:[#allocation3 + $0x8] sm:$0xff]  ;;  %v315_v19 = vld [vmem:[#allocation6] sm:$0xff]  ;;  %v5514_v21 = vld [vmem:[#allocation8 + $0x18] sm:$0xff]  ;;  %s6428_s3 = sld [smem:[#allocation24_spill]]  ;;  %s5298_s21 = smov 64   ;;  %vm648_vm2 = vcmask 523520  }
  0x5d   :  { %v5507_v20 = vld [vmem:[#allocation3] sm:$0xff]  ;;  %v5521_v22 = vld [vmem:[#allocation8 + $0x10] sm:$0xff]  ;;  %v5527_v23 = vld [vmem:[#allocation8 + $0x8] sm:$0xff]  ;;  %s6429_s0 = sld [smem:[#allocation25_spill]]  ;;  %vm2113_vm3 = vcmask 523264  }
  0x5e   :  { %v5533_v24 = vld [vmem:[#allocation8] sm:$0xff] }
  0x5f   :  { %v4109_v41 = vld [vmem:[%s6403_s7] ss:$0 sm:$0xff] }
  0x60   :  { %v172_v0 = vld [vmem:[%s6426_s26 + $0x18] sm:$0xff]  ;;  %v171_v1 = vld [vmem:[%s6426_s26 + $0x10] sm:$0xff]  ;;  %v170_v2 = vld [vmem:[%s6426_s26 + $0x8] sm:$0xff] }
  0x61   :  { %4427 = vmatprep.subr.mxu0 %v172_v0  ;;  %4894 = vmatprep.subr.mxu1 %v172_v0  ;;  %v169_v3 = vld [vmem:[%s6426_s26] sm:$0xff]  ;;  %v162_v6 = vld [vmem:[%s6427_s30 + $0x8] sm:$0xff]  ;;  %v163_v12 = vld [vmem:[%s6427_s30 + $0x10] sm:$0xff] }
  0x62   :  { %4428 = vmatpush3.msra.mxu0 %v172_v0  ;;  %4898 = vmatpush3.msra.mxu1 %v172_v0  ;;  %v161_v4 = vld [vmem:[%s6427_s30] sm:$0xff]  ;;  %v5472_v7 = vld [vmem:[%s6427_s30 + $0x28] sm:$0xff]  ;;  %v167_v13 = vld [vmem:[%s6427_s30 + $0x30] sm:$0xff] }
  0x63   :  { %4429 = vmatprep.subr.mxu0 %v171_v1  ;;  %4895 = vmatprep.subr.mxu1 %v171_v1  ;;  %v165_v5 = vld [vmem:[%s6427_s30 + $0x20] sm:$0xff]  ;;  %v164_v15 = vld [vmem:[%s6427_s30 + $0x18] sm:$0xff] }
  0x64   :  { %4430 = vmatpush3.msra.mxu0 %v171_v1  ;;  %4899 = vmatpush3.msra.mxu1 %v171_v1  ;;  %v168_v16 = vld [vmem:[%s6427_s30 + $0x38] sm:$0xff]  ;;  %v4100_v25 = vld [vmem:[%s6428_s3] ss:$0 sm:$0xff] }
  0x65   :  { %4431 = vmatprep.subr.mxu0 %v170_v2  ;;  %4896 = vmatprep.subr.mxu1 %v170_v2  ;;  %v5587_v42 = vld [vmem:[%s6429_s0] ss:$0 sm:$0xff] }
  0x66   :  { %4432 = vmatpush3.msra.mxu0 %v170_v2  ;;  %4900 = vmatpush3.msra.mxu1 %v170_v2  ;;  %v5606_v60 = vld [vmem:[%s6404_s8] ss:$0 sm:$0xff]  ;;  %s5299_s8 = smov 96  }
  0x67   :  { %4433 = vmatprep.subr.mxu0 %v169_v3  ;;  %4897 = vmatprep.subr.mxu1 %v169_v3 }
  0x68   :  { %4434 = vmatpush3.msra.mxu0 %v169_v3  ;;  %4901 = vmatpush3.msra.mxu1 %v169_v3 }
  0x69   :  { %4435 = vmatprep.mubr.msk.f32.mxu0 %vm185_vm0, %v161_v4  ;;  %4441 = vmatprep.mubr.msk.f32.mxu1 %vm185_vm0, %v165_v5 }
  0x6a   :  { %4436 = vmatmul.mubr.msk.f32.vlgmr.msra.gmra.mxu0 %vm185_vm0, %v162_v6  ;;  %4442 = vmatmul.mubr.msk.f32.vlgmr.msra.gmra.mxu1 %vm185_vm0, %v5472_v7 }
  0x6b   :  { %4447 = vmatprep.subr.mxu1 %v318_v8  ;;  %4467 = vmatprep.subr.mxu0 %v5296_v11 }
  0x6c   :  { %4448 = vmatpush3.msra.mxu1 %v318_v8  ;;  %4468 = vmatpush3.msra.mxu0 %v5476_v9 }
  0x6d   :  { %4449 = vmatprep.subr.mxu1 %v317_v10  ;;  %4469 = vmatprep.subr.mxu0 %v5296_v11 }
  0x6e   :  { %4438 = vmatprep.mubr.msk.f32.mxu0 %vm185_vm0, %v163_v12  ;;  %4444 = vmatprep.mubr.msk.f32.mxu1 %vm185_vm0, %v167_v13 }
  0x6f   :  { %4450 = vmatpush3.msra.mxu1 %v317_v10  ;;  %4470 = vmatpush3.msra.mxu0 %v5489_v14 }
  0x70   :  { %4439 = vmatmul.mubr.msk.f32.gmra.mxu0 %vm185_vm0, %v164_v15  ;;  %4445 = vmatmul.mubr.msk.f32.gmra.mxu1 %vm185_vm0, %v168_v16 }
  0x71   :  { %4451 = vmatprep.subr.mxu1 %v316_v17  ;;  %4471 = vmatprep.subr.mxu0 %v5296_v11 }
  0x72   :  { %4452 = vmatpush3.msra.mxu1 %v316_v17  ;;  %4472 = vmatpush3.msra.mxu0 %v5501_v18 }
  0x73   :  { %4453 = vmatprep.subr.mxu1 %v315_v19  ;;  %4473 = vmatprep.subr.mxu0 %v5296_v11 }
  0x74   :  { %4454 = vmatpush3.msra.mxu1 %v315_v19  ;;  %4455 = vmatprep.mubr.msk.f32.mxu1 %vm185_vm0, %v161_v4 }
  0x75   :  { %4474 = vmatpush3.msra.mxu0 %v5507_v20  ;;  %4475 = vmatprep.mubr.msk.f32.mxu0 %vm5297_vm1, %v5296_v11 }
  0x76   :  { %4456 = vmatmul.mubr.msk.f32.vlgmr.msra.gmra.mxu1 %vm185_vm0, %v162_v6  ;;  %4476 = vmatmul.mubr.f32.vlgmr.msra.gmra.mxu0 %v5296_v11 }
  0x77   :  { %4458 = vmatprep.mubr.msk.f32.mxu1 %vm185_vm0, %v163_v12  ;;  %4478 = vmatprep.subr.mxu1 %v5296_v11 }
  0x78   :  { %4479 = vmatpush3.msra.mxu1 %v5514_v21  ;;  %4489 = vmatprep.subr.mxu0 %v5296_v11 }
  0x79   :  { %4480 = vmatprep.subr.mxu1 %v5296_v11  ;;  %4490 = vmatpush3.msra.mxu0 %v5476_v9 }
  0x7a   :  { %4459 = vmatmul.mubr.msk.f32.gmra.mxu1 %vm185_vm0, %v164_v15  ;;  %4491 = vmatprep.subr.mxu0 %v5296_v11 }
  0x7b   :  { %4461 = vmatprep.mubr.msk.f32.mxu1 %vm185_vm0, %v165_v5  ;;  %4481 = vmatpush3.msra.mxu1 %v5521_v22 }
  0x7c   :  { %4482 = vmatprep.subr.mxu1 %v5296_v11  ;;  %4492 = vmatpush3.msra.mxu0 %v5489_v14 }
  0x7d   :  { %4483 = vmatpush3.msra.mxu1 %v5527_v23  ;;  %4493 = vmatprep.subr.mxu0 %v5296_v11 }
  0x7e   :  { %4462 = vmatmul.mubr.msk.f32.gmra.mxu1 %vm185_vm0, %v5472_v7  ;;  %4484 = vmatprep.subr.mxu1 %v5296_v11 }
  0x7f   :  { %4464 = vmatprep.mubr.msk.f32.mxu1 %vm185_vm0, %v167_v13  ;;  %4485 = vmatpush3.msra.mxu1 %v5533_v24 }
  0x80   :  { %4494 = vmatpush3.msra.mxu0 %v5501_v18  ;;  %4497 = vmatprep.mubr.msk.f32.mxu0 %vm5297_vm1, %v5296_v11 }
  0x81   :  { %4495 = vmatprep.subr.mxu0 %v5296_v11  ;;  %4500 = vmatprep.subr.mxu1 %v5296_v11 }
  0x82   :  { %4465 = vmatmul.mubr.msk.f32.gmra.mxu1 %vm185_vm0, %v168_v16  ;;  %4496 = vmatpush3.msra.mxu0 %v5507_v20 }
  0x83   :  { %4486 = vmatprep.mubr.msk.f32.mxu1 %vm5297_vm1, %v5296_v11  ;;  %4511 = vmatprep.subr.mxu0 %v5296_v11 }
  0x86   :  { %4487 = vmatmul.mubr.f32.vlgmr.msra.gmra.mxu1 %v5296_v11 }
  0x87   :  { %4501 = vmatpush3.msra.mxu1 %v5514_v21  ;;  %4508 = vmatprep.mubr.msk.f32.mxu1 %vm5297_vm1, %v5296_v11 }
  0x88   :  { %4502 = vmatprep.subr.mxu1 %v5296_v11 }
  0x89   :  { %4503 = vmatpush3.msra.mxu1 %v5521_v22 }
  0x8a   :  { %4504 = vmatprep.subr.mxu1 %v5296_v11 }
  0x8b   :  { %4505 = vmatpush3.msra.mxu1 %v5527_v23 }
  0x8c   :  { %4506 = vmatprep.subr.mxu1 %v5296_v11 }
  0x8d   :  { %4507 = vmatpush3.msra.mxu1 %v5533_v24 }
  0x8e   :  { %4522 = vmatprep.subr.mxu1 %v5296_v11 }
 0x12a   :  { %v4437_v26 = vpop.f32.mrf.mxu0  ;;  %v4443_v27 = vpop.f32.mrf.mxu1 }
 0x12b   :  { %v5567_v28 = vadd.f32 %v4437_v26, %v4100_v25  ;;  %v5569_v29 = vadd.f32 %v4443_v27, %v4100_v25 }
 0x12c   :  { %v276_v30 = vpop.f32.mrf.mxu0  ;;  %v296_v31 = vpop.f32.mrf.mxu1 }
 0x12d   :  { %v5571_v32 = vadd.f32 %v4100_v25, %v296_v31  ;;  %v277_v1 = vadd.f32 %v4100_v25, %v276_v30 }
 0x130   :  { %v4440_v33 = vpop.f32.mrf.mxu0  ;;  %v4446_v34 = vpop.f32.mrf.mxu1 }
 0x131   :  { %v5573_v35 = vadd.f32 %v4440_v33, %v4100_v25  ;;  %v5575_v36 = vadd.f32 %v4446_v34, %v4100_v25 }
 0x132   :  { %v286_v37 = vpop.f32.mrf.mxu0  ;;  %v306_v38 = vpop.f32.mrf.mxu1 }
 0x133   :  { %v5577_v39 = vadd.f32 %v4100_v25, %v286_v37  ;;  %v5579_v40 = vadd.f32 %v4100_v25, %v306_v38 }
 0x136   :  { %v4457_v43 = vpop.f32.mrf.mxu1  ;;  %v511_v44 = vpop.f32.mrf.mxu0 }
 0x137   :  { %v5589_v45 = vadd.f32 %v4457_v43, %v4109_v41  ;;  %v512_v46 = vadd.f32 %v5587_v42, %v511_v44 }
 0x138   :  { %v397_v47 = vpop.f32.mrf.mxu1  ;;  %v4477_v48 = vpop.f32.mrf.mxu0 }
 0x139   :  { %v5592_v49 = vadd.f32 %v4109_v41, %v397_v47  ;;  %523 = vrot.lane.b32.xlu0 %v512_v46, %s5298_s21  ;;  %v515_v2 = vadd.f32 %v512_v46, %v277_v1 }
 0x13a   :  { %v4460_v50 = vpop.f32.mrf.mxu1 }
 0x13b   :  { %v5595_v51 = vadd.f32 %v4460_v50, %v4109_v41  ;;  %v4119_v3 = vmul.f32 -1.442695, %v515_v2 }
 0x13c   :  { %v407_v52 = vpop.f32.mrf.mxu1 }
 0x13d   :  { %v5597_v53 = vadd.f32 %v4109_v41, %v407_v52  ;;  %4916 = vpow2.f32 %v4119_v3 }
 0x13e   :  { %v4463_v54 = vpop.f32.mrf.mxu1 }
 0x13f   :  { %v5599_v55 = vadd.f32 %v4463_v54, %v4109_v41 }
 0x140   :  { %v417_v56 = vpop.f32.mrf.mxu1 }
 0x141   :  { %v5601_v57 = vadd.f32 %v4109_v41, %v417_v56 }
 0x142   :  { %v4466_v58 = vpop.f32.mrf.mxu1 }
 0x143   :  { %v433_v4 = vadd.f32 %v4466_v58, %v4109_v41 }
 0x144   :  { %v427_v59 = vpop.f32.mrf.mxu1 }
 0x145   :  { %v5608_v61 = vadd.f32 %v4109_v41, %v427_v59 }
 0x146   :  { %v618_v62 = vpop.f32.mrf.mxu1 }
 0x147   :  { %v619_v63 = vadd.f32 %v5606_v60, %v618_v62 }
 0x148   :  { %v4488_v0 = vpop.f32.mrf.mxu1 }
 0x149   :  { %630 = vrot.lane.b32.xlu0 %v619_v63, %s5298_s21  ;;  %v622_v5 = vadd.f32 %v619_v63, %v433_v4 }
 0x14a   :  { %v4917_v7 = vpop.eup %4916 }
 0x14b   :  { %v4121_v6 = vmul.f32 -1.442695, %v622_v5  ;;  %v519_v8 = vadd.f32 1.0, %v4917_v7 }
 0x14d   :  { %4918 = vpow2.f32 %v4121_v6 }
 0x14e   :  { %4920 = vrcp.f32 %v519_v8 }
 0x15a   :  { %v4919_v10 = vpop.eup %4918 }
 0x15b   :  { %v626_v12 = vadd.f32 1.0, %v4919_v10  ;;  %v4921_v13 = vpop.eup %4920 }
 0x15c   :  { %v533_v37 = vsub.f32 1.0, %v4921_v13  ;;  %v539_v41 = vmul.f32 0.0, %v4921_v13 }
 0x15d   :  { %4922 = vrcp.f32 %v626_v12 }
 0x16a   :  { %v4923_v17 = vpop.eup %4922 }
 0x16b   :  { %v640_v46 = vsub.f32 1.0, %v4923_v17  ;;  %v646_v48 = vmul.f32 0.0, %v4923_v17 }
 0x1ab   :  { %v524_v15 = vpop.permute.xlu0 %523 }
 0x1ac   :  { %v526_v16 = vmul.f32 %v4921_v13, %v524_v15 }
 0x1ae   :  { %528 = vrot.lane.b32.xlu1 %v526_v16, %s5298_s21 }
 0x1bb   :  { %v631_v19 = vpop.permute.xlu0 %630 }
 0x1bc   :  { %v633_v25 = vmul.f32 %v4923_v17, %v631_v19 }
 0x1be   :  { %635 = vrot.lane.b32.xlu1 %v633_v25, %s5298_s21 }
 0x220   :  { %v529_v26 = vpop.permute.xlu1 %528 }
 0x221   :  { %v531_v27 = vadd.f32 %v529_v26, %v277_v1 }
 0x223   :  { %4924 = vtanh.f32 %v531_v27 }
 0x230   :  { %v4925_v30 = vpop.eup %4924  ;;  %v636_v31 = vpop.permute.xlu1 %635 }
 0x231   :  { %v638_v33 = vadd.f32 %v636_v31, %v433_v4  ;;  %535 = vrot.lane.b32.xlu0 %v4925_v30, %s5299_s8 }
 0x233   :  { %4926 = vtanh.f32 %v638_v33 }
 0x240   :  { %v4927_v34 = vpop.eup %4926 }
 0x241   :  { %642 = vrot.lane.b32.xlu1 %v4927_v34, %s5299_s8 }
 0x2a3   :  { %v536_v38 = vpop.permute.xlu0 %535 }
 0x2a4   :  { %v538_v43 = vmul.f32 %v536_v38, %v533_v37 }
 0x2a6   :  { %v5616_v44 = vadd.f32 %v539_v41, %v538_v43 }
 0x2a8   :  { %542 = vrot.lane.b32.xlu0 %v5616_v44, %s5299_s8 }
 0x2b3   :  { %v643_v47 = vpop.permute.xlu1 %642 }
 0x2b4   :  { %v645_v50 = vmul.f32 %v643_v47, %v640_v46 }
 0x2b6   :  { %v5620_v52 = vadd.f32 %v646_v48, %v645_v50 }
 0x2b8   :  { %754 = vrot.lane.b32.xlu1 %v5620_v52, %s5299_s8  ;;  %649 = vst.msk [vmem:[#allocation2 + $0x38] sm:$0xff] %vm648_vm2, %v5620_v52 }
 0x31a   :  { %v543_v54 = vpop.permute.xlu0 %542 }
 0x31b   :  { %545 = vst.msk [vmem:[#allocation2] sm:$0xff] %vm185_vm0, %v543_v54  ;;  %4498 = vmatmul.mubr.msk.f32.vlgmr.msra.gmra.mxu0 %vm185_vm0, %v543_v54 }
 0x31c   :  { %4512 = vmatpush3.msra.mxu0 %v5476_v9  ;;  %4519 = vmatprep.mubr.msk.f32.mxu0 %vm5297_vm1, %v5296_v11 }
 0x31d   :  { %4513 = vmatprep.subr.mxu0 %v5296_v11 }
 0x31e   :  { %4514 = vmatpush3.msra.mxu0 %v5489_v14 }
 0x31f   :  { %4515 = vmatprep.subr.mxu0 %v5296_v11 }
 0x320   :  { %4516 = vmatpush3.msra.mxu0 %v5501_v18 }
 0x321   :  { %4517 = vmatprep.subr.mxu0 %v5296_v11 }
 0x322   :  { %4518 = vmatpush3.msra.mxu0 %v5507_v20 }
 0x323   :  { %4533 = vmatprep.subr.mxu0 %v5296_v11 }
 0x32a   :  { %v755_v56 = vpop.permute.xlu1 %754 }
 0x32b   :  { %4509 = vmatmul.mubr.msk.f32.vlgmr.msra.gmra.mxu1 %vm185_vm0, %v755_v56 }
 0x32c   :  { %4523 = vmatpush3.msra.mxu1 %v5514_v21  ;;  %4530 = vmatprep.mubr.msk.f32.mxu1 %vm5297_vm1, %v5296_v11 }
 0x32d   :  { %4524 = vmatprep.subr.mxu1 %v5296_v11 }
 0x32e   :  { %4525 = vmatpush3.msra.mxu1 %v5521_v22 }
 0x32f   :  { %4526 = vmatprep.subr.mxu1 %v5296_v11 }
 0x330   :  { %4527 = vmatpush3.msra.mxu1 %v5527_v23 }
 0x331   :  { %4528 = vmatprep.subr.mxu1 %v5296_v11 }
 0x332   :  { %4529 = vmatpush3.msra.mxu1 %v5533_v24 }
 0x333   :  { %4544 = vmatprep.subr.mxu1 %v5296_v11 }
 0x3db   :  { %v718_v58 = vpop.f32.mrf.mxu0 }
 0x3dc   :  { %v719_v59 = vadd.f32 %v5587_v42, %v718_v58 }
 0x3dd   :  { %v4499_v62 = vpop.f32.mrf.mxu0 }
 0x3de   :  { %730 = vrot.lane.b32.xlu0 %v719_v59, %s5298_s21  ;;  %v722_v2 = vadd.f32 %v719_v59, %v5567_v28 }
 0x3e0   :  { %v4123_v3 = vmul.f32 -1.442695, %v722_v2 }
 0x3e2   :  { %4928 = vpow2.f32 %v4123_v3 }
 0x3eb   :  { %v824_v63 = vpop.f32.mrf.mxu1 }
 0x3ec   :  { %v825_v0 = vadd.f32 %v5606_v60, %v824_v63 }
 0x3ed   :  { %v4510_v1 = vpop.f32.mrf.mxu1 }
 0x3ee   :  { %836 = vrot.lane.b32.xlu1 %v825_v0, %s5298_s21  ;;  %v828_v4 = vadd.f32 %v825_v0, %v5608_v61 }
 0x3ef   :  { %v4929_v6 = vpop.eup %4928 }
 0x3f0   :  { %v4125_v5 = vmul.f32 -1.442695, %v828_v4  ;;  %v726_v7 = vadd.f32 1.0, %v4929_v6 }
 0x3f2   :  { %4930 = vpow2.f32 %v4125_v5 }
 0x3f3   :  { %4932 = vrcp.f32 %v726_v7 }
 0x3ff   :  { %v4931_v8 = vpop.eup %4930 }
 0x400   :  { %v832_v10 = vadd.f32 1.0, %v4931_v8  ;;  %v4933_v12 = vpop.eup %4932 }
 0x401   :  { %v740_v34 = vsub.f32 1.0, %v4933_v12  ;;  %v746_v38 = vmul.f32 %v4933_v12, %v5616_v44 }
 0x402   :  { %4934 = vrcp.f32 %v832_v10 }
 0x40f   :  { %v4935_v16 = vpop.eup %4934 }
 0x450   :  { %v731_v13 = vpop.permute.xlu0 %730 }
 0x451   :  { %v733_v15 = vmul.f32 %v4933_v12, %v731_v13 }
 0x453   :  { %735 = vrot.lane.b32.xlu0 %v733_v15, %s5298_s21 }
 0x460   :  { %v837_v17 = vpop.permute.xlu1 %836 }
 0x461   :  { %v839_v19 = vmul.f32 %v4935_v16, %v837_v17 }
 0x463   :  { %841 = vrot.lane.b32.xlu1 %v839_v19, %s5298_s21 }
 0x4c5   :  { %v736_v25 = vpop.permute.xlu0 %735 }
 0x4c6   :  { %v738_v26 = vadd.f32 %v736_v25, %v5567_v28  ;;  %v846_v28 = vsub.f32 1.0, %v4935_v16 }
 0x4c8   :  { %4936 = vtanh.f32 %v738_v26 }
 0x4d5   :  { %v4937_v27 = vpop.eup %4936  ;;  %v842_v30 = vpop.permute.xlu1 %841 }
 0x4d6   :  { %v844_v31 = vadd.f32 %v842_v30, %v5608_v61  ;;  %742 = vrot.lane.b32.xlu0 %v4937_v27, %s5299_s8  ;;  %v852_v61 = vmul.f32 %v4935_v16, %v5620_v52 }
 0x4d8   :  { %4938 = vtanh.f32 %v844_v31 }
 0x4e5   :  { %v4939_v33 = vpop.eup %4938 }
 0x4e6   :  { %848 = vrot.lane.b32.xlu1 %v4939_v33, %s5299_s8 }
 0x548   :  { %v743_v37 = vpop.permute.xlu0 %742 }
 0x549   :  { %v745_v41 = vmul.f32 %v743_v37, %v740_v34 }
 0x54b   :  { %v5662_v43 = vadd.f32 %v746_v38, %v745_v41 }
 0x54d   :  { %749 = vrot.lane.b32.xlu0 %v5662_v43, %s5299_s8 }
 0x558   :  { %v849_v46 = vpop.permute.xlu1 %848 }
 0x559   :  { %v851_v47 = vmul.f32 %v849_v46, %v846_v28 }
 0x55b   :  { %v5667_v48 = vadd.f32 %v852_v61, %v851_v47 }
 0x55d   :  { %959 = vrot.lane.b32.xlu1 %v5667_v48, %s5299_s8  ;;  %854 = vst.msk [vmem:[#allocation2 + $0x30] sm:$0xff] %vm648_vm2, %v5667_v48 }
 0x5bf   :  { %v750_v44 = vpop.permute.xlu0 %749 }
 0x5c0   :  { %752 = vst.msk [vmem:[#allocation2 + $0x8] sm:$0xff] %vm185_vm0, %v750_v44  ;;  %4520 = vmatmul.mubr.msk.f32.vlgmr.msra.gmra.mxu0 %vm185_vm0, %v750_v44 }
 0x5c1   :  { %4534 = vmatpush3.msra.mxu0 %v5476_v9  ;;  %4541 = vmatprep.mubr.msk.f32.mxu0 %vm5297_vm1, %v5296_v11 }
 0x5c2   :  { %4535 = vmatprep.subr.mxu0 %v5296_v11 }
 0x5c3   :  { %4536 = vmatpush3.msra.mxu0 %v5489_v14 }
 0x5c4   :  { %4537 = vmatprep.subr.mxu0 %v5296_v11 }
 0x5c5   :  { %4538 = vmatpush3.msra.mxu0 %v5501_v18 }
 0x5c6   :  { %4539 = vmatprep.subr.mxu0 %v5296_v11 }
 0x5c7   :  { %4540 = vmatpush3.msra.mxu0 %v5507_v20 }
 0x5c8   :  { %4555 = vmatprep.subr.mxu0 %v5296_v11 }
 0x5cf   :  { %v960_v50 = vpop.permute.xlu1 %959 }
 0x5d0   :  { %4531 = vmatmul.mubr.msk.f32.vlgmr.msra.gmra.mxu1 %vm185_vm0, %v960_v50 }
 0x5d1   :  { %4545 = vmatpush3.msra.mxu1 %v5514_v21  ;;  %4552 = vmatprep.mubr.msk.f32.mxu1 %vm5297_vm1, %v5296_v11 }
 0x5d2   :  { %4546 = vmatprep.subr.mxu1 %v5296_v11 }
 0x5d3   :  { %4547 = vmatpush3.msra.mxu1 %v5521_v22 }
 0x5d4   :  { %4548 = vmatprep.subr.mxu1 %v5296_v11 }
 0x5d5   :  { %4549 = vmatpush3.msra.mxu1 %v5527_v23 }
 0x5d6   :  { %4550 = vmatprep.subr.mxu1 %v5296_v11 }
 0x5d7   :  { %4551 = vmatpush3.msra.mxu1 %v5533_v24 }
 0x5d8   :  { %4566 = vmatprep.subr.mxu1 %v5296_v11 }
 0x680   :  { %v923_v52 = vpop.f32.mrf.mxu0 }
 0x681   :  { %v924_v54 = vadd.f32 %v5587_v42, %v923_v52 }
 0x682   :  { %v4521_v56 = vpop.f32.mrf.mxu0 }
 0x683   :  { %935 = vrot.lane.b32.xlu0 %v924_v54, %s5298_s21  ;;  %v927_v63 = vadd.f32 %v924_v54, %v5577_v39 }
 0x685   :  { %v4127_v0 = vmul.f32 -1.442695, %v927_v63 }
 0x687   :  { %4940 = vpow2.f32 %v4127_v0 }
 0x690   :  { %v1029_v58 = vpop.f32.mrf.mxu1 }
 0x691   :  { %v1030_v59 = vadd.f32 %v5606_v60, %v1029_v58 }
 0x692   :  { %v4532_v62 = vpop.f32.mrf.mxu1 }
 0x693   :  { %1041 = vrot.lane.b32.xlu1 %v1030_v59, %s5298_s21  ;;  %v1033_v1 = vadd.f32 %v1030_v59, %v5599_v55 }
 0x694   :  { %v4941_v3 = vpop.eup %4940 }
 0x695   :  { %v4129_v2 = vmul.f32 -1.442695, %v1033_v1  ;;  %v931_v4 = vadd.f32 1.0, %v4941_v3 }
 0x697   :  { %4942 = vpow2.f32 %v4129_v2 }
 0x698   :  { %4944 = vrcp.f32 %v931_v4 }
 0x6a4   :  { %v4943_v5 = vpop.eup %4942 }
 0x6a5   :  { %v1037_v6 = vadd.f32 1.0, %v4943_v5  ;;  %v4945_v7 = vpop.eup %4944 }
 0x6a6   :  { %v945_v30 = vsub.f32 1.0, %v4945_v7  ;;  %v951_v33 = vmul.f32 %v4945_v7, %v5662_v43 }
 0x6a7   :  { %4946 = vrcp.f32 %v1037_v6 }
 0x6b4   :  { %v4947_v12 = vpop.eup %4946 }
 0x6f5   :  { %v936_v8 = vpop.permute.xlu0 %935 }
 0x6f6   :  { %v938_v10 = vmul.f32 %v4945_v7, %v936_v8 }
 0x6f8   :  { %940 = vrot.lane.b32.xlu0 %v938_v10, %s5298_s21 }
 0x705   :  { %v1042_v13 = vpop.permute.xlu1 %1041 }
 0x706   :  { %v1044_v15 = vmul.f32 %v4947_v12, %v1042_v13 }
 0x708   :  { %1046 = vrot.lane.b32.xlu1 %v1044_v15, %s5298_s21 }
 0x76a   :  { %v941_v16 = vpop.permute.xlu0 %940 }
 0x76b   :  { %v943_v17 = vadd.f32 %v941_v16, %v5577_v39  ;;  %v1051_v39 = vsub.f32 1.0, %v4947_v12 }
 0x76d   :  { %4948 = vtanh.f32 %v943_v17 }
 0x77a   :  { %v4949_v19 = vpop.eup %4948  ;;  %v1047_v25 = vpop.permute.xlu1 %1046 }
 0x77b   :  { %v1049_v26 = vadd.f32 %v1047_v25, %v5599_v55  ;;  %947 = vrot.lane.b32.xlu0 %v4949_v19, %s5299_s8  ;;  %v1057_v55 = vmul.f32 %v4947_v12, %v5667_v48 }
 0x77d   :  { %4950 = vtanh.f32 %v1049_v26 }
 0x78a   :  { %v4951_v27 = vpop.eup %4950 }
 0x78b   :  { %1053 = vrot.lane.b32.xlu1 %v4951_v27, %s5299_s8 }
 0x7ed   :  { %v948_v31 = vpop.permute.xlu0 %947 }
 0x7ee   :  { %v950_v34 = vmul.f32 %v948_v31, %v945_v30 }
 0x7f0   :  { %v5709_v37 = vadd.f32 %v951_v33, %v950_v34 }
 0x7f2   :  { %954 = vrot.lane.b32.xlu0 %v5709_v37, %s5299_s8 }
 0x7fd   :  { %v1054_v38 = vpop.permute.xlu1 %1053 }
 0x7fe   :  { %v1056_v41 = vmul.f32 %v1054_v38, %v1051_v39 }
 0x800   :  { %v5714_v28 = vadd.f32 %v1057_v55, %v1056_v41 }
 0x802   :  { %1164 = vrot.lane.b32.xlu1 %v5714_v28, %s5299_s8  ;;  %1059 = vst.msk [vmem:[#allocation2 + $0x28] sm:$0xff] %vm648_vm2, %v5714_v28 }
 0x864   :  { %v955_v43 = vpop.permute.xlu0 %954 }
 0x865   :  { %957 = vst.msk [vmem:[#allocation2 + $0x10] sm:$0xff] %vm185_vm0, %v955_v43  ;;  %4542 = vmatmul.mubr.msk.f32.vlgmr.msra.gmra.mxu0 %vm185_vm0, %v955_v43 }
 0x866   :  { %4556 = vmatpush3.msra.mxu0 %v5476_v9  ;;  %4563 = vmatprep.mubr.msk.f32.mxu0 %vm5297_vm1, %v5296_v11 }
 0x867   :  { %4557 = vmatprep.subr.mxu0 %v5296_v11 }
 0x868   :  { %4558 = vmatpush3.msra.mxu0 %v5489_v14 }
 0x869   :  { %4559 = vmatprep.subr.mxu0 %v5296_v11 }
 0x86a   :  { %4560 = vmatpush3.msra.mxu0 %v5501_v18 }
 0x86b   :  { %4561 = vmatprep.subr.mxu0 %v5296_v11 }
 0x86c   :  { %4562 = vmatpush3.msra.mxu0 %v5507_v20 }
 0x86d   :  { %4577 = vmatprep.subr.mxu0 %v5296_v11 }
 0x874   :  { %v1165_v46 = vpop.permute.xlu1 %1164 }
 0x875   :  { %4553 = vmatmul.mubr.msk.f32.vlgmr.msra.gmra.mxu1 %vm185_vm0, %v1165_v46 }
 0x876   :  { %4567 = vmatpush3.msra.mxu1 %v5514_v21  ;;  %4574 = vmatprep.mubr.msk.f32.mxu1 %vm5297_vm1, %v5296_v11 }
 0x877   :  { %4568 = vmatprep.subr.mxu1 %v5296_v11 }
 0x878   :  { %4569 = vmatpush3.msra.mxu1 %v5521_v22 }
 0x879   :  { %4570 = vmatprep.subr.mxu1 %v5296_v11 }
 0x87a   :  { %4571 = vmatpush3.msra.mxu1 %v5527_v23 }
 0x87b   :  { %4572 = vmatprep.subr.mxu1 %v5296_v11 }
 0x87c   :  { %4573 = vmatpush3.msra.mxu1 %v5533_v24 }
 0x87d   :  { %4588 = vmatprep.subr.mxu1 %v5296_v11 }
 0x925   :  { %v1128_v61 = vpop.f32.mrf.mxu0 }
 0x926   :  { %v1129_v47 = vadd.f32 %v5587_v42, %v1128_v61 }
 0x927   :  { %v4543_v48 = vpop.f32.mrf.mxu0 }
 0x928   :  { %1140 = vrot.lane.b32.xlu0 %v1129_v47, %s5298_s21  ;;  %v1132_v54 = vadd.f32 %v1129_v47, %v5573_v35 }
 0x92a   :  { %v4131_v56 = vmul.f32 -1.442695, %v1132_v54 }
 0x92c   :  { %4952 = vpow2.f32 %v4131_v56 }
 0x935   :  { %v1234_v44 = vpop.f32.mrf.mxu1 }
 0x936   :  { %v1235_v50 = vadd.f32 %v5606_v60, %v1234_v44 }
 0x937   :  { %v4554_v52 = vpop.f32.mrf.mxu1 }
 0x938   :  { %1246 = vrot.lane.b32.xlu1 %v1235_v50, %s5298_s21  ;;  %v1238_v58 = vadd.f32 %v1235_v50, %v5601_v57 }
 0x939   :  { %v4953_v62 = vpop.eup %4952 }
 0x93a   :  { %v4133_v59 = vmul.f32 -1.442695, %v1238_v58  ;;  %v1136_v63 = vadd.f32 1.0, %v4953_v62 }
 0x93c   :  { %4954 = vpow2.f32 %v4133_v59 }
 0x93d   :  { %4956 = vrcp.f32 %v1136_v63 }
 0x949   :  { %v4955_v0 = vpop.eup %4954 }
 0x94a   :  { %v1242_v1 = vadd.f32 1.0, %v4955_v0  ;;  %v4957_v2 = vpop.eup %4956 }
 0x94b   :  { %v1150_v17 = vsub.f32 1.0, %v4957_v2  ;;  %v1156_v25 = vmul.f32 %v4957_v2, %v5709_v37 }
 0x94c   :  { %4958 = vrcp.f32 %v1242_v1 }
 0x959   :  { %v4959_v5 = vpop.eup %4958 }
 0x99a   :  { %v1141_v3 = vpop.permute.xlu0 %1140 }
 0x99b   :  { %v1143_v4 = vmul.f32 %v4957_v2, %v1141_v3 }
 0x99d   :  { %1145 = vrot.lane.b32.xlu0 %v1143_v4, %s5298_s21 }
 0x9aa   :  { %v1247_v6 = vpop.permute.xlu1 %1246 }
 0x9ab   :  { %v1249_v7 = vmul.f32 %v4959_v5, %v1247_v6 }
 0x9ad   :  { %1251 = vrot.lane.b32.xlu1 %v1249_v7, %s5298_s21 }
 0xa0f   :  { %v1146_v8 = vpop.permute.xlu0 %1145 }
 0xa10   :  { %v1148_v10 = vadd.f32 %v1146_v8, %v5573_v35  ;;  %v1256_v35 = vsub.f32 1.0, %v4959_v5 }
 0xa12   :  { %4960 = vtanh.f32 %v1148_v10 }
 0xa1f   :  { %v4961_v12 = vpop.eup %4960  ;;  %v1252_v13 = vpop.permute.xlu1 %1251 }
 0xa20   :  { %v1254_v15 = vadd.f32 %v1252_v13, %v5601_v57  ;;  %1152 = vrot.lane.b32.xlu0 %v4961_v12, %s5299_s8  ;;  %v1262_v57 = vmul.f32 %v4959_v5, %v5714_v28 }
 0xa22   :  { %4962 = vtanh.f32 %v1254_v15 }
 0xa2f   :  { %v4963_v16 = vpop.eup %4962 }
 0xa30   :  { %1258 = vrot.lane.b32.xlu1 %v4963_v16, %s5299_s8 }
 0xa92   :  { %v1153_v19 = vpop.permute.xlu0 %1152 }
 0xa93   :  { %v1155_v26 = vmul.f32 %v1153_v19, %v1150_v17 }
 0xa95   :  { %v5756_v27 = vadd.f32 %v1156_v25, %v1155_v26 }
 0xa97   :  { %1159 = vrot.lane.b32.xlu0 %v5756_v27, %s5299_s8 }
 0xaa2   :  { %v1259_v30 = vpop.permute.xlu1 %1258 }
 0xaa3   :  { %v1261_v31 = vmul.f32 %v1259_v30, %v1256_v35 }
 0xaa5   :  { %v5761_v33 = vadd.f32 %v1262_v57, %v1261_v31 }
 0xaa7   :  { %1264 = vst.msk [vmem:[#allocation2 + $0x20] sm:$0xff] %vm648_vm2, %v5761_v33  ;;  %1369 = vrot.lane.b32.xlu1 %v5761_v33, %s5299_s8 }
 0xb09   :  { %v1160_v34 = vpop.permute.xlu0 %1159 }
 0xb0a   :  { %1162 = vst.msk [vmem:[#allocation2 + $0x18] sm:$0xff] %vm185_vm0, %v1160_v34  ;;  %4564 = vmatmul.mubr.msk.f32.vlgmr.msra.gmra.mxu0 %vm185_vm0, %v1160_v34 }
 0xb0b   :  { %4578 = vmatpush3.msra.mxu0 %v5476_v9  ;;  %4585 = vmatprep.mubr.msk.f32.mxu0 %vm5297_vm1, %v5296_v11 }
 0xb0c   :  { %4579 = vmatprep.subr.mxu0 %v5296_v11 }
 0xb0d   :  { %4580 = vmatpush3.msra.mxu0 %v5489_v14 }
 0xb0e   :  { %4581 = vmatprep.subr.mxu0 %v5296_v11 }
 0xb0f   :  { %4582 = vmatpush3.msra.mxu0 %v5501_v18 }
 0xb10   :  { %4583 = vmatprep.subr.mxu0 %v5296_v11 }
 0xb11   :  { %4584 = vmatpush3.msra.mxu0 %v5507_v20 }
 0xb12   :  { %4599 = vmatprep.subr.mxu0 %v5296_v11 }
 0xb19   :  { %v1370_v37 = vpop.permute.xlu1 %1369 }
 0xb1a   :  { %4575 = vmatmul.mubr.msk.f32.vlgmr.msra.gmra.mxu1 %vm185_vm0, %v1370_v37 }
 0xb1b   :  { %4589 = vmatpush3.msra.mxu1 %v5514_v21  ;;  %4596 = vmatprep.mubr.msk.f32.mxu1 %vm5297_vm1, %v5296_v11 }
 0xb1c   :  { %4590 = vmatprep.subr.mxu1 %v5296_v11 }
 0xb1d   :  { %4591 = vmatpush3.msra.mxu1 %v5521_v22 }
 0xb1e   :  { %4592 = vmatprep.subr.mxu1 %v5296_v11 }
 0xb1f   :  { %4593 = vmatpush3.msra.mxu1 %v5527_v23 }
 0xb20   :  { %4594 = vmatprep.subr.mxu1 %v5296_v11 }
 0xb21   :  { %4595 = vmatpush3.msra.mxu1 %v5533_v24 }
 0xb22   :  { %4610 = vmatprep.subr.mxu1 %v5296_v11 }
 0xbca   :  { %v1333_v39 = vpop.f32.mrf.mxu0 }
 0xbcb   :  { %v1334_v38 = vadd.f32 %v5587_v42, %v1333_v39 }
 0xbcc   :  { %v4565_v55 = vpop.f32.mrf.mxu0 }
 0xbcd   :  { %1345 = vrot.lane.b32.xlu0 %v1334_v38, %s5298_s21  ;;  %v1337_v46 = vadd.f32 %v1334_v38, %v5571_v32 }
 0xbcf   :  { %v4135_v61 = vmul.f32 -1.442695, %v1337_v46 }
 0xbd1   :  { %4964 = vpow2.f32 %v4135_v61 }
 0xbda   :  { %v1439_v41 = vpop.f32.mrf.mxu1 }
 0xbdb   :  { %v1440_v28 = vadd.f32 %v5606_v60, %v1439_v41 }
 0xbdc   :  { %v4576_v43 = vpop.f32.mrf.mxu1 }
 0xbdd   :  { %1451 = vrot.lane.b32.xlu1 %v1440_v28, %s5298_s21  ;;  %v1443_v47 = vadd.f32 %v1440_v28, %v5595_v51 }
 0xbde   :  { %v4965_v44 = vpop.eup %4964 }
 0xbdf   :  { %v4137_v48 = vmul.f32 -1.442695, %v1443_v47  ;;  %v1341_v50 = vadd.f32 1.0, %v4965_v44 }
 0xbe1   :  { %4966 = vpow2.f32 %v4137_v48 }
 0xbe2   :  { %4968 = vrcp.f32 %v1341_v50 }
 0xbee   :  { %v4967_v52 = vpop.eup %4966 }
 0xbef   :  { %v1447_v54 = vadd.f32 1.0, %v4967_v52  ;;  %v4969_v56 = vpop.eup %4968 }
 0xbf0   :  { %v1355_v7 = vsub.f32 1.0, %v4969_v56  ;;  %v1361_v10 = vmul.f32 %v4969_v56, %v5756_v27 }
 0xbf1   :  { %4970 = vrcp.f32 %v1447_v54 }
 0xbfe   :  { %v4971_v62 = vpop.eup %4970 }
 0xc3f   :  { %v1346_v58 = vpop.permute.xlu0 %1345 }
 0xc40   :  { %v1348_v59 = vmul.f32 %v4969_v56, %v1346_v58 }
 0xc42   :  { %1350 = vrot.lane.b32.xlu0 %v1348_v59, %s5298_s21 }
 0xc4f   :  { %v1452_v63 = vpop.permute.xlu1 %1451 }
 0xc50   :  { %v1454_v0 = vmul.f32 %v4971_v62, %v1452_v63 }
 0xc52   :  { %1456 = vrot.lane.b32.xlu1 %v1454_v0, %s5298_s21 }
 0xcb4   :  { %v1351_v1 = vpop.permute.xlu0 %1350 }
 0xcb5   :  { %v1353_v2 = vadd.f32 %v1351_v1, %v5571_v32  ;;  %v1461_v32 = vsub.f32 1.0, %v4971_v62  ;;  %v5108_v1 = vld [vmem:[#allocation3 + $0x18] sm:$0xff] }
 0xcb7   :  { %4972 = vtanh.f32 %v1353_v2  ;;  %v5109_v2 = vld [vmem:[#allocation3 + $0x10] sm:$0xff] }
 0xcc4   :  { %v4973_v3 = vpop.eup %4972  ;;  %v1457_v4 = vpop.permute.xlu1 %1456 }
 0xcc5   :  { %v1459_v5 = vadd.f32 %v1457_v4, %v5595_v51  ;;  %1357 = vrot.lane.b32.xlu0 %v4973_v3, %s5299_s8  ;;  %v1467_v51 = vmul.f32 %v4971_v62, %v5761_v33  ;;  %v5110_v3 = vld [vmem:[#allocation3 + $0x8] sm:$0xff]  ;;  %v5111_v4 = vld [vmem:[#allocation3] sm:$0xff] }
 0xcc7   :  { %4974 = vtanh.f32 %v1459_v5 }
 0xcd4   :  { %v4975_v6 = vpop.eup %4974 }
 0xcd5   :  { %1463 = vrot.lane.b32.xlu1 %v4975_v6, %s5299_s8  ;;  %v5112_v6 = vld [vmem:[#allocation8 + $0x18] sm:$0xff] }
 0xd37   :  { %v1358_v8 = vpop.permute.xlu0 %1357 }
 0xd38   :  { %v1360_v12 = vmul.f32 %v1358_v8, %v1355_v7  ;;  %v5113_v7 = vld [vmem:[#allocation8 + $0x10] sm:$0xff] }
 0xd3a   :  { %v5803_v13 = vadd.f32 %v1361_v10, %v1360_v12 }
 0xd3c   :  { %1364 = vrot.lane.b32.xlu0 %v5803_v13, %s5299_s8 }
 0xd47   :  { %v1464_v15 = vpop.permute.xlu1 %1463 }
 0xd48   :  { %v1466_v16 = vmul.f32 %v1464_v15, %v1461_v32 }
 0xd4a   :  { %v5808_v17 = vadd.f32 %v1467_v51, %v1466_v16 }
 0xd4c   :  { %1469 = vst.msk [vmem:[#allocation2 + $0x18] sm:$0xff] %vm648_vm2, %v5808_v17  ;;  %1574 = vrot.lane.b32.xlu1 %v5808_v17, %s5299_s8 }
 0xdae   :  { %v1365_v19 = vpop.permute.xlu0 %1364 }
 0xdaf   :  { %1367 = vst.msk [vmem:[#allocation2 + $0x20] sm:$0xff] %vm185_vm0, %v1365_v19  ;;  %4586 = vmatmul.mubr.msk.f32.vlgmr.msra.gmra.mxu0 %vm185_vm0, %v1365_v19 }
 0xdb0   :  { %4600 = vmatpush3.msra.mxu0 %v5476_v9  ;;  %4607 = vmatprep.mubr.msk.f32.mxu0 %vm5297_vm1, %v5296_v11 }
 0xdb1   :  { %4601 = vmatprep.subr.mxu0 %v5296_v11 }
 0xdb2   :  { %4602 = vmatpush3.msra.mxu0 %v5489_v14 }
 0xdb3   :  { %4603 = vmatprep.subr.mxu0 %v5296_v11 }
 0xdb4   :  { %4604 = vmatpush3.msra.mxu0 %v5501_v18 }
 0xdb5   :  { %4605 = vmatprep.subr.mxu0 %v5296_v11 }
 0xdb6   :  { %4606 = vmatpush3.msra.mxu0 %v5507_v20 }
 0xdb7   :  { %4621 = vmatprep.subr.mxu0 %v5296_v11 }
 0xdbe   :  { %v1575_v25 = vpop.permute.xlu1 %1574 }
 0xdbf   :  { %4597 = vmatmul.mubr.msk.f32.vlgmr.msra.gmra.mxu1 %vm185_vm0, %v1575_v25 }
 0xdc0   :  { %4611 = vmatpush3.msra.mxu1 %v5514_v21  ;;  %4618 = vmatprep.mubr.msk.f32.mxu1 %vm5297_vm1, %v5296_v11 }
 0xdc1   :  { %4612 = vmatprep.subr.mxu1 %v5296_v11 }
 0xdc2   :  { %4613 = vmatpush3.msra.mxu1 %v5521_v22 }
 0xdc3   :  { %4614 = vmatprep.subr.mxu1 %v5296_v11 }
 0xdc4   :  { %4615 = vmatpush3.msra.mxu1 %v5527_v23 }
 0xdc5   :  { %4616 = vmatprep.subr.mxu1 %v5296_v11 }
 0xdc6   :  { %4617 = vmatpush3.msra.mxu1 %v5533_v24 }
 0xdc7   :  { %4632 = vmatprep.subr.mxu1 %v5296_v11 }
 0xe6f   :  { %v1538_v9 = vpop.f32.mrf.mxu0 }
 0xe70   :  { %v1539_v14 = vadd.f32 %v5587_v42, %v1538_v9 }
 0xe71   :  { %v4587_v18 = vpop.f32.mrf.mxu0 }
 0xe72   :  { %1550 = vrot.lane.b32.xlu0 %v1539_v14, %s5298_s21  ;;  %v1542_v26 = vadd.f32 %v1539_v14, %v5569_v29 }
 0xe74   :  { %v4139_v27 = vmul.f32 -1.442695, %v1542_v26 }
 0xe76   :  { %4976 = vpow2.f32 %v4139_v27 }
 0xe7f   :  { %v1644_v20 = vpop.f32.mrf.mxu1 }
 0xe80   :  { %v1645_v21 = vadd.f32 %v5606_v60, %v1644_v20 }
 0xe81   :  { %v4598_v22 = vpop.f32.mrf.mxu1 }
 0xe82   :  { %1656 = vrot.lane.b32.xlu1 %v1645_v21, %s5298_s21  ;;  %v1648_v35 = vadd.f32 %v1645_v21, %v5597_v53 }
 0xe83   :  { %v4977_v57 = vpop.eup %4976 }
 0xe84   :  { %v4141_v30 = vmul.f32 -1.442695, %v1648_v35  ;;  %v1546_v31 = vadd.f32 1.0, %v4977_v57 }
 0xe86   :  { %4978 = vpow2.f32 %v4141_v30 }
 0xe87   :  { %4980 = vrcp.f32 %v1546_v31 }
 0xe93   :  { %v4979_v33 = vpop.eup %4978 }
 0xe94   :  { %v1652_v34 = vadd.f32 1.0, %v4979_v33  ;;  %v4981_v37 = vpop.eup %4980 }
 0xe95   :  { %v1560_v50 = vsub.f32 1.0, %v4981_v37  ;;  %v1566_v54 = vmul.f32 %v4981_v37, %v5803_v13 }
 0xe96   :  { %4982 = vrcp.f32 %v1652_v34 }
 0xea3   :  { %v4983_v55 = vpop.eup %4982 }
 0xee4   :  { %v1551_v39 = vpop.permute.xlu0 %1550 }
 0xee5   :  { %v1553_v38 = vmul.f32 %v4981_v37, %v1551_v39 }
 0xee7   :  { %1555 = vrot.lane.b32.xlu0 %v1553_v38, %s5298_s21 }
 0xef4   :  { %v1657_v41 = vpop.permute.xlu1 %1656 }
 0xef5   :  { %v1659_v28 = vmul.f32 %v4983_v55, %v1657_v41 }
 0xef7   :  { %1661 = vrot.lane.b32.xlu1 %v1659_v28, %s5298_s21 }
 0xf59   :  { %v1556_v43 = vpop.permute.xlu0 %1555 }
 0xf5a   :  { %v1558_v46 = vadd.f32 %v1556_v43, %v5569_v29  ;;  %v1666_v29 = vsub.f32 1.0, %v4983_v55 }
 0xf5c   :  { %4984 = vtanh.f32 %v1558_v46 }
 0xf69   :  { %v4985_v61 = vpop.eup %4984  ;;  %v1662_v47 = vpop.permute.xlu1 %1661 }
 0xf6a   :  { %v1664_v48 = vadd.f32 %v1662_v47, %v5597_v53  ;;  %1562 = vrot.lane.b32.xlu0 %v4985_v61, %s5299_s8  ;;  %v1672_v53 = vmul.f32 %v4983_v55, %v5808_v17  ;;  %v5114_v47 = vld [vmem:[%s6429_s0] ss:$0 sm:$0xff] }
 0xf6c   :  { %4986 = vtanh.f32 %v1664_v48 }
 0xf79   :  { %v4987_v44 = vpop.eup %4986 }
 0xf7a   :  { %1668 = vrot.lane.b32.xlu1 %v4987_v44, %s5299_s8 }
 0xfdc   :  { %v1563_v52 = vpop.permute.xlu0 %1562 }
 0xfdd   :  { %v1565_v56 = vmul.f32 %v1563_v52, %v1560_v50 }
 0xfdf   :  { %v5850_v58 = vadd.f32 %v1566_v54, %v1565_v56 }
 0xfe1   :  { %1569 = vrot.lane.b32.xlu0 %v5850_v58, %s5299_s8 }
 0xfec   :  { %v1669_v59 = vpop.permute.xlu1 %1668 }
 0xfed   :  { %v1671_v62 = vmul.f32 %v1669_v59, %v1666_v29 }
 0xfef   :  { %v5855_v63 = vadd.f32 %v1672_v53, %v1671_v62 }
 0xff1   :  { %1674 = vst.msk [vmem:[#allocation2 + $0x10] sm:$0xff] %vm648_vm2, %v5855_v63  ;;  %1779 = vrot.lane.b32.xlu1 %v5855_v63, %s5299_s8 }
0x1053   :  { %v1570_v0 = vpop.permute.xlu0 %1569 }
0x1054   :  { %1572 = vst.msk [vmem:[#allocation2 + $0x28] sm:$0xff] %vm185_vm0, %v1570_v0  ;;  %4608 = vmatmul.mubr.msk.f32.vlgmr.msra.gmra.mxu0 %vm185_vm0, %v1570_v0 }
0x1055   :  { %4622 = vmatpush3.msra.mxu0 %v5108_v1  ;;  %4629 = vmatprep.mubr.msk.f32.mxu0 %vm5297_vm1, %v5296_v11 }
0x1056   :  { %4623 = vmatprep.subr.mxu0 %v5296_v11 }
0x1057   :  { %4624 = vmatpush3.msra.mxu0 %v5109_v2 }
0x1058   :  { %4625 = vmatprep.subr.mxu0 %v5296_v11 }
0x1059   :  { %4626 = vmatpush3.msra.mxu0 %v5110_v3 }
0x105a   :  { %4627 = vmatprep.subr.mxu0 %v5296_v11 }
0x105b   :  { %4628 = vmatpush3.msra.mxu0 %v5111_v4 }
0x1063   :  { %v1780_v5 = vpop.permute.xlu1 %1779 }
0x1064   :  { %4619 = vmatmul.mubr.msk.f32.vlgmr.msra.gmra.mxu1 %vm185_vm0, %v1780_v5 }
0x1065   :  { %4633 = vmatpush3.msra.mxu1 %v5112_v6  ;;  %4640 = vmatprep.mubr.msk.f32.mxu1 %vm5297_vm1, %v5296_v11 }
0x1066   :  { %4634 = vmatprep.subr.mxu1 %v5296_v11 }
0x1067   :  { %4635 = vmatpush3.msra.mxu1 %v5113_v7 }
0x1068   :  { %4636 = vmatprep.subr.mxu1 %v5296_v11 }
0x1069   :  { %4637 = vmatpush3.msra.mxu1 %v5527_v23 }
0x106a   :  { %4638 = vmatprep.subr.mxu1 %v5296_v11 }
0x106b   :  { %4639 = vmatpush3.msra.mxu1 %v5533_v24 }
0x1114   :  { %v1743_v8 = vpop.f32.mrf.mxu0 }
0x1115   :  { %v1744_v10 = vadd.f32 %v5587_v42, %v1743_v8  ;;  %v2100_v8 = vld [vmem:[%s6405_s9 + $0x38] sm:$0xff] }
0x1116   :  { %v4609_v12 = vpop.f32.mrf.mxu0  ;;  %4643 = vmatprep.subr.mxu0 %v2100_v8 }
0x1117   :  { %1755 = vrot.lane.b32.xlu0 %v1744_v10, %s5298_s21  ;;  %v1747_v51 = vadd.f32 %v1744_v10, %v5579_v40  ;;  %v2250_v10 = vld [vmem:[#allocation11 + $0x38] sm:$0xff]  ;;  %v2099_v12 = vld [vmem:[%s6405_s9 + $0x30] sm:$0xff] }
0x1118   :  { %4671 = vmatprep.subr.mxu1 %v2250_v10 }
0x1119   :  { %v4143_v16 = vmul.f32 -1.442695, %v1747_v51  ;;  %v2098_v51 = vld [vmem:[%s6405_s9 + $0x28] sm:$0xff] }
0x111b   :  { %4988 = vpow2.f32 %v4143_v16  ;;  %v2248_v16 = vld [vmem:[#allocation11 + $0x28] sm:$0xff] }
0x1124   :  { %v1849_v13 = vpop.f32.mrf.mxu1 }
0x1125   :  { %v1850_v32 = vadd.f32 %v5606_v60, %v1849_v13  ;;  %v2249_v13 = vld [vmem:[#allocation11 + $0x30] sm:$0xff] }
0x1126   :  { %v4620_v15 = vpop.f32.mrf.mxu1 }
0x1127   :  { %1861 = vrot.lane.b32.xlu1 %v1850_v32, %s5298_s21  ;;  %v1853_v23 = vadd.f32 %v1850_v32, %v5589_v45 }
0x1128   :  { %v4989_v24 = vpop.eup %4988 }
0x1129   :  { %v4145_v17 = vmul.f32 -1.442695, %v1853_v23  ;;  %v1751_v19 = vadd.f32 1.0, %v4989_v24  ;;  %v2097_v23 = vld [vmem:[%s6405_s9 + $0x20] sm:$0xff]  ;;  %v2246_v24 = vld [vmem:[#allocation11 + $0x18] sm:$0xff] }
0x112b   :  { %4990 = vpow2.f32 %v4145_v17  ;;  %v2247_v17 = vld [vmem:[#allocation11 + $0x20] sm:$0xff] }
0x112c   :  { %4992 = vrcp.f32 %v1751_v19  ;;  %v2095_v19 = vld [vmem:[%s6405_s9 + $0x10] sm:$0xff] }
0x1138   :  { %v4991_v42 = vpop.eup %4990 }
0x1139   :  { %v1857_v25 = vadd.f32 1.0, %v4991_v42  ;;  %v4993_v9 = vpop.eup %4992  ;;  %v2245_v42 = vld [vmem:[#allocation11 + $0x10] sm:$0xff] }
0x113a   :  { %v1765_v33 = vsub.f32 1.0, %v4993_v9  ;;  %v1771_v37 = vmul.f32 %v4993_v9, %v5850_v58 }
0x113b   :  { %4994 = vrcp.f32 %v1857_v25  ;;  %v2094_v25 = vld [vmem:[%s6405_s9 + $0x8] sm:$0xff] }
0x1148   :  { %v4995_v20 = vpop.eup %4994 }
0x1189   :  { %v1756_v14 = vpop.permute.xlu0 %1755 }
0x118a   :  { %v1758_v18 = vmul.f32 %v4993_v9, %v1756_v14  ;;  %v2244_v9 = vld [vmem:[#allocation11 + $0x8] sm:$0xff]  ;;  %v2093_v14 = vld [vmem:[%s6405_s9] sm:$0xff] }
0x118c   :  { %1760 = vrot.lane.b32.xlu0 %v1758_v18, %s5298_s21  ;;  %v2243_v18 = vld [vmem:[#allocation11] sm:$0xff] }
0x1199   :  { %v1862_v21 = vpop.permute.xlu1 %1861 }
0x119a   :  { %v1864_v22 = vmul.f32 %v4995_v20, %v1862_v21 }
0x119c   :  { %1866 = vrot.lane.b32.xlu1 %v1864_v22, %s5298_s21 }
0x11fe   :  { %v1761_v26 = vpop.permute.xlu0 %1760 }
0x11ff   :  { %v1763_v27 = vadd.f32 %v1761_v26, %v5579_v40  ;;  %v1871_v40 = vsub.f32 1.0, %v4995_v20 }
0x1201   :  { %4996 = vtanh.f32 %v1763_v27 }
0x120e   :  { %v4997_v35 = vpop.eup %4996  ;;  %v1867_v30 = vpop.permute.xlu1 %1866 }
0x120f   :  { %v1869_v57 = vadd.f32 %v1867_v30, %v5589_v45  ;;  %1767 = vrot.lane.b32.xlu0 %v4997_v35, %s5299_s8  ;;  %v1877_v45 = vmul.f32 %v4995_v20, %v5855_v63 }
0x1211   :  { %4998 = vtanh.f32 %v1869_v57 }
0x121e   :  { %v4999_v31 = vpop.eup %4998 }
0x121f   :  { %1873 = vrot.lane.b32.xlu1 %v4999_v31, %s5299_s8 }
0x1281   :  { %v1768_v34 = vpop.permute.xlu0 %1767 }
0x1282   :  { %v1770_v39 = vmul.f32 %v1768_v34, %v1765_v33 }
0x1284   :  { %v5889_v38 = vadd.f32 %v1771_v37, %v1770_v39 }
0x1286   :  { %1774 = vrot.lane.b32.xlu0 %v5889_v38, %s5299_s8 }
0x1291   :  { %v1874_v55 = vpop.permute.xlu1 %1873 }
0x1292   :  { %v1876_v41 = vmul.f32 %v1874_v55, %v1871_v40  ;;  %v5961_v40 = vld [vmem:[#allocation9 + $0x18] sm:$0xff]  ;;  %v2087_v55 = vld [vmem:[#allocation2 + $0x10] sm:$0xff] }
0x1294   :  { %v5894_v28 = vadd.f32 %v1877_v45, %v1876_v41  ;;  %v2088_v45 = vld [vmem:[#allocation2 + $0x18] sm:$0xff]  ;;  %v5970_v41 = vld [vmem:[#allocation12 + $0x10] sm:$0xff] }
0x1296   :  { %1879 = vst.msk [vmem:[#allocation2 + $0x8] sm:$0xff] %vm648_vm2, %v5894_v28  ;;  %1984 = vrot.lane.b32.xlu1 %v5894_v28, %s5299_s8 }
0x129d   :  { %v2086_v39 = vld [vmem:[#allocation2 + $0x8] sm:$0xff] }
0x12f8   :  { %v1775_v43 = vpop.permute.xlu0 %1774 }
0x12f9   :  { %1777 = vst.msk [vmem:[#allocation2 + $0x30] sm:$0xff] %vm185_vm0, %v1775_v43  ;;  %4630 = vmatmul.mubr.msk.f32.vlgmr.msra.gmra.mxu0 %vm185_vm0, %v1775_v43  ;;  %v2089_v43 = vld [vmem:[#allocation2 + $0x20] sm:$0xff] }
0x12fa   :  { %4644 = vmatpush3.msra.mxu0 %v2100_v8  ;;  %v6063_v8 = vld [vmem:[%s6408_s12] ss:$0 sm:$0xff] }
0x12fb   :  { %4645 = vmatprep.subr.mxu0 %v2099_v12 }
0x12fc   :  { %4646 = vmatpush3.msra.mxu0 %v2099_v12 }
0x12fd   :  { %4647 = vmatprep.subr.mxu0 %v2098_v51 }
0x12fe   :  { %4648 = vmatpush3.msra.mxu0 %v2098_v51 }
0x12ff   :  { %4649 = vmatprep.subr.mxu0 %v2097_v23 }
0x1300   :  { %4650 = vmatpush3.msra.mxu0 %v2097_v23  ;;  %v6082_v23 = vld [vmem:[%s6411_s15] ss:$0 sm:$0xff] }
0x1308   :  { %v1985_v46 = vpop.permute.xlu1 %1984 }
0x1309   :  { %4641 = vmatmul.mubr.msk.f32.vlgmr.msra.gmra.mxu1 %vm185_vm0, %v1985_v46  ;;  %v2090_v46 = vld [vmem:[#allocation2 + $0x28] sm:$0xff] }
0x130a   :  { %4672 = vmatpush3.msra.mxu1 %v2250_v10  ;;  %v6068_v10 = vld [vmem:[%s6412_s16] ss:$0 sm:$0xff] }
0x130b   :  { %4673 = vmatprep.subr.mxu1 %v2249_v13 }
0x130c   :  { %4674 = vmatpush3.msra.mxu1 %v2249_v13 }
0x130d   :  { %4675 = vmatprep.subr.mxu1 %v2248_v16 }
0x130e   :  { %4676 = vmatpush3.msra.mxu1 %v2248_v16  ;;  %v6077_v16 = vld [vmem:[%s6407_s11] ss:$0 sm:$0xff] }
0x130f   :  { %4677 = vmatprep.subr.mxu1 %v2247_v17 }
0x1310   :  { %4678 = vmatpush3.msra.mxu1 %v2247_v17 }
0x1311   :  { %4679 = vmatprep.subr.mxu1 %v2246_v24 }
0x1312   :  { %4680 = vmatpush3.msra.mxu1 %v2246_v24 }
0x1313   :  { %4681 = vmatprep.subr.mxu1 %v2245_v42 }
0x1314   :  { %4682 = vmatpush3.msra.mxu1 %v2245_v42 }
0x1315   :  { %4683 = vmatprep.subr.mxu1 %v2244_v9 }
0x1316   :  { %4684 = vmatpush3.msra.mxu1 %v2244_v9 }
0x1317   :  { %4685 = vmatprep.subr.mxu1 %v2243_v18 }
0x1318   :  { %4686 = vmatpush3.msra.mxu1 %v2243_v18 }
0x1319   :  { %4710 = vmatprep.subr.mxu1 %v5296_v11 }
0x13b9   :  { %v1948_v61 = vpop.f32.mrf.mxu0 }
0x13ba   :  { %v1949_v48 = vadd.f32 %v5114_v47, %v1948_v61  ;;  %v5982_v61 = vld [vmem:[#allocation12 + $0x8] sm:$0xff] }
0x13bb   :  { %v4631_v44 = vpop.f32.mrf.mxu0  ;;  %v5985_v47 = vld [vmem:[#allocation9 + $0x8] sm:$0xff] }
0x13bc   :  { %1960 = vrot.lane.b32.xlu0 %v1949_v48, %s5298_s21  ;;  %v1952_v56 = vadd.f32 %v1949_v48, %v5575_v36  ;;  %v2091_v48 = vld [vmem:[#allocation2 + $0x30] sm:$0xff]  ;;  %v5991_v44 = vld [vmem:[#allocation12] sm:$0xff] }
0x13be   :  { %v4147_v58 = vmul.f32 -1.442695, %v1952_v56 }
0x13c0   :  { %5000 = vpow2.f32 %v4147_v58 }
0x13c9   :  { %v2054_v50 = vpop.f32.mrf.mxu1 }
0x13ca   :  { %v2055_v52 = vadd.f32 %v5606_v60, %v2054_v50  ;;  %v5993_v50 = vld [vmem:[#allocation9] sm:$0xff] }
0x13cb   :  { %v4642_v54 = vpop.f32.mrf.mxu1 }
0x13cc   :  { %2066 = vrot.lane.b32.xlu1 %v2055_v52, %s5298_s21  ;;  %v2058_v29 = vadd.f32 %v2055_v52, %v5592_v49 }
0x13cd   :  { %v5001_v53 = vpop.eup %5000 }
0x13ce   :  { %v4149_v59 = vmul.f32 -1.442695, %v2058_v29  ;;  %v1956_v62 = vadd.f32 1.0, %v5001_v53 }
0x13d0   :  { %5002 = vpow2.f32 %v4149_v59 }
0x13d1   :  { %5004 = vrcp.f32 %v1956_v62 }
0x13dd   :  { %v5003_v63 = vpop.eup %5002 }
0x13de   :  { %v2062_v0 = vadd.f32 1.0, %v5003_v63  ;;  %v5911_v1 = vpop.eup %5004 }
0x13df   :  { %v1970_v21 = vsub.f32 1.0, %v5911_v1  ;;  %v1976_v26 = vmul.f32 %v5911_v1, %v5889_v38  ;;  %v5959_v38 = vld [vmem:[#allocation12 + $0x18] sm:$0xff] }
0x13e0   :  { %5006 = vrcp.f32 %v2062_v0 }
0x13ed   :  { %v5915_v3 = vpop.eup %5006 }
0x13ee   :  { %v2076_v30 = vsub.f32 1.0, %v5915_v3  ;;  %v2082_v31 = vmul.f32 %v5915_v3, %v5894_v28  ;;  %v5973_v28 = vld [vmem:[#allocation9 + $0x10] sm:$0xff] }
0x142e   :  { %v1961_v2 = vpop.permute.xlu0 %1960 }
0x142f   :  { %v1963_v60 = vmul.f32 %v5911_v1, %v1961_v2 }
0x1431   :  { %1965 = vrot.lane.b32.xlu0 %v1963_v60, %s5298_s21 }
0x143e   :  { %v2067_v4 = vpop.permute.xlu1 %2066 }
0x143f   :  { %v2069_v5 = vmul.f32 %v5915_v3, %v2067_v4 }
0x1441   :  { %2071 = vrot.lane.b32.xlu1 %v2069_v5, %s5298_s21 }
0x14a3   :  { %v1966_v6 = vpop.permute.xlu0 %1965 }
0x14a4   :  { %v1968_v7 = vadd.f32 %v1966_v6, %v5575_v36 }
0x14a6   :  { %5008 = vtanh.f32 %v1968_v7 }
0x14b3   :  { %v5009_v36 = vpop.eup %5008  ;;  %v2072_v32 = vpop.permute.xlu1 %2071 }
0x14b4   :  { %v2074_v15 = vadd.f32 %v2072_v32, %v5592_v49  ;;  %1972 = vrot.lane.b32.xlu0 %v5009_v36, %s5299_s8  ;;  %v2096_v49 = vld [vmem:[%s6405_s9 + $0x18] sm:$0xff] }
0x14b5   :  { %4651 = vmatprep.subr.mxu0 %v2096_v49 }
0x14b6   :  { %5010 = vtanh.f32 %v2074_v15  ;;  %4652 = vmatpush3.msra.mxu0 %v2096_v49 }
0x14b7   :  { %4653 = vmatprep.subr.mxu0 %v2095_v19 }
0x14b8   :  { %4654 = vmatpush3.msra.mxu0 %v2095_v19 }
0x14b9   :  { %4655 = vmatprep.subr.mxu0 %v2094_v25 }
0x14ba   :  { %4656 = vmatpush3.msra.mxu0 %v2094_v25 }
0x14bb   :  { %4657 = vmatprep.subr.mxu0 %v2093_v14 }
0x14bc   :  { %4658 = vmatpush3.msra.mxu0 %v2093_v14 }
0x14bd   :  { %4699 = vmatprep.subr.mxu0 %v5296_v11 }
0x14c3   :  { %v5011_v20 = vpop.eup %5010 }
0x14c4   :  { %2078 = vrot.lane.b32.xlu1 %v5011_v20, %s5299_s8 }
0x1526   :  { %v1973_v22 = vpop.permute.xlu0 %1972 }
0x1527   :  { %v1975_v27 = vmul.f32 %v1973_v22, %v1970_v21 }
0x1529   :  { %v1977_v35 = vadd.f32 %v1976_v26, %v1975_v27 }
0x152b   :  { %1979 = vrot.lane.b32.xlu0 %v1977_v35, %s5299_s8 }
0x1536   :  { %v2079_v57 = vpop.permute.xlu1 %2078 }
0x1537   :  { %v2081_v33 = vmul.f32 %v2079_v57, %v2076_v30 }
0x1539   :  { %v2083_v34 = vadd.f32 %v2082_v31, %v2081_v33 }
0x153b   :  { %2084 = vst.msk [vmem:[#allocation2] sm:$0xff] %vm648_vm2, %v2083_v34 }
0x1542   :  { %v2085_v37 = vld [vmem:[#allocation2] sm:$0xff] }
0x1543   :  { %4659 = vmatprep.mubr.msk.f32.mxu0 %vm2113_vm3, %v2085_v37  ;;  %4687 = vmatprep.mubr.msk.f32.mxu1 %vm2113_vm3, %v2085_v37 }
0x1544   :  { %4660 = vmatmul.mubr.msk.f32.vlgmr.msra.gmra.mxu0 %vm2113_vm3, %v2086_v39  ;;  %4688 = vmatmul.mubr.msk.f32.vlgmr.msra.gmra.mxu1 %vm2113_vm3, %v2086_v39 }
0x1545   :  { %4662 = vmatprep.mubr.msk.f32.mxu0 %vm2113_vm3, %v2087_v55  ;;  %4690 = vmatprep.mubr.msk.f32.mxu1 %vm2113_vm3, %v2087_v55 }
0x1546   :  { %4711 = vmatpush3.msra.mxu1 %v5959_v38  ;;  %4700 = vmatpush3.msra.mxu0 %v5961_v40 }
0x1547   :  { %4712 = vmatprep.subr.mxu1 %v5296_v11  ;;  %4701 = vmatprep.subr.mxu0 %v5296_v11 }
0x1548   :  { %4663 = vmatmul.mubr.msk.f32.gmra.mxu0 %vm2113_vm3, %v2088_v45  ;;  %4691 = vmatmul.mubr.msk.f32.gmra.mxu1 %vm2113_vm3, %v2088_v45 }
0x1549   :  { %4665 = vmatprep.mubr.msk.f32.mxu0 %vm2113_vm3, %v2089_v43  ;;  %4693 = vmatprep.mubr.msk.f32.mxu1 %vm2113_vm3, %v2089_v43 }
0x154a   :  { %4713 = vmatpush3.msra.mxu1 %v5970_v41  ;;  %4702 = vmatpush3.msra.mxu0 %v5973_v28 }
0x154b   :  { %4714 = vmatprep.subr.mxu1 %v5296_v11  ;;  %4703 = vmatprep.subr.mxu0 %v5296_v11 }
0x154c   :  { %4666 = vmatmul.mubr.msk.f32.gmra.mxu0 %vm2113_vm3, %v2090_v46  ;;  %4694 = vmatmul.mubr.msk.f32.gmra.mxu1 %vm2113_vm3, %v2090_v46 }
0x154d   :  { %4668 = vmatprep.mubr.msk.f32.mxu0 %vm2113_vm3, %v2091_v48  ;;  %4696 = vmatprep.mubr.msk.f32.mxu1 %vm2113_vm3, %v2091_v48 }
0x154e   :  { %4715 = vmatpush3.msra.mxu1 %v5982_v61  ;;  %4704 = vmatpush3.msra.mxu0 %v5985_v47 }
0x154f   :  { %4716 = vmatprep.subr.mxu1 %v5296_v11  ;;  %4705 = vmatprep.subr.mxu0 %v5296_v11 }
0x1550   :  { %4717 = vmatpush3.msra.mxu1 %v5991_v44  ;;  %4706 = vmatpush3.msra.mxu0 %v5993_v50 }
0x1551   :  { %4721 = vmatprep.subr.mxu0 %v5296_v11  ;;  %4732 = vmatprep.subr.mxu1 %v5296_v11 }
0x159d   :  { %v1980_v52 = vpop.permute.xlu0 %1979 }
0x159e   :  { %1982 = vst.msk [vmem:[#allocation2 + $0x38] sm:$0xff] %vm185_vm0, %v1980_v52 }
0x15a5   :  { %v2092_v54 = vld [vmem:[#allocation2 + $0x38] sm:$0xff] }
0x15a6   :  { %4669 = vmatmul.mubr.msk.f32.gmra.mxu0 %vm2113_vm3, %v2092_v54  ;;  %4697 = vmatmul.mubr.msk.f32.gmra.mxu1 %vm2113_vm3, %v2092_v54 }
0x15a7   :  { %4707 = vmatprep.mubr.msk.f32.mxu0 %vm5297_vm1, %v5296_v11  ;;  %4718 = vmatprep.mubr.msk.f32.mxu1 %vm5297_vm1, %v5296_v11 }
0x15aa   :  { %4708 = vmatmul.mubr.f32.vlgmr.msra.gmra.mxu0 %v5296_v11  ;;  %4719 = vmatmul.mubr.f32.vlgmr.msra.gmra.mxu1 %v5296_v11 }
0x15ab   :  { %4722 = vmatpush3.msra.mxu0 %v5961_v40  ;;  %4733 = vmatpush3.msra.mxu1 %v5959_v38 }
0x15ac   :  { %4723 = vmatprep.subr.mxu0 %v5296_v11  ;;  %4734 = vmatprep.subr.mxu1 %v5296_v11 }
0x15ad   :  { %4724 = vmatpush3.msra.mxu0 %v5973_v28  ;;  %4735 = vmatpush3.msra.mxu1 %v5970_v41 }
0x15ae   :  { %4725 = vmatprep.subr.mxu0 %v5296_v11  ;;  %4736 = vmatprep.subr.mxu1 %v5296_v11 }
0x15af   :  { %4726 = vmatpush3.msra.mxu0 %v5985_v47  ;;  %4737 = vmatpush3.msra.mxu1 %v5982_v61 }
0x15b0   :  { %4727 = vmatprep.subr.mxu0 %v5296_v11  ;;  %4738 = vmatprep.subr.mxu1 %v5296_v11 }
0x15b1   :  { %4739 = vmatpush3.msra.mxu1 %v5991_v44  ;;  %4740 = vmatprep.mubr.msk.f32.mxu1 %vm5297_vm1, %v5296_v11 }
0x15b2   :  { %4728 = vmatpush3.msra.mxu0 %v5993_v50  ;;  %4729 = vmatprep.mubr.msk.f32.mxu0 %vm5297_vm1, %v5296_v11 }
0x15b3   :  { %4743 = vmatprep.subr.mxu0 %v5296_v11  ;;  %4754 = vmatprep.subr.mxu1 %v5296_v11 }
0x1604   :  { %v6032_v56 = vpop.f32.mrf.mxu0  ;;  %v6034_v58 = vpop.f32.mrf.mxu1 }
0x1606   :  { %v2204_v29 = vpop.f32.mrf.mxu0  ;;  %v6036_v59 = vpop.f32.mrf.mxu1 }
0x1607   :  { %v2205_v17 = vadd.f32 %v6077_v16, %v2204_v29 }
0x1608   :  { %v6038_v53 = vpop.f32.mrf.mxu0  ;;  %v6040_v62 = vpop.f32.mrf.mxu1 }
0x160a   :  { %v6042_v63 = vpop.f32.mrf.mxu0  ;;  %v6044_v0 = vpop.f32.mrf.mxu1 }
0x160c   :  { %v6046_v1 = vpop.f32.mrf.mxu0  ;;  %v6048_v2 = vpop.f32.mrf.mxu1 }
0x160e   :  { %v6050_v60 = vpop.f32.mrf.mxu0  ;;  %v6052_v3 = vpop.f32.mrf.mxu1 }
0x1666   :  { %v6054_v4 = vpop.f32.mrf.mxu0  ;;  %v4698_v5 = vpop.f32.mrf.mxu1 }
0x1667   :  { %v2365_v49 = vadd.f32 %v4698_v5, %v6082_v23 }
0x1668   :  { %v6056_v6 = vpop.f32.mrf.mxu0  ;;  %v6058_v7 = vpop.f32.mrf.mxu1 }
0x166a   :  { %v2440_v12 = vpop.f32.mrf.mxu0  ;;  %v2542_v13 = vpop.f32.mrf.mxu1 }
0x166b   :  { %v2441_v36 = vadd.f32 %v6063_v8, %v2440_v12  ;;  %v2543_v32 = vadd.f32 %v6068_v10, %v2542_v13 }
0x166c   :  { %v4720_v15 = vpop.f32.mrf.mxu1  ;;  %v4709_v51 = vpop.f32.mrf.mxu0 }
0x166d   :  { %2554 = vrot.lane.b32.xlu1 %v2543_v32, %s5298_s21  ;;  %2452 = vrot.lane.b32.xlu0 %v2441_v36, %s5298_s21  ;;  %v2444_v24 = vadd.f32 %v2441_v36, %v2205_v17  ;;  %v2546_v19 = vadd.f32 %v2543_v32, %v2365_v49 }
0x166f   :  { %v4169_v42 = vmul.f32 -1.442695, %v2444_v24  ;;  %v4171_v25 = vmul.f32 -1.442695, %v2546_v19  ;;  %v2360_v19 = vadd.f32 %v6082_v23, %v6058_v7 }
0x1671   :  { %5012 = vpow2.f32 %v4169_v42  ;;  %v2210_v42 = vadd.f32 %v6032_v56, %v6077_v16 }
0x1672   :  { %5014 = vpow2.f32 %v4171_v25 }
0x167e   :  { %v5013_v9 = vpop.eup %5012 }
0x167f   :  { %v5015_v14 = vpop.eup %5014  ;;  %v2448_v18 = vadd.f32 1.0, %v5013_v9 }
0x1680   :  { %v2550_v20 = vadd.f32 1.0, %v5015_v14 }
0x1681   :  { %5016 = vrcp.f32 %v2448_v18 }
0x1682   :  { %5018 = vrcp.f32 %v2550_v20 }
0x168e   :  { %v5017_v21 = vpop.eup %5016 }
0x168f   :  { %v5019_v22 = vpop.eup %5018  ;;  %v2462_v43 = vsub.f32 1.0, %v5017_v21  ;;  %v2468_v54 = vmul.f32 0.0, %v5017_v21 }
0x1690   :  { %v2564_v55 = vsub.f32 1.0, %v5019_v22  ;;  %v2570_v46 = vmul.f32 0.0, %v5019_v22 }
0x16df   :  { %v2555_v26 = vpop.permute.xlu1 %2554  ;;  %v2453_v27 = vpop.permute.xlu0 %2452 }
0x16e0   :  { %v2557_v35 = vmul.f32 %v5019_v22, %v2555_v26  ;;  %v2455_v30 = vmul.f32 %v5017_v21, %v2453_v27 }
0x16e2   :  { %2559 = vrot.lane.b32.xlu1 %v2557_v35, %s5298_s21  ;;  %2457 = vrot.lane.b32.xlu0 %v2455_v30, %s5298_s21 }
0x1754   :  { %v2560_v57 = vpop.permute.xlu1 %2559  ;;  %v2458_v31 = vpop.permute.xlu0 %2457 }
0x1755   :  { %v2562_v33 = vadd.f32 %v2560_v57, %v2365_v49  ;;  %v2460_v34 = vadd.f32 %v2458_v31, %v2205_v17 }
0x1757   :  { %5020 = vtanh.f32 %v2562_v33 }
0x1758   :  { %5022 = vtanh.f32 %v2460_v34 }
0x1764   :  { %v5021_v37 = vpop.eup %5020 }
0x1765   :  { %v5023_v39 = vpop.eup %5022  ;;  %2566 = vrot.lane.b32.xlu1 %v5021_v37, %s5299_s8 }
0x1766   :  { %2464 = vrot.lane.b32.xlu0 %v5023_v39, %s5299_s8 }
0x17d7   :  { %v2567_v45 = vpop.permute.xlu1 %2566 }
0x17d8   :  { %v2569_v48 = vmul.f32 %v2567_v45, %v2564_v55  ;;  %v2465_v52 = vpop.permute.xlu0 %2464 }
0x17d9   :  { %v2467_v29 = vmul.f32 %v2465_v52, %v2462_v43 }
0x17da   :  { %v6090_v5 = vadd.f32 %v2570_v46, %v2569_v48 }
0x17db   :  { %v6092_v12 = vadd.f32 %v2468_v54, %v2467_v29 }
0x17dc   :  { %2674 = vrot.lane.b32.xlu1 %v6090_v5, %s5299_s8 }
0x17dd   :  { %2573 = vrot.lane.b32.xlu0 %v6092_v12, %s5299_s8 }
0x184e   :  { %v2675_v13 = vpop.permute.xlu1 %2674 }
0x184f   :  { %v2574_v36 = vpop.permute.xlu0 %2573  ;;  %4741 = vmatmul.mubr.msk.f32.vlgmr.msra.gmra.mxu1 %vm185_vm0, %v2675_v13 }
0x1850   :  { %4730 = vmatmul.mubr.msk.f32.vlgmr.msra.gmra.mxu0 %vm185_vm0, %v2574_v36  ;;  %4755 = vmatpush3.msra.mxu1 %v5959_v38 }
0x1851   :  { %4744 = vmatpush3.msra.mxu0 %v5961_v40  ;;  %4756 = vmatprep.subr.mxu1 %v5296_v11 }
0x1852   :  { %4745 = vmatprep.subr.mxu0 %v5296_v11  ;;  %4757 = vmatpush3.msra.mxu1 %v5970_v41 }
0x1853   :  { %4746 = vmatpush3.msra.mxu0 %v5973_v28  ;;  %4758 = vmatprep.subr.mxu1 %v5296_v11 }
0x1854   :  { %4747 = vmatprep.subr.mxu0 %v5296_v11  ;;  %4759 = vmatpush3.msra.mxu1 %v5982_v61 }
0x1855   :  { %4748 = vmatpush3.msra.mxu0 %v5985_v47  ;;  %4760 = vmatprep.subr.mxu1 %v5296_v11 }
0x1856   :  { %4749 = vmatprep.subr.mxu0 %v5296_v11  ;;  %4761 = vmatpush3.msra.mxu1 %v5991_v44 }
0x1857   :  { %4762 = vmatprep.mubr.msk.f32.mxu1 %vm5297_vm1, %v5296_v11  ;;  %4750 = vmatpush3.msra.mxu0 %v5993_v50 }
0x1858   :  { %4751 = vmatprep.mubr.msk.f32.mxu0 %vm5297_vm1, %v5296_v11  ;;  %4765 = vmatprep.subr.mxu0 %v5296_v11 }
0x1859   :  { %4776 = vmatprep.subr.mxu1 %v5296_v11 }
0x190f   :  { %v2744_v32 = vpop.f32.mrf.mxu1 }
0x1910   :  { %v2643_v15 = vpop.f32.mrf.mxu0  ;;  %v2745_v51 = vadd.f32 %v6068_v10, %v2744_v32 }
0x1911   :  { %v2644_v17 = vadd.f32 %v6063_v8, %v2643_v15  ;;  %v4742_v49 = vpop.f32.mrf.mxu1 }
0x1912   :  { %v4731_v24 = vpop.f32.mrf.mxu0  ;;  %2756 = vrot.lane.b32.xlu1 %v2745_v51, %s5298_s21  ;;  %v2748_v25 = vadd.f32 %v2745_v51, %v2360_v19 }
0x1913   :  { %2655 = vrot.lane.b32.xlu0 %v2644_v17, %s5298_s21  ;;  %v2647_v9 = vadd.f32 %v2644_v17, %v2210_v42 }
0x1914   :  { %v4175_v14 = vmul.f32 -1.442695, %v2748_v25  ;;  %v2215_v25 = vadd.f32 %v6077_v16, %v6042_v63 }
0x1915   :  { %v4173_v18 = vmul.f32 -1.442695, %v2647_v9 }
0x1916   :  { %5024 = vpow2.f32 %v4175_v14 }
0x1917   :  { %5026 = vpow2.f32 %v4173_v18 }
0x1923   :  { %v5025_v20 = vpop.eup %5024 }
0x1924   :  { %v5027_v21 = vpop.eup %5026  ;;  %v2752_v22 = vadd.f32 1.0, %v5025_v20 }
0x1925   :  { %v2651_v26 = vadd.f32 1.0, %v5027_v21 }
0x1926   :  { %5028 = vrcp.f32 %v2752_v22 }
0x1927   :  { %5030 = vrcp.f32 %v2651_v26 }
0x1933   :  { %v5029_v27 = vpop.eup %5028 }
0x1934   :  { %v5031_v30 = vpop.eup %5030  ;;  %v2766_v45 = vsub.f32 1.0, %v5029_v27  ;;  %v2772_v48 = vmul.f32 %v5029_v27, %v6090_v5 }
0x1935   :  { %v2665_v46 = vsub.f32 1.0, %v5031_v30  ;;  %v2671_v29 = vmul.f32 %v5031_v30, %v6092_v12 }
0x1984   :  { %v2757_v35 = vpop.permute.xlu1 %2756 }
0x1985   :  { %v2759_v57 = vmul.f32 %v5029_v27, %v2757_v35  ;;  %v2656_v7 = vpop.permute.xlu0 %2655 }
0x1986   :  { %v2658_v31 = vmul.f32 %v5031_v30, %v2656_v7 }
0x1987   :  { %2761 = vrot.lane.b32.xlu1 %v2759_v57, %s5298_s21 }
0x1988   :  { %2660 = vrot.lane.b32.xlu0 %v2658_v31, %s5298_s21 }
0x19f9   :  { %v2762_v56 = vpop.permute.xlu1 %2761 }
0x19fa   :  { %v2764_v33 = vadd.f32 %v2762_v56, %v2360_v19  ;;  %v2661_v34 = vpop.permute.xlu0 %2660 }
0x19fb   :  { %v2663_v37 = vadd.f32 %v2661_v34, %v2210_v42  ;;  %v2355_v42 = vadd.f32 %v6048_v2, %v6082_v23 }
0x19fc   :  { %5032 = vtanh.f32 %v2764_v33 }
0x19fd   :  { %5034 = vtanh.f32 %v2663_v37 }
0x1a09   :  { %v5033_v39 = vpop.eup %5032 }
0x1a0a   :  { %v5035_v55 = vpop.eup %5034  ;;  %2768 = vrot.lane.b32.xlu1 %v5033_v39, %s5299_s8 }
0x1a0b   :  { %2667 = vrot.lane.b32.xlu0 %v5035_v55, %s5299_s8 }
0x1a7c   :  { %v2769_v43 = vpop.permute.xlu1 %2768 }
0x1a7d   :  { %v2771_v52 = vmul.f32 %v2769_v43, %v2766_v45  ;;  %v2668_v54 = vpop.permute.xlu0 %2667 }
0x1a7e   :  { %v2670_v13 = vmul.f32 %v2668_v54, %v2665_v46 }
0x1a7f   :  { %v6134_v36 = vadd.f32 %v2772_v48, %v2771_v52 }
0x1a80   :  { %v6136_v32 = vadd.f32 %v2671_v29, %v2670_v13 }
0x1a81   :  { %2876 = vrot.lane.b32.xlu1 %v6134_v36, %s5299_s8 }
0x1a82   :  { %2775 = vrot.lane.b32.xlu0 %v6136_v32, %s5299_s8 }
0x1af3   :  { %v2877_v15 = vpop.permute.xlu1 %2876 }
0x1af4   :  { %v2776_v51 = vpop.permute.xlu0 %2775  ;;  %4763 = vmatmul.mubr.msk.f32.vlgmr.msra.gmra.mxu1 %vm185_vm0, %v2877_v15 }
0x1af5   :  { %4752 = vmatmul.mubr.msk.f32.vlgmr.msra.gmra.mxu0 %vm185_vm0, %v2776_v51  ;;  %4777 = vmatpush3.msra.mxu1 %v5959_v38 }
0x1af6   :  { %4766 = vmatpush3.msra.mxu0 %v5961_v40  ;;  %4778 = vmatprep.subr.mxu1 %v5296_v11 }
0x1af7   :  { %4767 = vmatprep.subr.mxu0 %v5296_v11  ;;  %4779 = vmatpush3.msra.mxu1 %v5970_v41 }
0x1af8   :  { %4768 = vmatpush3.msra.mxu0 %v5973_v28  ;;  %4780 = vmatprep.subr.mxu1 %v5296_v11 }
0x1af9   :  { %4769 = vmatprep.subr.mxu0 %v5296_v11  ;;  %4781 = vmatpush3.msra.mxu1 %v5982_v61 }
0x1afa   :  { %4770 = vmatpush3.msra.mxu0 %v5985_v47  ;;  %4782 = vmatprep.subr.mxu1 %v5296_v11 }
0x1afb   :  { %4771 = vmatprep.subr.mxu0 %v5296_v11  ;;  %4783 = vmatpush3.msra.mxu1 %v5991_v44 }
0x1afc   :  { %4784 = vmatprep.mubr.msk.f32.mxu1 %vm5297_vm1, %v5296_v11  ;;  %4772 = vmatpush3.msra.mxu0 %v5993_v50 }
0x1afd   :  { %4773 = vmatprep.mubr.msk.f32.mxu0 %vm5297_vm1, %v5296_v11  ;;  %4787 = vmatprep.subr.mxu0 %v5296_v11 }
0x1afe   :  { %4798 = vmatprep.subr.mxu1 %v5296_v11 }
0x1bb4   :  { %v2946_v5 = vpop.f32.mrf.mxu1 }
0x1bb5   :  { %v2845_v12 = vpop.f32.mrf.mxu0  ;;  %v2947_v17 = vadd.f32 %v6068_v10, %v2946_v5 }
0x1bb6   :  { %v2846_v49 = vadd.f32 %v6063_v8, %v2845_v12  ;;  %v4764_v24 = vpop.f32.mrf.mxu1 }
0x1bb7   :  { %v4753_v19 = vpop.f32.mrf.mxu0  ;;  %2958 = vrot.lane.b32.xlu1 %v2947_v17, %s5298_s21  ;;  %v2950_v9 = vadd.f32 %v2947_v17, %v2355_v42 }
0x1bb8   :  { %2857 = vrot.lane.b32.xlu0 %v2846_v49, %s5298_s21  ;;  %v2849_v14 = vadd.f32 %v2846_v49, %v2215_v25  ;;  %v2350_v19 = vadd.f32 %v6082_v23, %v6052_v3 }
0x1bb9   :  { %v4179_v18 = vmul.f32 -1.442695, %v2950_v9 }
0x1bba   :  { %v4177_v20 = vmul.f32 -1.442695, %v2849_v14 }
0x1bbb   :  { %5036 = vpow2.f32 %v4179_v18 }
0x1bbc   :  { %5038 = vpow2.f32 %v4177_v20 }
0x1bc8   :  { %v5037_v21 = vpop.eup %5036 }
0x1bc9   :  { %v5039_v22 = vpop.eup %5038  ;;  %v2954_v26 = vadd.f32 1.0, %v5037_v21 }
0x1bca   :  { %v2853_v27 = vadd.f32 1.0, %v5039_v22 }
0x1bcb   :  { %5040 = vrcp.f32 %v2954_v26 }
0x1bcc   :  { %5042 = vrcp.f32 %v2853_v27 }
0x1bd8   :  { %v5041_v35 = vpop.eup %5040 }
0x1bd9   :  { %v5043_v57 = vpop.eup %5042  ;;  %v2968_v55 = vsub.f32 1.0, %v5041_v35  ;;  %v2974_v46 = vmul.f32 %v5041_v35, %v6134_v36 }
0x1bda   :  { %v2867_v43 = vsub.f32 1.0, %v5043_v57  ;;  %v2873_v54 = vmul.f32 %v5043_v57, %v6136_v32 }
0x1c29   :  { %v2959_v30 = vpop.permute.xlu1 %2958 }
0x1c2a   :  { %v2961_v7 = vmul.f32 %v5041_v35, %v2959_v30  ;;  %v2858_v2 = vpop.permute.xlu0 %2857 }
0x1c2b   :  { %v2860_v31 = vmul.f32 %v5043_v57, %v2858_v2 }
0x1c2c   :  { %2963 = vrot.lane.b32.xlu1 %v2961_v7, %s5298_s21 }
0x1c2d   :  { %2862 = vrot.lane.b32.xlu0 %v2860_v31, %s5298_s21 }
0x1c9e   :  { %v2964_v63 = vpop.permute.xlu1 %2963 }
0x1c9f   :  { %v2966_v56 = vadd.f32 %v2964_v63, %v2355_v42  ;;  %v2863_v33 = vpop.permute.xlu0 %2862  ;;  %v2220_v42 = vadd.f32 %v6038_v53, %v6077_v16 }
0x1ca0   :  { %v2865_v34 = vadd.f32 %v2863_v33, %v2215_v25 }
0x1ca1   :  { %5044 = vtanh.f32 %v2966_v56 }
0x1ca2   :  { %5046 = vtanh.f32 %v2865_v34 }
0x1cae   :  { %v5045_v37 = vpop.eup %5044 }
0x1caf   :  { %v5047_v39 = vpop.eup %5046  ;;  %2970 = vrot.lane.b32.xlu1 %v5045_v37, %s5299_s8 }
0x1cb0   :  { %2869 = vrot.lane.b32.xlu0 %v5047_v39, %s5299_s8 }
0x1d21   :  { %v2971_v45 = vpop.permute.xlu1 %2970 }
0x1d22   :  { %v2973_v48 = vmul.f32 %v2971_v45, %v2968_v55  ;;  %v2870_v52 = vpop.permute.xlu0 %2869 }
0x1d23   :  { %v2872_v29 = vmul.f32 %v2870_v52, %v2867_v43 }
0x1d24   :  { %v6178_v13 = vadd.f32 %v2974_v46, %v2973_v48 }
0x1d25   :  { %v6180_v15 = vadd.f32 %v2873_v54, %v2872_v29 }
0x1d26   :  { %3078 = vrot.lane.b32.xlu1 %v6178_v13, %s5299_s8 }
0x1d27   :  { %2977 = vrot.lane.b32.xlu0 %v6180_v15, %s5299_s8 }
0x1d98   :  { %v3079_v51 = vpop.permute.xlu1 %3078 }
0x1d99   :  { %v2978_v5 = vpop.permute.xlu0 %2977  ;;  %4785 = vmatmul.mubr.msk.f32.vlgmr.msra.gmra.mxu1 %vm185_vm0, %v3079_v51 }
0x1d9a   :  { %4774 = vmatmul.mubr.msk.f32.vlgmr.msra.gmra.mxu0 %vm185_vm0, %v2978_v5  ;;  %4799 = vmatpush3.msra.mxu1 %v5959_v38 }
0x1d9b   :  { %4788 = vmatpush3.msra.mxu0 %v5961_v40  ;;  %4800 = vmatprep.subr.mxu1 %v5296_v11 }
0x1d9c   :  { %4789 = vmatprep.subr.mxu0 %v5296_v11  ;;  %4801 = vmatpush3.msra.mxu1 %v5970_v41 }
0x1d9d   :  { %4790 = vmatpush3.msra.mxu0 %v5973_v28  ;;  %4802 = vmatprep.subr.mxu1 %v5296_v11 }
0x1d9e   :  { %4791 = vmatprep.subr.mxu0 %v5296_v11  ;;  %4803 = vmatpush3.msra.mxu1 %v5982_v61 }
0x1d9f   :  { %4792 = vmatpush3.msra.mxu0 %v5985_v47  ;;  %4804 = vmatprep.subr.mxu1 %v5296_v11 }
0x1da0   :  { %4793 = vmatprep.subr.mxu0 %v5296_v11  ;;  %4805 = vmatpush3.msra.mxu1 %v5991_v44 }
0x1da1   :  { %4806 = vmatprep.mubr.msk.f32.mxu1 %vm5297_vm1, %v5296_v11  ;;  %4794 = vmatpush3.msra.mxu0 %v5993_v50 }
0x1da2   :  { %4795 = vmatprep.mubr.msk.f32.mxu0 %vm5297_vm1, %v5296_v11  ;;  %4809 = vmatprep.subr.mxu0 %v5296_v11 }
0x1da3   :  { %4820 = vmatprep.subr.mxu1 %v5296_v11 }
0x1e59   :  { %v3148_v36 = vpop.f32.mrf.mxu1 }
0x1e5a   :  { %v3047_v32 = vpop.f32.mrf.mxu0  ;;  %v3149_v12 = vadd.f32 %v6068_v10, %v3148_v36 }
0x1e5b   :  { %v3048_v17 = vadd.f32 %v6063_v8, %v3047_v32  ;;  %v4786_v49 = vpop.f32.mrf.mxu1 }
0x1e5c   :  { %v4775_v24 = vpop.f32.mrf.mxu0  ;;  %3160 = vrot.lane.b32.xlu1 %v3149_v12, %s5298_s21  ;;  %v3152_v25 = vadd.f32 %v3149_v12, %v2350_v19  ;;  %v2225_v49 = vadd.f32 %v6077_v16, %v6050_v60 }
0x1e5d   :  { %3059 = vrot.lane.b32.xlu0 %v3048_v17, %s5298_s21  ;;  %v3051_v9 = vadd.f32 %v3048_v17, %v2220_v42  ;;  %v2345_v17 = vadd.f32 %v6040_v62, %v6082_v23 }
0x1e5e   :  { %v4183_v14 = vmul.f32 -1.442695, %v3152_v25 }
0x1e5f   :  { %v4181_v18 = vmul.f32 -1.442695, %v3051_v9 }
0x1e60   :  { %5048 = vpow2.f32 %v4183_v14 }
0x1e61   :  { %5050 = vpow2.f32 %v4181_v18 }
0x1e6d   :  { %v5049_v20 = vpop.eup %5048 }
0x1e6e   :  { %v5051_v21 = vpop.eup %5050  ;;  %v3156_v22 = vadd.f32 1.0, %v5049_v20 }
0x1e6f   :  { %v3055_v26 = vadd.f32 1.0, %v5051_v21 }
0x1e70   :  { %5052 = vrcp.f32 %v3156_v22 }
0x1e71   :  { %5054 = vrcp.f32 %v3055_v26 }
0x1e7d   :  { %v5053_v27 = vpop.eup %5052 }
0x1e7e   :  { %v5055_v30 = vpop.eup %5054  ;;  %v3170_v34 = vsub.f32 1.0, %v5053_v27  ;;  %v3176_v55 = vmul.f32 %v5053_v27, %v6178_v13 }
0x1e7f   :  { %v3069_v39 = vsub.f32 1.0, %v5055_v30  ;;  %v3075_v46 = vmul.f32 %v5055_v30, %v6180_v15 }
0x1ece   :  { %v3161_v35 = vpop.permute.xlu1 %3160 }
0x1ecf   :  { %v3163_v57 = vmul.f32 %v5053_v27, %v3161_v35  ;;  %v3060_v3 = vpop.permute.xlu0 %3059 }
0x1ed0   :  { %v3062_v7 = vmul.f32 %v5055_v30, %v3060_v3 }
0x1ed1   :  { %3165 = vrot.lane.b32.xlu1 %v3163_v57, %s5298_s21 }
0x1ed2   :  { %3064 = vrot.lane.b32.xlu0 %v3062_v7, %s5298_s21 }
0x1f43   :  { %v3166_v53 = vpop.permute.xlu1 %3165 }
0x1f44   :  { %v3168_v2 = vadd.f32 %v3166_v53, %v2350_v19  ;;  %v3065_v31 = vpop.permute.xlu0 %3064 }
0x1f45   :  { %v3067_v63 = vadd.f32 %v3065_v31, %v2220_v42 }
0x1f46   :  { %5056 = vtanh.f32 %v3168_v2 }
0x1f47   :  { %5058 = vtanh.f32 %v3067_v63 }
0x1f53   :  { %v5057_v56 = vpop.eup %5056 }
0x1f54   :  { %v5059_v33 = vpop.eup %5058  ;;  %3172 = vrot.lane.b32.xlu1 %v5057_v56, %s5299_s8 }
0x1f55   :  { %3071 = vrot.lane.b32.xlu0 %v5059_v33, %s5299_s8 }
0x1fc6   :  { %v3173_v37 = vpop.permute.xlu1 %3172 }
0x1fc7   :  { %v3175_v45 = vmul.f32 %v3173_v37, %v3170_v34  ;;  %v3072_v43 = vpop.permute.xlu0 %3071 }
0x1fc8   :  { %v3074_v48 = vmul.f32 %v3072_v43, %v3069_v39 }
0x1fc9   :  { %v6222_v52 = vadd.f32 %v3176_v55, %v3175_v45 }
0x1fca   :  { %v6224_v54 = vadd.f32 %v3075_v46, %v3074_v48 }
0x1fcb   :  { %3280 = vrot.lane.b32.xlu1 %v6222_v52, %s5299_s8 }
0x1fcc   :  { %3179 = vrot.lane.b32.xlu0 %v6224_v54, %s5299_s8 }
0x203d   :  { %v3281_v29 = vpop.permute.xlu1 %3280 }
0x203e   :  { %v3180_v51 = vpop.permute.xlu0 %3179  ;;  %4807 = vmatmul.mubr.msk.f32.vlgmr.msra.gmra.mxu1 %vm185_vm0, %v3281_v29 }
0x203f   :  { %4796 = vmatmul.mubr.msk.f32.vlgmr.msra.gmra.mxu0 %vm185_vm0, %v3180_v51  ;;  %4821 = vmatpush3.msra.mxu1 %v5959_v38  ;;  %v2340_v51 = vadd.f32 %v6082_v23, %v6044_v0 }
0x2040   :  { %4810 = vmatpush3.msra.mxu0 %v5961_v40  ;;  %4822 = vmatprep.subr.mxu1 %v5296_v11 }
0x2041   :  { %4811 = vmatprep.subr.mxu0 %v5296_v11  ;;  %4823 = vmatpush3.msra.mxu1 %v5970_v41 }
0x2042   :  { %4812 = vmatpush3.msra.mxu0 %v5973_v28  ;;  %4824 = vmatprep.subr.mxu1 %v5296_v11 }
0x2043   :  { %4813 = vmatprep.subr.mxu0 %v5296_v11  ;;  %4825 = vmatpush3.msra.mxu1 %v5982_v61 }
0x2044   :  { %4814 = vmatpush3.msra.mxu0 %v5985_v47  ;;  %4826 = vmatprep.subr.mxu1 %v5296_v11 }
0x2045   :  { %4815 = vmatprep.subr.mxu0 %v5296_v11  ;;  %4827 = vmatpush3.msra.mxu1 %v5991_v44 }
0x2046   :  { %4828 = vmatprep.mubr.msk.f32.mxu1 %vm5297_vm1, %v5296_v11  ;;  %4816 = vmatpush3.msra.mxu0 %v5993_v50 }
0x2047   :  { %4817 = vmatprep.mubr.msk.f32.mxu0 %vm5297_vm1, %v5296_v11  ;;  %4831 = vmatprep.subr.mxu0 %v5296_v11 }
0x2048   :  { %4842 = vmatprep.subr.mxu1 %v5296_v11 }
0x20fe   :  { %v3350_v13 = vpop.f32.mrf.mxu1 }
0x20ff   :  { %v3249_v15 = vpop.f32.mrf.mxu0  ;;  %v3351_v5 = vadd.f32 %v6068_v10, %v3350_v13  ;;  %v2230_v13 = vadd.f32 %v6046_v1, %v6077_v16 }
0x2100   :  { %v3250_v36 = vadd.f32 %v6063_v8, %v3249_v15  ;;  %v4808_v32 = vpop.f32.mrf.mxu1 }
0x2101   :  { %v4797_v12 = vpop.f32.mrf.mxu0  ;;  %3362 = vrot.lane.b32.xlu1 %v3351_v5, %s5298_s21  ;;  %v3354_v24 = vadd.f32 %v3351_v5, %v2345_v17 }
0x2102   :  { %3261 = vrot.lane.b32.xlu0 %v3250_v36, %s5298_s21  ;;  %v3253_v19 = vadd.f32 %v3250_v36, %v2225_v49 }
0x2103   :  { %v4187_v42 = vmul.f32 -1.442695, %v3354_v24 }
0x2104   :  { %v4185_v25 = vmul.f32 -1.442695, %v3253_v19 }
0x2105   :  { %5060 = vpow2.f32 %v4187_v42 }
0x2106   :  { %5062 = vpow2.f32 %v4185_v25 }
0x2112   :  { %v5061_v9 = vpop.eup %5060 }
0x2113   :  { %v5063_v14 = vpop.eup %5062  ;;  %v3358_v18 = vadd.f32 1.0, %v5061_v9 }
0x2114   :  { %v3257_v20 = vadd.f32 1.0, %v5063_v14 }
0x2115   :  { %5064 = vrcp.f32 %v3358_v18 }
0x2116   :  { %5066 = vrcp.f32 %v3257_v20 }
0x2122   :  { %v5065_v21 = vpop.eup %5064 }
0x2123   :  { %v5067_v26 = vpop.eup %5066  ;;  %v3372_v2 = vsub.f32 1.0, %v5065_v21  ;;  %v3378_v56 = vmul.f32 %v5065_v21, %v6222_v52 }
0x2124   :  { %v3271_v63 = vsub.f32 1.0, %v5067_v26  ;;  %v3277_v37 = vmul.f32 %v5067_v26, %v6224_v54 }
0x2173   :  { %v3363_v22 = vpop.permute.xlu1 %3362 }
0x2174   :  { %v3365_v27 = vmul.f32 %v5065_v21, %v3363_v22  ;;  %v3262_v62 = vpop.permute.xlu0 %3261 }
0x2175   :  { %v3264_v35 = vmul.f32 %v5067_v26, %v3262_v62 }
0x2176   :  { %3367 = vrot.lane.b32.xlu1 %v3365_v27, %s5298_s21 }
0x2177   :  { %3266 = vrot.lane.b32.xlu0 %v3264_v35, %s5298_s21 }
0x21e8   :  { %v3368_v60 = vpop.permute.xlu1 %3367 }
0x21e9   :  { %v3370_v30 = vadd.f32 %v3368_v60, %v2345_v17  ;;  %v3267_v57 = vpop.permute.xlu0 %3266 }
0x21ea   :  { %v3269_v3 = vadd.f32 %v3267_v57, %v2225_v49 }
0x21eb   :  { %5068 = vtanh.f32 %v3370_v30 }
0x21ec   :  { %5070 = vtanh.f32 %v3269_v3 }
0x21f8   :  { %v5069_v7 = vpop.eup %5068 }
0x21f9   :  { %v5071_v53 = vpop.eup %5070  ;;  %3374 = vrot.lane.b32.xlu1 %v5069_v7, %s5299_s8 }
0x21fa   :  { %3273 = vrot.lane.b32.xlu0 %v5071_v53, %s5299_s8 }
0x226b   :  { %v3375_v31 = vpop.permute.xlu1 %3374 }
0x226c   :  { %v3377_v33 = vmul.f32 %v3375_v31, %v3372_v2  ;;  %v3274_v34 = vpop.permute.xlu0 %3273 }
0x226d   :  { %v3276_v39 = vmul.f32 %v3274_v34, %v3271_v63 }
0x226e   :  { %v6266_v55 = vadd.f32 %v3378_v56, %v3377_v33  ;;  %v5115_v56 = vld [vmem:[#allocation12 + $0x18] sm:$0xff] }
0x226f   :  { %v6268_v45 = vadd.f32 %v3277_v37, %v3276_v39  ;;  %v5116_v33 = vld [vmem:[#allocation9 + $0x18] sm:$0xff] }
0x2270   :  { %3482 = vrot.lane.b32.xlu1 %v6266_v55, %s5299_s8 }
0x2271   :  { %3381 = vrot.lane.b32.xlu0 %v6268_v45, %s5299_s8 }
0x22e2   :  { %v3483_v43 = vpop.permute.xlu1 %3482 }
0x22e3   :  { %v3382_v46 = vpop.permute.xlu0 %3381  ;;  %4829 = vmatmul.mubr.msk.f32.vlgmr.msra.gmra.mxu1 %vm185_vm0, %v3483_v43 }
0x22e4   :  { %4818 = vmatmul.mubr.msk.f32.vlgmr.msra.gmra.mxu0 %vm185_vm0, %v3382_v46  ;;  %4843 = vmatpush3.msra.mxu1 %v5959_v38 }
0x22e5   :  { %4832 = vmatpush3.msra.mxu0 %v5961_v40  ;;  %4844 = vmatprep.subr.mxu1 %v5296_v11 }
0x22e6   :  { %4833 = vmatprep.subr.mxu0 %v5296_v11  ;;  %4845 = vmatpush3.msra.mxu1 %v5970_v41 }
0x22e7   :  { %4834 = vmatpush3.msra.mxu0 %v5973_v28  ;;  %4846 = vmatprep.subr.mxu1 %v5296_v11 }
0x22e8   :  { %4835 = vmatprep.subr.mxu0 %v5296_v11  ;;  %4847 = vmatpush3.msra.mxu1 %v5982_v61 }
0x22e9   :  { %4836 = vmatpush3.msra.mxu0 %v5985_v47  ;;  %4848 = vmatprep.subr.mxu1 %v5296_v11 }
0x22ea   :  { %4837 = vmatprep.subr.mxu0 %v5296_v11  ;;  %4849 = vmatpush3.msra.mxu1 %v5991_v44 }
0x22eb   :  { %4850 = vmatprep.mubr.msk.f32.mxu1 %vm5297_vm1, %v5296_v11  ;;  %4838 = vmatpush3.msra.mxu0 %v5993_v50 }
0x22ec   :  { %4839 = vmatprep.mubr.msk.f32.mxu0 %vm5297_vm1, %v5296_v11  ;;  %4853 = vmatprep.subr.mxu0 %v5296_v11 }
0x22ed   :  { %4864 = vmatprep.subr.mxu1 %v5296_v11 }
0x23a3   :  { %v3552_v38 = vpop.f32.mrf.mxu1 }
0x23a4   :  { %v3451_v40 = vpop.f32.mrf.mxu0  ;;  %v3553_v48 = vadd.f32 %v6068_v10, %v3552_v38 }
0x23a5   :  { %v3452_v52 = vadd.f32 %v6063_v8, %v3451_v40  ;;  %v4830_v54 = vpop.f32.mrf.mxu1 }
0x23a6   :  { %v4819_v29 = vpop.f32.mrf.mxu0  ;;  %3564 = vrot.lane.b32.xlu1 %v3553_v48, %s5298_s21  ;;  %v3556_v15 = vadd.f32 %v3553_v48, %v2340_v51 }
0x23a7   :  { %3463 = vrot.lane.b32.xlu0 %v3452_v52, %s5298_s21  ;;  %v3455_v5 = vadd.f32 %v3452_v52, %v2230_v13 }
0x23a8   :  { %v4191_v36 = vmul.f32 -1.442695, %v3556_v15 }
0x23a9   :  { %v4189_v32 = vmul.f32 -1.442695, %v3455_v5 }
0x23aa   :  { %5072 = vpow2.f32 %v4191_v36 }
0x23ab   :  { %5074 = vpow2.f32 %v4189_v32 }
0x23b7   :  { %v5073_v12 = vpop.eup %5072 }
0x23b8   :  { %v5075_v17 = vpop.eup %5074  ;;  %v3560_v49 = vadd.f32 1.0, %v5073_v12 }
0x23b9   :  { %v3459_v24 = vadd.f32 1.0, %v5075_v17 }
0x23ba   :  { %5076 = vrcp.f32 %v3560_v49 }
0x23bb   :  { %5078 = vrcp.f32 %v3459_v24 }
0x23c7   :  { %v5077_v19 = vpop.eup %5076 }
0x23c8   :  { %v5079_v25 = vpop.eup %5078  ;;  %v3574_v27 = vsub.f32 1.0, %v5077_v19  ;;  %v3580_v60 = vmul.f32 %v5077_v19, %v6266_v55 }
0x23c9   :  { %v3473_v35 = vsub.f32 1.0, %v5079_v25  ;;  %v3479_v3 = vmul.f32 %v5079_v25, %v6268_v45 }
0x2418   :  { %v3565_v42 = vpop.permute.xlu1 %3564 }
0x2419   :  { %v3567_v9 = vmul.f32 %v5077_v19, %v3565_v42  ;;  %v3464_v0 = vpop.permute.xlu0 %3463 }
0x241a   :  { %v3466_v14 = vmul.f32 %v5079_v25, %v3464_v0 }
0x241b   :  { %3569 = vrot.lane.b32.xlu1 %v3567_v9, %s5298_s21 }
0x241c   :  { %3468 = vrot.lane.b32.xlu0 %v3466_v14, %s5298_s21 }
0x248d   :  { %v3570_v1 = vpop.permute.xlu1 %3569 }
0x248e   :  { %v3572_v18 = vadd.f32 %v3570_v1, %v2340_v51  ;;  %v3469_v20 = vpop.permute.xlu0 %3468 }
0x248f   :  { %v3471_v21 = vadd.f32 %v3469_v20, %v2230_v13 }
0x2490   :  { %5080 = vtanh.f32 %v3572_v18 }
0x2491   :  { %5082 = vtanh.f32 %v3471_v21 }
0x249d   :  { %v5081_v22 = vpop.eup %5080 }
0x249e   :  { %v5083_v26 = vpop.eup %5082  ;;  %3576 = vrot.lane.b32.xlu1 %v5081_v22, %s5299_s8 }
0x249f   :  { %3475 = vrot.lane.b32.xlu0 %v5083_v26, %s5299_s8 }
0x2510   :  { %v3577_v62 = vpop.permute.xlu1 %3576 }
0x2511   :  { %v3579_v30 = vmul.f32 %v3577_v62, %v3574_v27  ;;  %v3476_v57 = vpop.permute.xlu0 %3475 }
0x2512   :  { %v3478_v7 = vmul.f32 %v3476_v57, %v3473_v35 }
0x2513   :  { %v6310_v53 = vadd.f32 %v3580_v60, %v3579_v30  ;;  %v2330_v60 = vadd.f32 %v6082_v23, %v6036_v59  ;;  %v2240_v30 = vadd.f32 %v6054_v4, %v6077_v16 }
0x2514   :  { %v6312_v2 = vadd.f32 %v3479_v3, %v3478_v7 }
0x2515   :  { %3684 = vrot.lane.b32.xlu1 %v6310_v53, %s5299_s8 }
0x2516   :  { %3583 = vrot.lane.b32.xlu0 %v6312_v2, %s5299_s8 }
0x2587   :  { %v3685_v31 = vpop.permute.xlu1 %3684 }
0x2588   :  { %v3584_v63 = vpop.permute.xlu0 %3583  ;;  %4851 = vmatmul.mubr.msk.f32.vlgmr.msra.gmra.mxu1 %vm185_vm0, %v3685_v31 }
0x2589   :  { %4840 = vmatmul.mubr.msk.f32.vlgmr.msra.gmra.mxu0 %vm185_vm0, %v3584_v63  ;;  %4865 = vmatpush3.msra.mxu1 %v5115_v56 }
0x258a   :  { %4854 = vmatpush3.msra.mxu0 %v5116_v33  ;;  %4866 = vmatprep.subr.mxu1 %v5296_v11 }
0x258b   :  { %4855 = vmatprep.subr.mxu0 %v5296_v11  ;;  %4867 = vmatpush3.msra.mxu1 %v5970_v41 }
0x258c   :  { %4856 = vmatpush3.msra.mxu0 %v5973_v28  ;;  %4868 = vmatprep.subr.mxu1 %v5296_v11 }
0x258d   :  { %4857 = vmatprep.subr.mxu0 %v5296_v11  ;;  %4869 = vmatpush3.msra.mxu1 %v5982_v61 }
0x258e   :  { %4858 = vmatpush3.msra.mxu0 %v5985_v47  ;;  %4870 = vmatprep.subr.mxu1 %v5296_v11 }
0x258f   :  { %4859 = vmatprep.subr.mxu0 %v5296_v11  ;;  %4871 = vmatpush3.msra.mxu1 %v5991_v44  ;;  %v2335_v44 = vadd.f32 %v6034_v58, %v6082_v23 }
0x2590   :  { %4872 = vmatprep.mubr.msk.f32.mxu1 %vm5297_vm1, %v5296_v11  ;;  %4860 = vmatpush3.msra.mxu0 %v5993_v50  ;;  %v2235_v50 = vadd.f32 %v6077_v16, %v6056_v6 }
0x2591   :  { %4861 = vmatprep.mubr.msk.f32.mxu0 %vm5297_vm1, %v5296_v11  ;;  %4875 = vmatprep.subr.mxu0 %v5296_v11 }
0x2648   :  { %v3754_v41 = vpop.f32.mrf.mxu1 }
0x2649   :  { %v3653_v28 = vpop.f32.mrf.mxu0  ;;  %v3755_v61 = vadd.f32 %v6068_v10, %v3754_v41 }
0x264a   :  { %v3654_v47 = vadd.f32 %v6063_v8, %v3653_v28  ;;  %v4852_v34 = vpop.f32.mrf.mxu1 }
0x264b   :  { %v4841_v37 = vpop.f32.mrf.mxu0  ;;  %3766 = vrot.lane.b32.xlu1 %v3755_v61, %s5298_s21  ;;  %v3758_v39 = vadd.f32 %v3755_v61, %v2335_v44  ;;  %v3999_v34 = vld [vmem:[#allocation14 + $0x30] sm:$0xff] }
0x264c   :  { %3665 = vrot.lane.b32.xlu0 %v3654_v47, %s5298_s21  ;;  %v3657_v55 = vadd.f32 %v3654_v47, %v2235_v50  ;;  %v4000_v47 = vld [vmem:[#allocation14 + $0x38] sm:$0xff]  ;;  %v3998_v37 = vld [vmem:[#allocation14 + $0x28] sm:$0xff] }
0x264d   :  { %v4195_v45 = vmul.f32 -1.442695, %v3758_v39 }
0x264e   :  { %v4193_v43 = vmul.f32 -1.442695, %v3657_v55  ;;  %v3995_v55 = vld [vmem:[#allocation14 + $0x10] sm:$0xff] }
0x264f   :  { %5084 = vpow2.f32 %v4195_v45 }
0x2650   :  { %5086 = vpow2.f32 %v4193_v43  ;;  %v3994_v43 = vld [vmem:[#allocation14 + $0x8] sm:$0xff] }
0x265c   :  { %v5085_v46 = vpop.eup %5084 }
0x265d   :  { %v5087_v38 = vpop.eup %5086  ;;  %v3762_v40 = vadd.f32 1.0, %v5085_v46  ;;  %v3993_v46 = vld [vmem:[#allocation14] sm:$0xff] }
0x265e   :  { %v3661_v48 = vadd.f32 1.0, %v5087_v38 }
0x265f   :  { %5088 = vrcp.f32 %v3762_v40 }
0x2660   :  { %5090 = vrcp.f32 %v3661_v48 }
0x266c   :  { %v5089_v52 = vpop.eup %5088 }
0x266d   :  { %v5091_v29 = vpop.eup %5090  ;;  %v3776_v17 = vsub.f32 1.0, %v5089_v52  ;;  %v3782_v19 = vmul.f32 %v5089_v52, %v6310_v53 }
0x266e   :  { %v3675_v24 = vsub.f32 1.0, %v5091_v29  ;;  %v3681_v9 = vmul.f32 %v5091_v29, %v6312_v2 }
0x26bd   :  { %v3767_v54 = vpop.permute.xlu1 %3766 }
0x26be   :  { %v3769_v51 = vmul.f32 %v5089_v52, %v3767_v54  ;;  %v3666_v58 = vpop.permute.xlu0 %3665 }
0x26bf   :  { %v3668_v13 = vmul.f32 %v5091_v29, %v3666_v58 }
0x26c0   :  { %3771 = vrot.lane.b32.xlu1 %v3769_v51, %s5298_s21 }
0x26c1   :  { %3670 = vrot.lane.b32.xlu0 %v3668_v13, %s5298_s21 }
0x2732   :  { %v3772_v6 = vpop.permute.xlu1 %3771 }
0x2733   :  { %v3774_v15 = vadd.f32 %v3772_v6, %v2335_v44  ;;  %v3671_v5 = vpop.permute.xlu0 %3670  ;;  %v3997_v44 = vld [vmem:[#allocation14 + $0x20] sm:$0xff] }
0x2734   :  { %v3673_v36 = vadd.f32 %v3671_v5, %v2235_v50  ;;  %v3996_v50 = vld [vmem:[#allocation14 + $0x18] sm:$0xff] }
0x2735   :  { %5092 = vtanh.f32 %v3774_v15  ;;  %v3991_v15 = vld [vmem:[%s6415_s19] sm:$0xff] }
0x2736   :  { %5094 = vtanh.f32 %v3673_v36 }
0x2742   :  { %v5093_v32 = vpop.eup %5092 }
0x2743   :  { %v5095_v12 = vpop.eup %5094  ;;  %3778 = vrot.lane.b32.xlu1 %v5093_v32, %s5299_s8  ;;  %v4200_v32 = vld [vmem:[%s6414_s18] ss:$0 sm:$0xff] }
0x2744   :  { %3677 = vrot.lane.b32.xlu0 %v5095_v12, %s5299_s8 }
0x27b5   :  { %v3779_v49 = vpop.permute.xlu1 %3778 }
0x27b6   :  { %v3781_v42 = vmul.f32 %v3779_v49, %v3776_v17  ;;  %v3678_v25 = vpop.permute.xlu0 %3677 }
0x27b7   :  { %v3680_v0 = vmul.f32 %v3678_v25, %v3675_v24 }
0x27b8   :  { %v6351_v14 = vadd.f32 %v3782_v19, %v3781_v42 }
0x27b9   :  { %v6353_v1 = vadd.f32 %v3681_v9, %v3680_v0 }
0x27ba   :  { %3886 = vrot.lane.b32.xlu1 %v6351_v14, %s5299_s8 }
0x27bb   :  { %3785 = vrot.lane.b32.xlu0 %v6353_v1, %s5299_s8 }
0x282c   :  { %v3887_v18 = vpop.permute.xlu1 %3886 }
0x282d   :  { %v3786_v20 = vpop.permute.xlu0 %3785  ;;  %4873 = vmatmul.mubr.msk.f32.vlgmr.msra.gmra.mxu1 %vm185_vm0, %v3887_v18 }
0x282e   :  { %4862 = vmatmul.mubr.msk.f32.vlgmr.msra.gmra.mxu0 %vm185_vm0, %v3786_v20 }
0x282f   :  { %4891 = vmatprep.mubr.msk.f32.mxu0 %vm5297_vm1, %v5296_v11  ;;  %4876 = vmatpush3.msra.mxu0 %v4000_v47 }
0x2830   :  { %4877 = vmatprep.subr.mxu0 %v5296_v11 }
0x2831   :  { %4878 = vmatpush3.msra.mxu0 %v3999_v34 }
0x2832   :  { %4879 = vmatprep.subr.mxu0 %v5296_v11 }
0x2833   :  { %4880 = vmatpush3.msra.mxu0 %v3998_v37 }
0x2834   :  { %4881 = vmatprep.subr.mxu0 %v5296_v11 }
0x2835   :  { %4882 = vmatpush3.msra.mxu0 %v3997_v44 }
0x2836   :  { %4883 = vmatprep.subr.mxu0 %v5296_v11 }
0x2837   :  { %4884 = vmatpush3.msra.mxu0 %v3996_v50 }
0x2838   :  { %4885 = vmatprep.subr.mxu0 %v5296_v11 }
0x2839   :  { %4886 = vmatpush3.msra.mxu0 %v3995_v55 }
0x283a   :  { %4887 = vmatprep.subr.mxu0 %v5296_v11 }
0x283b   :  { %4888 = vmatpush3.msra.mxu0 %v3994_v43 }
0x283c   :  { %4889 = vmatprep.subr.mxu0 %v5296_v11 }
0x283d   :  { %4890 = vmatpush3.msra.mxu0 %v3993_v46 }
0x28ed   :  { %v3956_v21 = vpop.f32.mrf.mxu1 }
0x28ee   :  { %v3855_v22 = vpop.f32.mrf.mxu0  ;;  %v3957_v26 = vadd.f32 %v6068_v10, %v3956_v21 }
0x28ef   :  { %v3856_v27 = vadd.f32 %v6063_v8, %v3855_v22  ;;  %v4874_v62 = vpop.f32.mrf.mxu1 }
0x28f0   :  { %v4863_v35 = vpop.f32.mrf.mxu0  ;;  %3968 = vrot.lane.b32.xlu1 %v3957_v26, %s5298_s21  ;;  %v3960_v57 = vadd.f32 %v3957_v26, %v2330_v60 }
0x28f1   :  { %3867 = vrot.lane.b32.xlu0 %v3856_v27, %s5298_s21  ;;  %v3859_v3 = vadd.f32 %v3856_v27, %v2240_v30 }
0x28f2   :  { %v4199_v7 = vmul.f32 -1.442695, %v3960_v57 }
0x28f3   :  { %v4197_v53 = vmul.f32 -1.442695, %v3859_v3 }
0x28f4   :  { %5096 = vpow2.f32 %v4199_v7 }
0x28f5   :  { %5098 = vpow2.f32 %v4197_v53 }
0x2901   :  { %v5097_v10 = vpop.eup %5096 }
0x2902   :  { %v5099_v8 = vpop.eup %5098  ;;  %v3964_v2 = vadd.f32 1.0, %v5097_v10 }
0x2903   :  { %v3863_v31 = vadd.f32 1.0, %v5099_v8 }
0x2904   :  { %5100 = vrcp.f32 %v3964_v2 }
0x2905   :  { %5102 = vrcp.f32 %v3863_v31 }
0x2911   :  { %v5101_v63 = vpop.eup %5100 }
0x2912   :  { %v5103_v33 = vpop.eup %5102  ;;  %v3978_v38 = vsub.f32 1.0, %v5101_v63  ;;  %v3984_v48 = vmul.f32 %v5101_v63, %v6351_v14 }
0x2913   :  { %v3877_v51 = vsub.f32 1.0, %v5103_v33  ;;  %v3883_v13 = vmul.f32 %v5103_v33, %v6353_v1 }
0x2962   :  { %v3969_v56 = vpop.permute.xlu1 %3968 }
0x2963   :  { %v3971_v41 = vmul.f32 %v5101_v63, %v3969_v56  ;;  %v3868_v59 = vpop.permute.xlu0 %3867 }
0x2964   :  { %v3870_v23 = vmul.f32 %v5103_v33, %v3868_v59 }
0x2965   :  { %3973 = vrot.lane.b32.xlu1 %v3971_v41, %s5298_s21 }
0x2966   :  { %3872 = vrot.lane.b32.xlu0 %v3870_v23, %s5298_s21 }
0x29d7   :  { %v3974_v4 = vpop.permute.xlu1 %3973 }
0x29d8   :  { %v3976_v16 = vadd.f32 %v3974_v4, %v2330_v60  ;;  %v3873_v28 = vpop.permute.xlu0 %3872 }
0x29d9   :  { %v3875_v61 = vadd.f32 %v3873_v28, %v2240_v30 }
0x29da   :  { %5104 = vtanh.f32 %v3976_v16 }
0x29db   :  { %5106 = vtanh.f32 %v3875_v61 }
0x29e7   :  { %v5105_v39 = vpop.eup %5104 }
0x29e8   :  { %v5107_v45 = vpop.eup %5106  ;;  %3980 = vrot.lane.b32.xlu1 %v5105_v39, %s5299_s8 }
0x29e9   :  { %3879 = vrot.lane.b32.xlu0 %v5107_v45, %s5299_s8 }
0x2a5a   :  { %v3981_v40 = vpop.permute.xlu1 %3980 }
0x2a5b   :  { %v3983_v52 = vmul.f32 %v3981_v40, %v3978_v38  ;;  %v3880_v29 = vpop.permute.xlu0 %3879 }
0x2a5c   :  { %v3882_v58 = vmul.f32 %v3880_v29, %v3877_v51 }
0x2a5d   :  { %v3985_v54 = vadd.f32 %v3984_v48, %v3983_v52 }
0x2a5e   :  { %v3884_v6 = vadd.f32 %v3883_v13, %v3882_v58 }
0x2a5f   :  { %3987 = vrot.lane.b32.xlu1 %v3985_v54, %s5299_s8  ;;  %s5300_s8 = smov [#allocation15]  }
0x2a60   :  { %s4088_s10 = sshll.u32 %s5300_s8, 4  ;;  %s4089_s10 = int_to_ptr.vmem [resolvable:$true] %s4088_s10 }
0x2a61   :  { %s5257_s6 = scalar_lea.vmem %s4089_s10, 128  ;;  %p5262_p8 = scmp.lt.s32.totalorder %s4089_s10, %s4089_s10 }
0x2a62   :  { %p5258_p7 = scmp.ne.s32.totalorder %s4089_s10, %s5257_s6  ;;  %p5263_p9 = scmp.lt.s32.totalorder %s5257_s6, %s5257_s6 }
0x2a64   :  { %p5264_p10 = por %p5263_p9, %p5262_p8 }
0x2a66   :  { %p5265_p11 = pnand %p5264_p10, %p5258_p7 }
0x2ad1   :  { %v3988_v11 = vpop.permute.xlu1 %3987 }
0x2ad2   :  { %v3990_v5 = vsel %vm185_vm0, %v3988_v11, %v3884_v6 }
0x2ad3   :  { %v3992_v36 = vmul.f32 %v3991_v15, %v3990_v5 }
0x2ad5   :  { %4892 = vmatmul.mubr.msk.f32.vlgmr.msra.gmra.mxu0 %vm2113_vm3, %v3992_v36 }
0x2b95   :  { %v4077_v12 = vpop.f32.mrf.mxu0 }
0x2b96   :  { %v4078_v17 = vadd.f32 %v4200_v32, %v4077_v12 }
0x2b97   :  { %v4893_v49 = vpop.f32.mrf.mxu0 }
0x2b98   :  { %4081 = vst [vmem:[#allocation15] sm:$0xff] %v4078_v17 }
0x2b99   :  { %5268 = shalt.err (!%p5265_p11)
}
0x2b9a   :  { %4091 = dma.vmem_to_hbm [thread:$0]  %s4089_s10, 128, %s6416_s20, [#allocation5]  }
0x2b9b   :  { %5285 = dma.done.wait [#allocation5], 128  }
0x2b9c   :  { %5286 = vsyncadd [#allocation5], 4294967168 }
0x2b9d   :  { %4095 = vsyncpa [#allocation4], 1 }
0x2b9e   :  { %4096 = vsyncpa [#allocation7], 1 }
0x2b9f   :  { %4097 = vsyncpa [#allocation10], 1 }
0x2ba0   :  { %4098 = vsyncpa [#allocation13], 1 }
0x2ba1   :  { %4099 = vsyncpa [#allocation5], 1 }

</bundles_post_ra>
